<compile_context>
chip_gen: v7x
topology: tpu7x:2x2x1
jax: 0.10.0
libtpu: 0.0.40
codegen_flags: <defaults>
</compile_context>

<pallas_src>
import jax
import jax.numpy as jnp
from jax.experimental import pallas as pl
from jax.experimental.pallas import tpu as pltpu

# ----------------------------- synthetic config -----------------------------
STEMS = ("kick", "snare", "toms", "hihat", "cymbals")   # config['inference_models']
N_STEMS = len(STEMS)
CH = 2                       # stereo channels
N_FFT = 30                   # -> F = 16 frequency bins
F_BINS = N_FFT // 2 + 1      # 16
N_FRAMES = 128               # T frames (P = B*F*T = 2048)
HIDDEN = 8                   # hidden width of the stand-in mask network
EPS = 1e-7                   # matches `pred_sum + 1e-07`

LANES = 128                  # lane width of the hot-path layout
SUB_ROWS = 8                 # rows per inner-loop slice (constant vreg live-set)
MAX_TILE_ROWS = 512          # rows of 128 positions per grid step
OUT_COLS = N_STEMS * CH * LANES   # 1280 contiguous output lanes per row


def _round_up(x, m):
    return -(-x // m) * m


def _pow(x, a):
    """(mask * mag) ** wiener_exponent, with safe lowering for common alphas."""
    if a == 1.0:
        return x
    if a == 2.0:
        return x * x
    # TODO(synk): torch pow(0, a) == 0 exactly; the log/exp form returns a tiny
    #             positive value for exact-zero bins (harmless: multiplied by mag=0).
    return jnp.exp(a * jnp.log(x + 1e-12))


# ------------------------------- Pallas kernel -------------------------------
def make_wiener_kernel(alpha):
    def kernel(w1_ref, b1_ref, w2_ref, b2_ref, mag_ref, out_ref):
        # w1_ref : (S*C*H,)  SMEM   b1_ref : (S*H,)  SMEM
        # w2_ref : (S*H*C,)  SMEM   b2_ref : (S*C,)  SMEM
        # mag_ref: (C, rt, 128)      VMEM  lane-dense magnitude tile
        # out_ref: (rt, 1280)        VMEM  contiguous lane-dense per-stem output
        rt = out_ref.shape[0]
        n_sub = rt // SUB_ROWS

        # Hoist every mask-network weight out of the row loop: ~210 SMEM scalar
        # reads per grid step, amortised over rt*128 positions.
        w1 = [[[w1_ref[(s * CH + c) * HIDDEN + j] for j in range(HIDDEN)]
               for c in range(CH)] for s in range(N_STEMS)]
        b1 = [[b1_ref[s * HIDDEN + j] for j in range(HIDDEN)]
              for s in range(N_STEMS)]
        w2 = [[[w2_ref[(s * HIDDEN + j) * CH + c] for c in range(CH)]
               for j in range(HIDDEN)] for s in range(N_STEMS)]
        b2 = [[b2_ref[s * CH + c] for c in range(CH)] for s in range(N_STEMS)]

        # Inner loop over 8-row sub-slices keeps the vreg live-set constant
        # (~22 vregs) while the BlockSpec block stays large.
        @pl.loop(0, n_sub)
        def _(i):
            r0 = pl.multiple_of(i * SUB_ROWS, SUB_ROWS)
            mag = [mag_ref[c, pl.ds(r0, SUB_ROWS), :] for c in range(CH)]
            preds = [[None] * CH for _ in range(N_STEMS)]

            for s in range(N_STEMS):                       # static unroll
                # stand-in UNet mask head: 1x1 conv -> ReLU -> 1x1 conv -> sigmoid
                # as VPU broadcast MACs fed by SMEM scalars.
                hs = []
                for j in range(HIDDEN):
                    h = mag[0] * w1[s][0][j]
                    for c in range(1, CH):
                        h = h + mag[c] * w1[s][c][j]
                    hs.append(jnp.maximum(h + b1[s][j], 0.0))
                for c in range(CH):
                    m = hs[0] * w2[s][0][c]
                    for j in range(1, HIDDEN):
                        m = m + hs[j] * w2[s][j][c]
                    m = m + b2[s][c]
                    # sigmoid(x) = 0.5*tanh(x/2) + 0.5  -> single EUP op
                    mask = 0.5 * jnp.tanh(0.5 * m) + 0.5
                    preds[s][c] = _pow(mask * mag[c], alpha)   # (mask*mag)**alpha

            for c in range(CH):
                psum = preds[0][c]
                for s in range(1, N_STEMS):
                    psum = psum + preds[s][c]                  # sum(mag_pred)
                # exact Wiener normalisation, one divide per channel, shared
                scale = mag[c] / (psum + EPS)
                for s in range(N_STEMS):
                    col = (s * CH + c) * LANES                 # static lane offset
                    out_ref[pl.ds(r0, SUB_ROWS), pl.ds(col, LANES)] = (
                        preds[s][c] * scale).astype(out_ref.dtype)
    return kernel


def wiener_separate_pallas(mag_crl, w1f, b1f, w2f, b2f, alpha, rows_per_tile,
                           out_dtype=jnp.float32):
    """mag_crl: (C, R, 128) lane-dense magnitudes -> (R, S*C*128) per-stem output."""
    C, R, L = mag_crl.shape
    assert L == LANES
    assert rows_per_tile % SUB_ROWS == 0 and R % rows_per_tile == 0
    smem = pl.BlockSpec(memory_space=pltpu.MemorySpace.SMEM)   # whole array in SMEM
    return pl.pallas_call(
        make_wiener_kernel(float(alpha)),
        out_shape=jax.ShapeDtypeStruct((R, OUT_COLS), out_dtype),
        grid=(R // rows_per_tile,),
        in_specs=[smem, smem, smem, smem,
                  pl.BlockSpec((C, rows_per_tile, LANES), lambda r: (0, r, 0))],
        out_specs=pl.BlockSpec((rows_per_tile, OUT_COLS), lambda r: (r, 0)),
        compiler_params=pltpu.CompilerParams(
            dimension_semantics=("parallel",)),                # shards across v7x's 2 TCs
    )(w1f, b1f, w2f, b2f, mag_crl)


# ------------------------------ plain-JAX glue --------------------------------
def _dft_mats():
    n = jnp.arange(N_FFT, dtype=jnp.float32)
    k = jnp.arange(F_BINS, dtype=jnp.float32)
    ang = (2.0 * jnp.pi / N_FFT) * k[:, None] * n[None, :]     # (F, N)
    return jnp.cos(ang), jnp.sin(ang)


def batch_stft(x):
    """x: (B, C, N) waveform -> (mag, phase), each (B, C, F, T) float32."""
    B, C, N = x.shape
    T = N // N_FFT
    frames = x[:, :, :T * N_FFT].reshape(B, C, T, N_FFT)
    cosm, sinm = _dft_mats()
    re = jnp.einsum('bctn,fn->bcft', frames, cosm)
    im = -jnp.einsum('bctn,fn->bcft', frames, sinm)
    mag = jnp.sqrt(re * re + im * im)
    phase = jnp.arctan2(im, re)
    return mag.astype(jnp.float32), phase.astype(jnp.float32)


def batch_istft(mag, phase, trim_length):
    """mag/phase: (B, C, F, T) -> waveform (B, C, trim_length) float32."""
    cosm, sinm = _dft_mats()
    w = jnp.full((F_BINS,), 2.0, jnp.float32).at[0].set(1.0)
    if N_FFT % 2 == 0:
        w = w.at[F_BINS - 1].set(1.0)                          # Nyquist bin weight
    re = mag * jnp.cos(phase) * w[None, None, :, None]
    im = mag * jnp.sin(phase) * w[None, None, :, None]
    frames = (jnp.einsum('bcft,fn->bctn', re, cosm)
              - jnp.einsum('bcft,fn->bctn', im, sinm)) / N_FFT
    B, C, T, _ = frames.shape
    return frames.reshape(B, C, T * N_FFT)[:, :, :trim_length].astype(jnp.float32)


def _prep_layout(mag):
    """(B, C, F, T) -> channel-leading lane-dense (C, R_pad, 128), plus (P, rt)."""
    B, C, F, T = mag.shape
    P = B * F * T
    flat = jnp.transpose(mag, (1, 0, 2, 3)).reshape(C, P)      # (C, P) channel-leading
    R = -(-P // LANES)
    rt = min(MAX_TILE_ROWS, _round_up(R, SUB_ROWS))
    R_pad = _round_up(R, rt)
    p_pad = R_pad * LANES
    if p_pad != P:
        flat = jnp.pad(flat, ((0, 0), (0, p_pad - P)))         # zero pad -> zero output
    return flat.reshape(C, R_pad, LANES), P, rt


# --------------------------------- module ------------------------------------
class LarsNetPallas:
    """Pallas reimplementation of LarsNet with wiener_filter=True."""

    def __init__(self, key, wiener_exponent=1.0, out_dtype=jnp.float32):
        self.wiener_exponent = float(wiener_exponent)
        self.out_dtype = out_dtype       # set jnp.bfloat16 once HBM-bound
        self.stems = STEMS
        k1, k2, k3, k4 = jax.random.split(key, 4)
        # deterministic synthetic per-stem mask-network weights
        self.w1 = 0.5 * jax.random.normal(k1, (N_STEMS, CH, HIDDEN), jnp.float32)
        self.b1 = 0.1 * jax.random.normal(k2, (N_STEMS, HIDDEN), jnp.float32)
        self.w2 = 0.5 * jax.random.normal(k3, (N_STEMS, HIDDEN, CH), jnp.float32)
        self.b2 = 0.1 * jax.random.normal(k4, (N_STEMS, CH), jnp.float32)
        # flattened 1-D copies for SMEM (avoids 2-D SMEM tile padding blowup)
        self.w1f = self.w1.reshape(-1)
        self.b1f = self.b1.reshape(-1)
        self.w2f = self.w2.reshape(-1)
        self.b2f = self.b2.reshape(-1)

    @staticmethod
    def _fix_dim(x):
        if x.ndim == 1:
            x = jnp.tile(x[None, :], (2, 1))   # mono -> stereo (torch .repeat(2, 1))
        if x.ndim == 2:
            x = x[None, ...]                   # add batch dim
        return x

    def separate_wiener(self, x):
        x = self._fix_dim(x)                                        # (B, C, N)
        B, C, N = x.shape
        mag, phase = batch_stft(x)                                  # (B, C, F, T)
        _, _, F, T = mag.shape
        P = B * F * T
        mag_crl, _, rt = _prep_layout(mag)                          # (C, R_pad, 128)
        y = wiener_separate_pallas(mag_crl, self.w1f, self.b1f,
                                   self.w2f, self.b2f,
                                   self.wiener_exponent, rt,
                                   self.out_dtype)                  # (R_pad, 1280)
        R_pad = y.shape[0]
        y = y.astype(jnp.float32).reshape(R_pad, N_STEMS * C, LANES)
        y = jnp.transpose(y, (1, 0, 2)).reshape(N_STEMS, C, R_pad * LANES)[:, :, :P]
        y_spec = jnp.transpose(y.reshape(N_STEMS, C, B, F, T),
                               (0, 2, 1, 3, 4))                     # (S, B, C, F, T)
        out = {}
        for s, stem in enumerate(self.stems):
            wav = batch_istft(y_spec[s], phase, trim_length=N)      # (B, C, N)
            out[stem] = jnp.squeeze(wav, axis=0)                    # (C, N)
        return out

    def __call__(self, x):
        # forward(): wiener_filter=True branch -> separate_wiener
        return self.separate_wiener(x)


# pure-JAX reference of the kernel math (for a numerics check)
def _reference_spec(mag_cp, w1, b1, w2, b2, alpha):
    """mag_cp: (C, P) -> (S, C, P)."""
    preds = []
    for s in range(N_STEMS):
        h = jnp.maximum(jnp.einsum('ch,cp->hp', w1[s], mag_cp) + b1[s][:, None], 0.0)
        m = jnp.einsum('hc,hp->cp', w2[s], h) + b2[s][:, None]
        mask = 1.0 / (1.0 + jnp.exp(-m))
        preds.append(_pow(mask * mag_cp, alpha))
    psum = preds[0]
    for p in preds[1:]:
        psum = psum + p
    return jnp.stack([mag_cp * (p / (psum + EPS)) for p in preds], axis=0)


if __name__ == "__main__":
    key = jax.random.PRNGKey(0)
    kx, kp = jax.random.split(key)

    # stereo waveform; framed DFT gives (F, T) = (16, 128) -> P = 2048 positions
    x = jax.random.normal(kx, (CH, N_FFT * N_FRAMES), dtype=jnp.float32)

    model = LarsNetPallas(kp, wiener_exponent=1.0)
    out = model(x)                                  # dict: stem -> (2, 3840) waveform
    for stem in STEMS:
        jax.block_until_ready(out[stem])
        assert out[stem].shape == (CH, N_FFT * N_FRAMES)

    # check the Pallas hot path against a pure-JAX reference
    mag, _ = batch_stft(model._fix_dim(x))
    B, C, F, T = mag.shape
    P = B * F * T
    mag_crl, _, rt = _prep_layout(mag)
    got = wiener_separate_pallas(mag_crl, model.w1f, model.b1f,
                                 model.w2f, model.b2f,
                                 model.wiener_exponent, rt)
    jax.block_until_ready(got)
    R_pad = got.shape[0]
    got = got.reshape(R_pad, N_STEMS * C, LANES)
    got = jnp.transpose(got, (1, 0, 2)).reshape(N_STEMS, C, R_pad * LANES)[:, :, :P]
    mag_cp = jnp.transpose(mag, (1, 0, 2, 3)).reshape(C, P)
    want = _reference_spec(mag_cp, model.w1, model.b1, model.w2, model.b2,
                           model.wiener_exponent)
    assert got.shape == want.shape
    # exact sigmoid/normalisation in-kernel -> tight tolerance (was rtol=2e-2)
    assert jnp.allclose(got, want, rtol=1e-3, atol=1e-5), "Pallas kernel mismatch"

    print("KERNEL_OK")
</pallas_src>

<mosaic_0001>
module attributes {stable_mosaic.version = 11 : i64} {
  func.func @kernel(%arg0: i32, %arg1: memref<80xf32, #tpu.memory_space<smem>>, %arg2: memref<40xf32, #tpu.memory_space<smem>>, %arg3: memref<80xf32, #tpu.memory_space<smem>>, %arg4: memref<10xf32, #tpu.memory_space<smem>>, %arg5: memref<2x16x128xf32, #tpu.memory_space<vmem>>, %arg6: memref<16x1280xf32, #tpu.memory_space<vmem>>) attributes {dimension_semantics = [#tpu.dimension_semantics<parallel>], iteration_bounds = array<i64: 1>, scalar_prefetch = 0 : i64, scratch_operands = 0 : i64, tpu.core_type = #tpu.core_type<tc>, window_params = [{transform_indices = @transform_0, window_bounds = array<i64: 80>}, {transform_indices = @transform_1, window_bounds = array<i64: 40>}, {transform_indices = @transform_2, window_bounds = array<i64: 80>}, {transform_indices = @transform_3, window_bounds = array<i64: 10>}, {transform_indices = @transform_4, window_bounds = array<i64: 2, 16, 128>}, {transform_indices = @transform_5, window_bounds = array<i64: 16, 1280>}]} {
    %c0 = arith.constant 0 : index
    %0 = memref.load %arg1[%c0] : memref<80xf32, #tpu.memory_space<smem>>
    %c1 = arith.constant 1 : index
    %1 = memref.load %arg1[%c1] : memref<80xf32, #tpu.memory_space<smem>>
    %c2 = arith.constant 2 : index
    %2 = memref.load %arg1[%c2] : memref<80xf32, #tpu.memory_space<smem>>
    %c3 = arith.constant 3 : index
    %3 = memref.load %arg1[%c3] : memref<80xf32, #tpu.memory_space<smem>>
    %c4 = arith.constant 4 : index
    %4 = memref.load %arg1[%c4] : memref<80xf32, #tpu.memory_space<smem>>
    %c5 = arith.constant 5 : index
    %5 = memref.load %arg1[%c5] : memref<80xf32, #tpu.memory_space<smem>>
    %c6 = arith.constant 6 : index
    %6 = memref.load %arg1[%c6] : memref<80xf32, #tpu.memory_space<smem>>
    %c7 = arith.constant 7 : index
    %7 = memref.load %arg1[%c7] : memref<80xf32, #tpu.memory_space<smem>>
    %c8 = arith.constant 8 : index
    %8 = memref.load %arg1[%c8] : memref<80xf32, #tpu.memory_space<smem>>
    %c9 = arith.constant 9 : index
    %9 = memref.load %arg1[%c9] : memref<80xf32, #tpu.memory_space<smem>>
    %c10 = arith.constant 10 : index
    %10 = memref.load %arg1[%c10] : memref<80xf32, #tpu.memory_space<smem>>
    %c11 = arith.constant 11 : index
    %11 = memref.load %arg1[%c11] : memref<80xf32, #tpu.memory_space<smem>>
    %c12 = arith.constant 12 : index
    %12 = memref.load %arg1[%c12] : memref<80xf32, #tpu.memory_space<smem>>
    %c13 = arith.constant 13 : index
    %13 = memref.load %arg1[%c13] : memref<80xf32, #tpu.memory_space<smem>>
    %c14 = arith.constant 14 : index
    %14 = memref.load %arg1[%c14] : memref<80xf32, #tpu.memory_space<smem>>
    %c15 = arith.constant 15 : index
    %15 = memref.load %arg1[%c15] : memref<80xf32, #tpu.memory_space<smem>>
    %c16 = arith.constant 16 : index
    %16 = memref.load %arg1[%c16] : memref<80xf32, #tpu.memory_space<smem>>
    %c17 = arith.constant 17 : index
    %17 = memref.load %arg1[%c17] : memref<80xf32, #tpu.memory_space<smem>>
    %c18 = arith.constant 18 : index
    %18 = memref.load %arg1[%c18] : memref<80xf32, #tpu.memory_space<smem>>
    %c19 = arith.constant 19 : index
    %19 = memref.load %arg1[%c19] : memref<80xf32, #tpu.memory_space<smem>>
    %c20 = arith.constant 20 : index
    %20 = memref.load %arg1[%c20] : memref<80xf32, #tpu.memory_space<smem>>
    %c21 = arith.constant 21 : index
    %21 = memref.load %arg1[%c21] : memref<80xf32, #tpu.memory_space<smem>>
    %c22 = arith.constant 22 : index
    %22 = memref.load %arg1[%c22] : memref<80xf32, #tpu.memory_space<smem>>
    %c23 = arith.constant 23 : index
    %23 = memref.load %arg1[%c23] : memref<80xf32, #tpu.memory_space<smem>>
    %c24 = arith.constant 24 : index
    %24 = memref.load %arg1[%c24] : memref<80xf32, #tpu.memory_space<smem>>
    %c25 = arith.constant 25 : index
    %25 = memref.load %arg1[%c25] : memref<80xf32, #tpu.memory_space<smem>>
    %c26 = arith.constant 26 : index
    %26 = memref.load %arg1[%c26] : memref<80xf32, #tpu.memory_space<smem>>
    %c27 = arith.constant 27 : index
    %27 = memref.load %arg1[%c27] : memref<80xf32, #tpu.memory_space<smem>>
    %c28 = arith.constant 28 : index
    %28 = memref.load %arg1[%c28] : memref<80xf32, #tpu.memory_space<smem>>
    %c29 = arith.constant 29 : index
    %29 = memref.load %arg1[%c29] : memref<80xf32, #tpu.memory_space<smem>>
    %c30 = arith.constant 30 : index
    %30 = memref.load %arg1[%c30] : memref<80xf32, #tpu.memory_space<smem>>
    %c31 = arith.constant 31 : index
    %31 = memref.load %arg1[%c31] : memref<80xf32, #tpu.memory_space<smem>>
    %c32 = arith.constant 32 : index
    %32 = memref.load %arg1[%c32] : memref<80xf32, #tpu.memory_space<smem>>
    %c33 = arith.constant 33 : index
    %33 = memref.load %arg1[%c33] : memref<80xf32, #tpu.memory_space<smem>>
    %c34 = arith.constant 34 : index
    %34 = memref.load %arg1[%c34] : memref<80xf32, #tpu.memory_space<smem>>
    %c35 = arith.constant 35 : index
    %35 = memref.load %arg1[%c35] : memref<80xf32, #tpu.memory_space<smem>>
    %c36 = arith.constant 36 : index
    %36 = memref.load %arg1[%c36] : memref<80xf32, #tpu.memory_space<smem>>
    %c37 = arith.constant 37 : index
    %37 = memref.load %arg1[%c37] : memref<80xf32, #tpu.memory_space<smem>>
    %c38 = arith.constant 38 : index
    %38 = memref.load %arg1[%c38] : memref<80xf32, #tpu.memory_space<smem>>
    %c39 = arith.constant 39 : index
    %39 = memref.load %arg1[%c39] : memref<80xf32, #tpu.memory_space<smem>>
    %c40 = arith.constant 40 : index
    %40 = memref.load %arg1[%c40] : memref<80xf32, #tpu.memory_space<smem>>
    %c41 = arith.constant 41 : index
    %41 = memref.load %arg1[%c41] : memref<80xf32, #tpu.memory_space<smem>>
    %c42 = arith.constant 42 : index
    %42 = memref.load %arg1[%c42] : memref<80xf32, #tpu.memory_space<smem>>
    %c43 = arith.constant 43 : index
    %43 = memref.load %arg1[%c43] : memref<80xf32, #tpu.memory_space<smem>>
    %c44 = arith.constant 44 : index
    %44 = memref.load %arg1[%c44] : memref<80xf32, #tpu.memory_space<smem>>
    %c45 = arith.constant 45 : index
    %45 = memref.load %arg1[%c45] : memref<80xf32, #tpu.memory_space<smem>>
    %c46 = arith.constant 46 : index
    %46 = memref.load %arg1[%c46] : memref<80xf32, #tpu.memory_space<smem>>
    %c47 = arith.constant 47 : index
    %47 = memref.load %arg1[%c47] : memref<80xf32, #tpu.memory_space<smem>>
    %c48 = arith.constant 48 : index
    %48 = memref.load %arg1[%c48] : memref<80xf32, #tpu.memory_space<smem>>
    %c49 = arith.constant 49 : index
    %49 = memref.load %arg1[%c49] : memref<80xf32, #tpu.memory_space<smem>>
    %c50 = arith.constant 50 : index
    %50 = memref.load %arg1[%c50] : memref<80xf32, #tpu.memory_space<smem>>
    %c51 = arith.constant 51 : index
    %51 = memref.load %arg1[%c51] : memref<80xf32, #tpu.memory_space<smem>>
    %c52 = arith.constant 52 : index
    %52 = memref.load %arg1[%c52] : memref<80xf32, #tpu.memory_space<smem>>
    %c53 = arith.constant 53 : index
    %53 = memref.load %arg1[%c53] : memref<80xf32, #tpu.memory_space<smem>>
    %c54 = arith.constant 54 : index
    %54 = memref.load %arg1[%c54] : memref<80xf32, #tpu.memory_space<smem>>
    %c55 = arith.constant 55 : index
    %55 = memref.load %arg1[%c55] : memref<80xf32, #tpu.memory_space<smem>>
    %c56 = arith.constant 56 : index
    %56 = memref.load %arg1[%c56] : memref<80xf32, #tpu.memory_space<smem>>
    %c57 = arith.constant 57 : index
    %57 = memref.load %arg1[%c57] : memref<80xf32, #tpu.memory_space<smem>>
    %c58 = arith.constant 58 : index
    %58 = memref.load %arg1[%c58] : memref<80xf32, #tpu.memory_space<smem>>
    %c59 = arith.constant 59 : index
    %59 = memref.load %arg1[%c59] : memref<80xf32, #tpu.memory_space<smem>>
    %c60 = arith.constant 60 : index
    %60 = memref.load %arg1[%c60] : memref<80xf32, #tpu.memory_space<smem>>
    %c61 = arith.constant 61 : index
    %61 = memref.load %arg1[%c61] : memref<80xf32, #tpu.memory_space<smem>>
    %c62 = arith.constant 62 : index
    %62 = memref.load %arg1[%c62] : memref<80xf32, #tpu.memory_space<smem>>
    %c63 = arith.constant 63 : index
    %63 = memref.load %arg1[%c63] : memref<80xf32, #tpu.memory_space<smem>>
    %c64 = arith.constant 64 : index
    %64 = memref.load %arg1[%c64] : memref<80xf32, #tpu.memory_space<smem>>
    %c65 = arith.constant 65 : index
    %65 = memref.load %arg1[%c65] : memref<80xf32, #tpu.memory_space<smem>>
    %c66 = arith.constant 66 : index
    %66 = memref.load %arg1[%c66] : memref<80xf32, #tpu.memory_space<smem>>
    %c67 = arith.constant 67 : index
    %67 = memref.load %arg1[%c67] : memref<80xf32, #tpu.memory_space<smem>>
    %c68 = arith.constant 68 : index
    %68 = memref.load %arg1[%c68] : memref<80xf32, #tpu.memory_space<smem>>
    %c69 = arith.constant 69 : index
    %69 = memref.load %arg1[%c69] : memref<80xf32, #tpu.memory_space<smem>>
    %c70 = arith.constant 70 : index
    %70 = memref.load %arg1[%c70] : memref<80xf32, #tpu.memory_space<smem>>
    %c71 = arith.constant 71 : index
    %71 = memref.load %arg1[%c71] : memref<80xf32, #tpu.memory_space<smem>>
    %c72 = arith.constant 72 : index
    %72 = memref.load %arg1[%c72] : memref<80xf32, #tpu.memory_space<smem>>
    %c73 = arith.constant 73 : index
    %73 = memref.load %arg1[%c73] : memref<80xf32, #tpu.memory_space<smem>>
    %c74 = arith.constant 74 : index
    %74 = memref.load %arg1[%c74] : memref<80xf32, #tpu.memory_space<smem>>
    %c75 = arith.constant 75 : index
    %75 = memref.load %arg1[%c75] : memref<80xf32, #tpu.memory_space<smem>>
    %c76 = arith.constant 76 : index
    %76 = memref.load %arg1[%c76] : memref<80xf32, #tpu.memory_space<smem>>
    %c77 = arith.constant 77 : index
    %77 = memref.load %arg1[%c77] : memref<80xf32, #tpu.memory_space<smem>>
    %c78 = arith.constant 78 : index
    %78 = memref.load %arg1[%c78] : memref<80xf32, #tpu.memory_space<smem>>
    %c79 = arith.constant 79 : index
    %79 = memref.load %arg1[%c79] : memref<80xf32, #tpu.memory_space<smem>>
    %c0_0 = arith.constant 0 : index
    %80 = memref.load %arg2[%c0_0] : memref<40xf32, #tpu.memory_space<smem>>
    %c1_1 = arith.constant 1 : index
    %81 = memref.load %arg2[%c1_1] : memref<40xf32, #tpu.memory_space<smem>>
    %c2_2 = arith.constant 2 : index
    %82 = memref.load %arg2[%c2_2] : memref<40xf32, #tpu.memory_space<smem>>
    %c3_3 = arith.constant 3 : index
    %83 = memref.load %arg2[%c3_3] : memref<40xf32, #tpu.memory_space<smem>>
    %c4_4 = arith.constant 4 : index
    %84 = memref.load %arg2[%c4_4] : memref<40xf32, #tpu.memory_space<smem>>
    %c5_5 = arith.constant 5 : index
    %85 = memref.load %arg2[%c5_5] : memref<40xf32, #tpu.memory_space<smem>>
    %c6_6 = arith.constant 6 : index
    %86 = memref.load %arg2[%c6_6] : memref<40xf32, #tpu.memory_space<smem>>
    %c7_7 = arith.constant 7 : index
    %87 = memref.load %arg2[%c7_7] : memref<40xf32, #tpu.memory_space<smem>>
    %c8_8 = arith.constant 8 : index
    %88 = memref.load %arg2[%c8_8] : memref<40xf32, #tpu.memory_space<smem>>
    %c9_9 = arith.constant 9 : index
    %89 = memref.load %arg2[%c9_9] : memref<40xf32, #tpu.memory_space<smem>>
    %c10_10 = arith.constant 10 : index
    %90 = memref.load %arg2[%c10_10] : memref<40xf32, #tpu.memory_space<smem>>
    %c11_11 = arith.constant 11 : index
    %91 = memref.load %arg2[%c11_11] : memref<40xf32, #tpu.memory_space<smem>>
    %c12_12 = arith.constant 12 : index
    %92 = memref.load %arg2[%c12_12] : memref<40xf32, #tpu.memory_space<smem>>
    %c13_13 = arith.constant 13 : index
    %93 = memref.load %arg2[%c13_13] : memref<40xf32, #tpu.memory_space<smem>>
    %c14_14 = arith.constant 14 : index
    %94 = memref.load %arg2[%c14_14] : memref<40xf32, #tpu.memory_space<smem>>
    %c15_15 = arith.constant 15 : index
    %95 = memref.load %arg2[%c15_15] : memref<40xf32, #tpu.memory_space<smem>>
    %c16_16 = arith.constant 16 : index
    %96 = memref.load %arg2[%c16_16] : memref<40xf32, #tpu.memory_space<smem>>
    %c17_17 = arith.constant 17 : index
    %97 = memref.load %arg2[%c17_17] : memref<40xf32, #tpu.memory_space<smem>>
    %c18_18 = arith.constant 18 : index
    %98 = memref.load %arg2[%c18_18] : memref<40xf32, #tpu.memory_space<smem>>
    %c19_19 = arith.constant 19 : index
    %99 = memref.load %arg2[%c19_19] : memref<40xf32, #tpu.memory_space<smem>>
    %c20_20 = arith.constant 20 : index
    %100 = memref.load %arg2[%c20_20] : memref<40xf32, #tpu.memory_space<smem>>
    %c21_21 = arith.constant 21 : index
    %101 = memref.load %arg2[%c21_21] : memref<40xf32, #tpu.memory_space<smem>>
    %c22_22 = arith.constant 22 : index
    %102 = memref.load %arg2[%c22_22] : memref<40xf32, #tpu.memory_space<smem>>
    %c23_23 = arith.constant 23 : index
    %103 = memref.load %arg2[%c23_23] : memref<40xf32, #tpu.memory_space<smem>>
    %c24_24 = arith.constant 24 : index
    %104 = memref.load %arg2[%c24_24] : memref<40xf32, #tpu.memory_space<smem>>
    %c25_25 = arith.constant 25 : index
    %105 = memref.load %arg2[%c25_25] : memref<40xf32, #tpu.memory_space<smem>>
    %c26_26 = arith.constant 26 : index
    %106 = memref.load %arg2[%c26_26] : memref<40xf32, #tpu.memory_space<smem>>
    %c27_27 = arith.constant 27 : index
    %107 = memref.load %arg2[%c27_27] : memref<40xf32, #tpu.memory_space<smem>>
    %c28_28 = arith.constant 28 : index
    %108 = memref.load %arg2[%c28_28] : memref<40xf32, #tpu.memory_space<smem>>
    %c29_29 = arith.constant 29 : index
    %109 = memref.load %arg2[%c29_29] : memref<40xf32, #tpu.memory_space<smem>>
    %c30_30 = arith.constant 30 : index
    %110 = memref.load %arg2[%c30_30] : memref<40xf32, #tpu.memory_space<smem>>
    %c31_31 = arith.constant 31 : index
    %111 = memref.load %arg2[%c31_31] : memref<40xf32, #tpu.memory_space<smem>>
    %c32_32 = arith.constant 32 : index
    %112 = memref.load %arg2[%c32_32] : memref<40xf32, #tpu.memory_space<smem>>
    %c33_33 = arith.constant 33 : index
    %113 = memref.load %arg2[%c33_33] : memref<40xf32, #tpu.memory_space<smem>>
    %c34_34 = arith.constant 34 : index
    %114 = memref.load %arg2[%c34_34] : memref<40xf32, #tpu.memory_space<smem>>
    %c35_35 = arith.constant 35 : index
    %115 = memref.load %arg2[%c35_35] : memref<40xf32, #tpu.memory_space<smem>>
    %c36_36 = arith.constant 36 : index
    %116 = memref.load %arg2[%c36_36] : memref<40xf32, #tpu.memory_space<smem>>
    %c37_37 = arith.constant 37 : index
    %117 = memref.load %arg2[%c37_37] : memref<40xf32, #tpu.memory_space<smem>>
    %c38_38 = arith.constant 38 : index
    %118 = memref.load %arg2[%c38_38] : memref<40xf32, #tpu.memory_space<smem>>
    %c39_39 = arith.constant 39 : index
    %119 = memref.load %arg2[%c39_39] : memref<40xf32, #tpu.memory_space<smem>>
    %c0_40 = arith.constant 0 : index
    %120 = memref.load %arg3[%c0_40] : memref<80xf32, #tpu.memory_space<smem>>
    %c1_41 = arith.constant 1 : index
    %121 = memref.load %arg3[%c1_41] : memref<80xf32, #tpu.memory_space<smem>>
    %c2_42 = arith.constant 2 : index
    %122 = memref.load %arg3[%c2_42] : memref<80xf32, #tpu.memory_space<smem>>
    %c3_43 = arith.constant 3 : index
    %123 = memref.load %arg3[%c3_43] : memref<80xf32, #tpu.memory_space<smem>>
    %c4_44 = arith.constant 4 : index
    %124 = memref.load %arg3[%c4_44] : memref<80xf32, #tpu.memory_space<smem>>
    %c5_45 = arith.constant 5 : index
    %125 = memref.load %arg3[%c5_45] : memref<80xf32, #tpu.memory_space<smem>>
    %c6_46 = arith.constant 6 : index
    %126 = memref.load %arg3[%c6_46] : memref<80xf32, #tpu.memory_space<smem>>
    %c7_47 = arith.constant 7 : index
    %127 = memref.load %arg3[%c7_47] : memref<80xf32, #tpu.memory_space<smem>>
    %c8_48 = arith.constant 8 : index
    %128 = memref.load %arg3[%c8_48] : memref<80xf32, #tpu.memory_space<smem>>
    %c9_49 = arith.constant 9 : index
    %129 = memref.load %arg3[%c9_49] : memref<80xf32, #tpu.memory_space<smem>>
    %c10_50 = arith.constant 10 : index
    %130 = memref.load %arg3[%c10_50] : memref<80xf32, #tpu.memory_space<smem>>
    %c11_51 = arith.constant 11 : index
    %131 = memref.load %arg3[%c11_51] : memref<80xf32, #tpu.memory_space<smem>>
    %c12_52 = arith.constant 12 : index
    %132 = memref.load %arg3[%c12_52] : memref<80xf32, #tpu.memory_space<smem>>
    %c13_53 = arith.constant 13 : index
    %133 = memref.load %arg3[%c13_53] : memref<80xf32, #tpu.memory_space<smem>>
    %c14_54 = arith.constant 14 : index
    %134 = memref.load %arg3[%c14_54] : memref<80xf32, #tpu.memory_space<smem>>
    %c15_55 = arith.constant 15 : index
    %135 = memref.load %arg3[%c15_55] : memref<80xf32, #tpu.memory_space<smem>>
    %c16_56 = arith.constant 16 : index
    %136 = memref.load %arg3[%c16_56] : memref<80xf32, #tpu.memory_space<smem>>
    %c17_57 = arith.constant 17 : index
    %137 = memref.load %arg3[%c17_57] : memref<80xf32, #tpu.memory_space<smem>>
    %c18_58 = arith.constant 18 : index
    %138 = memref.load %arg3[%c18_58] : memref<80xf32, #tpu.memory_space<smem>>
    %c19_59 = arith.constant 19 : index
    %139 = memref.load %arg3[%c19_59] : memref<80xf32, #tpu.memory_space<smem>>
    %c20_60 = arith.constant 20 : index
    %140 = memref.load %arg3[%c20_60] : memref<80xf32, #tpu.memory_space<smem>>
    %c21_61 = arith.constant 21 : index
    %141 = memref.load %arg3[%c21_61] : memref<80xf32, #tpu.memory_space<smem>>
    %c22_62 = arith.constant 22 : index
    %142 = memref.load %arg3[%c22_62] : memref<80xf32, #tpu.memory_space<smem>>
    %c23_63 = arith.constant 23 : index
    %143 = memref.load %arg3[%c23_63] : memref<80xf32, #tpu.memory_space<smem>>
    %c24_64 = arith.constant 24 : index
    %144 = memref.load %arg3[%c24_64] : memref<80xf32, #tpu.memory_space<smem>>
    %c25_65 = arith.constant 25 : index
    %145 = memref.load %arg3[%c25_65] : memref<80xf32, #tpu.memory_space<smem>>
    %c26_66 = arith.constant 26 : index
    %146 = memref.load %arg3[%c26_66] : memref<80xf32, #tpu.memory_space<smem>>
    %c27_67 = arith.constant 27 : index
    %147 = memref.load %arg3[%c27_67] : memref<80xf32, #tpu.memory_space<smem>>
    %c28_68 = arith.constant 28 : index
    %148 = memref.load %arg3[%c28_68] : memref<80xf32, #tpu.memory_space<smem>>
    %c29_69 = arith.constant 29 : index
    %149 = memref.load %arg3[%c29_69] : memref<80xf32, #tpu.memory_space<smem>>
    %c30_70 = arith.constant 30 : index
    %150 = memref.load %arg3[%c30_70] : memref<80xf32, #tpu.memory_space<smem>>
    %c31_71 = arith.constant 31 : index
    %151 = memref.load %arg3[%c31_71] : memref<80xf32, #tpu.memory_space<smem>>
    %c32_72 = arith.constant 32 : index
    %152 = memref.load %arg3[%c32_72] : memref<80xf32, #tpu.memory_space<smem>>
    %c33_73 = arith.constant 33 : index
    %153 = memref.load %arg3[%c33_73] : memref<80xf32, #tpu.memory_space<smem>>
    %c34_74 = arith.constant 34 : index
    %154 = memref.load %arg3[%c34_74] : memref<80xf32, #tpu.memory_space<smem>>
    %c35_75 = arith.constant 35 : index
    %155 = memref.load %arg3[%c35_75] : memref<80xf32, #tpu.memory_space<smem>>
    %c36_76 = arith.constant 36 : index
    %156 = memref.load %arg3[%c36_76] : memref<80xf32, #tpu.memory_space<smem>>
    %c37_77 = arith.constant 37 : index
    %157 = memref.load %arg3[%c37_77] : memref<80xf32, #tpu.memory_space<smem>>
    %c38_78 = arith.constant 38 : index
    %158 = memref.load %arg3[%c38_78] : memref<80xf32, #tpu.memory_space<smem>>
    %c39_79 = arith.constant 39 : index
    %159 = memref.load %arg3[%c39_79] : memref<80xf32, #tpu.memory_space<smem>>
    %c40_80 = arith.constant 40 : index
    %160 = memref.load %arg3[%c40_80] : memref<80xf32, #tpu.memory_space<smem>>
    %c41_81 = arith.constant 41 : index
    %161 = memref.load %arg3[%c41_81] : memref<80xf32, #tpu.memory_space<smem>>
    %c42_82 = arith.constant 42 : index
    %162 = memref.load %arg3[%c42_82] : memref<80xf32, #tpu.memory_space<smem>>
    %c43_83 = arith.constant 43 : index
    %163 = memref.load %arg3[%c43_83] : memref<80xf32, #tpu.memory_space<smem>>
    %c44_84 = arith.constant 44 : index
    %164 = memref.load %arg3[%c44_84] : memref<80xf32, #tpu.memory_space<smem>>
    %c45_85 = arith.constant 45 : index
    %165 = memref.load %arg3[%c45_85] : memref<80xf32, #tpu.memory_space<smem>>
    %c46_86 = arith.constant 46 : index
    %166 = memref.load %arg3[%c46_86] : memref<80xf32, #tpu.memory_space<smem>>
    %c47_87 = arith.constant 47 : index
    %167 = memref.load %arg3[%c47_87] : memref<80xf32, #tpu.memory_space<smem>>
    %c48_88 = arith.constant 48 : index
    %168 = memref.load %arg3[%c48_88] : memref<80xf32, #tpu.memory_space<smem>>
    %c49_89 = arith.constant 49 : index
    %169 = memref.load %arg3[%c49_89] : memref<80xf32, #tpu.memory_space<smem>>
    %c50_90 = arith.constant 50 : index
    %170 = memref.load %arg3[%c50_90] : memref<80xf32, #tpu.memory_space<smem>>
    %c51_91 = arith.constant 51 : index
    %171 = memref.load %arg3[%c51_91] : memref<80xf32, #tpu.memory_space<smem>>
    %c52_92 = arith.constant 52 : index
    %172 = memref.load %arg3[%c52_92] : memref<80xf32, #tpu.memory_space<smem>>
    %c53_93 = arith.constant 53 : index
    %173 = memref.load %arg3[%c53_93] : memref<80xf32, #tpu.memory_space<smem>>
    %c54_94 = arith.constant 54 : index
    %174 = memref.load %arg3[%c54_94] : memref<80xf32, #tpu.memory_space<smem>>
    %c55_95 = arith.constant 55 : index
    %175 = memref.load %arg3[%c55_95] : memref<80xf32, #tpu.memory_space<smem>>
    %c56_96 = arith.constant 56 : index
    %176 = memref.load %arg3[%c56_96] : memref<80xf32, #tpu.memory_space<smem>>
    %c57_97 = arith.constant 57 : index
    %177 = memref.load %arg3[%c57_97] : memref<80xf32, #tpu.memory_space<smem>>
    %c58_98 = arith.constant 58 : index
    %178 = memref.load %arg3[%c58_98] : memref<80xf32, #tpu.memory_space<smem>>
    %c59_99 = arith.constant 59 : index
    %179 = memref.load %arg3[%c59_99] : memref<80xf32, #tpu.memory_space<smem>>
    %c60_100 = arith.constant 60 : index
    %180 = memref.load %arg3[%c60_100] : memref<80xf32, #tpu.memory_space<smem>>
    %c61_101 = arith.constant 61 : index
    %181 = memref.load %arg3[%c61_101] : memref<80xf32, #tpu.memory_space<smem>>
    %c62_102 = arith.constant 62 : index
    %182 = memref.load %arg3[%c62_102] : memref<80xf32, #tpu.memory_space<smem>>
    %c63_103 = arith.constant 63 : index
    %183 = memref.load %arg3[%c63_103] : memref<80xf32, #tpu.memory_space<smem>>
    %c64_104 = arith.constant 64 : index
    %184 = memref.load %arg3[%c64_104] : memref<80xf32, #tpu.memory_space<smem>>
    %c65_105 = arith.constant 65 : index
    %185 = memref.load %arg3[%c65_105] : memref<80xf32, #tpu.memory_space<smem>>
    %c66_106 = arith.constant 66 : index
    %186 = memref.load %arg3[%c66_106] : memref<80xf32, #tpu.memory_space<smem>>
    %c67_107 = arith.constant 67 : index
    %187 = memref.load %arg3[%c67_107] : memref<80xf32, #tpu.memory_space<smem>>
    %c68_108 = arith.constant 68 : index
    %188 = memref.load %arg3[%c68_108] : memref<80xf32, #tpu.memory_space<smem>>
    %c69_109 = arith.constant 69 : index
    %189 = memref.load %arg3[%c69_109] : memref<80xf32, #tpu.memory_space<smem>>
    %c70_110 = arith.constant 70 : index
    %190 = memref.load %arg3[%c70_110] : memref<80xf32, #tpu.memory_space<smem>>
    %c71_111 = arith.constant 71 : index
    %191 = memref.load %arg3[%c71_111] : memref<80xf32, #tpu.memory_space<smem>>
    %c72_112 = arith.constant 72 : index
    %192 = memref.load %arg3[%c72_112] : memref<80xf32, #tpu.memory_space<smem>>
    %c73_113 = arith.constant 73 : index
    %193 = memref.load %arg3[%c73_113] : memref<80xf32, #tpu.memory_space<smem>>
    %c74_114 = arith.constant 74 : index
    %194 = memref.load %arg3[%c74_114] : memref<80xf32, #tpu.memory_space<smem>>
    %c75_115 = arith.constant 75 : index
    %195 = memref.load %arg3[%c75_115] : memref<80xf32, #tpu.memory_space<smem>>
    %c76_116 = arith.constant 76 : index
    %196 = memref.load %arg3[%c76_116] : memref<80xf32, #tpu.memory_space<smem>>
    %c77_117 = arith.constant 77 : index
    %197 = memref.load %arg3[%c77_117] : memref<80xf32, #tpu.memory_space<smem>>
    %c78_118 = arith.constant 78 : index
    %198 = memref.load %arg3[%c78_118] : memref<80xf32, #tpu.memory_space<smem>>
    %c79_119 = arith.constant 79 : index
    %199 = memref.load %arg3[%c79_119] : memref<80xf32, #tpu.memory_space<smem>>
    %c0_120 = arith.constant 0 : index
    %200 = memref.load %arg4[%c0_120] : memref<10xf32, #tpu.memory_space<smem>>
    %c1_121 = arith.constant 1 : index
    %201 = memref.load %arg4[%c1_121] : memref<10xf32, #tpu.memory_space<smem>>
    %c2_122 = arith.constant 2 : index
    %202 = memref.load %arg4[%c2_122] : memref<10xf32, #tpu.memory_space<smem>>
    %c3_123 = arith.constant 3 : index
    %203 = memref.load %arg4[%c3_123] : memref<10xf32, #tpu.memory_space<smem>>
    %c4_124 = arith.constant 4 : index
    %204 = memref.load %arg4[%c4_124] : memref<10xf32, #tpu.memory_space<smem>>
    %c5_125 = arith.constant 5 : index
    %205 = memref.load %arg4[%c5_125] : memref<10xf32, #tpu.memory_space<smem>>
    %c6_126 = arith.constant 6 : index
    %206 = memref.load %arg4[%c6_126] : memref<10xf32, #tpu.memory_space<smem>>
    %c7_127 = arith.constant 7 : index
    %207 = memref.load %arg4[%c7_127] : memref<10xf32, #tpu.memory_space<smem>>
    %c8_128 = arith.constant 8 : index
    %208 = memref.load %arg4[%c8_128] : memref<10xf32, #tpu.memory_space<smem>>
    %c9_129 = arith.constant 9 : index
    %209 = memref.load %arg4[%c9_129] : memref<10xf32, #tpu.memory_space<smem>>
    %c0_i32 = arith.constant 0 : i32
    %c2_i32 = arith.constant 2 : i32
    %210 = arith.addi %c0_i32, %c2_i32 : i32
    %c1_i32 = arith.constant 1 : i32
    scf.for %arg7 = %c0_i32 to %210 step %c1_i32  : i32 {
      %c1_i32_131 = arith.constant 1 : i32
      %211 = arith.muli %arg7, %c1_i32_131 : i32
      %c0_i32_132 = arith.constant 0 : i32
      %212 = arith.addi %c0_i32_132, %211 : i32
      %c8_i32 = arith.constant 8 : i32
      %213 = arith.muli %212, %c8_i32 : i32
      %214 = tpu.assume_multiple %213, 8 : i32
      %c0_133 = arith.constant 0 : index
      %215 = arith.index_cast %214 : i32 to index
      %c0_134 = arith.constant 0 : index
      %216 = vector.load %arg5[%c0_133, %215, %c0_134] : memref<2x16x128xf32, #tpu.memory_space<vmem>>, vector<1x8x128xf32>
      %217 = vector.shape_cast %216 : vector<1x8x128xf32> to vector<8x128xf32>
      %c1_135 = arith.constant 1 : index
      %218 = arith.index_cast %214 : i32 to index
      %c0_136 = arith.constant 0 : index
      %219 = vector.load %arg5[%c1_135, %218, %c0_136] : memref<2x16x128xf32, #tpu.memory_space<vmem>>, vector<1x8x128xf32>
      %220 = vector.shape_cast %219 : vector<1x8x128xf32> to vector<8x128xf32>
      %221 = vector.broadcast %0 : f32 to vector<8x128xf32>
      %222 = arith.mulf %217, %221 : vector<8x128xf32>
      %223 = vector.broadcast %8 : f32 to vector<8x128xf32>
      %224 = arith.mulf %220, %223 : vector<8x128xf32>
      %225 = arith.addf %222, %224 : vector<8x128xf32>
      %226 = vector.broadcast %80 : f32 to vector<8x128xf32>
      %227 = arith.addf %225, %226 : vector<8x128xf32>
      %cst = arith.constant 0.000000e+00 : f32
      %228 = vector.broadcast %cst : f32 to vector<8x128xf32>
      %229 = arith.maximumf %227, %228 : vector<8x128xf32>
      %230 = vector.broadcast %1 : f32 to vector<8x128xf32>
      %231 = arith.mulf %217, %230 : vector<8x128xf32>
      %232 = vector.broadcast %9 : f32 to vector<8x128xf32>
      %233 = arith.mulf %220, %232 : vector<8x128xf32>
      %234 = arith.addf %231, %233 : vector<8x128xf32>
      %235 = vector.broadcast %81 : f32 to vector<8x128xf32>
      %236 = arith.addf %234, %235 : vector<8x128xf32>
      %cst_137 = arith.constant 0.000000e+00 : f32
      %237 = vector.broadcast %cst_137 : f32 to vector<8x128xf32>
      %238 = arith.maximumf %236, %237 : vector<8x128xf32>
      %239 = vector.broadcast %2 : f32 to vector<8x128xf32>
      %240 = arith.mulf %217, %239 : vector<8x128xf32>
      %241 = vector.broadcast %10 : f32 to vector<8x128xf32>
      %242 = arith.mulf %220, %241 : vector<8x128xf32>
      %243 = arith.addf %240, %242 : vector<8x128xf32>
      %244 = vector.broadcast %82 : f32 to vector<8x128xf32>
      %245 = arith.addf %243, %244 : vector<8x128xf32>
      %cst_138 = arith.constant 0.000000e+00 : f32
      %246 = vector.broadcast %cst_138 : f32 to vector<8x128xf32>
      %247 = arith.maximumf %245, %246 : vector<8x128xf32>
      %248 = vector.broadcast %3 : f32 to vector<8x128xf32>
      %249 = arith.mulf %217, %248 : vector<8x128xf32>
      %250 = vector.broadcast %11 : f32 to vector<8x128xf32>
      %251 = arith.mulf %220, %250 : vector<8x128xf32>
      %252 = arith.addf %249, %251 : vector<8x128xf32>
      %253 = vector.broadcast %83 : f32 to vector<8x128xf32>
      %254 = arith.addf %252, %253 : vector<8x128xf32>
      %cst_139 = arith.constant 0.000000e+00 : f32
      %255 = vector.broadcast %cst_139 : f32 to vector<8x128xf32>
      %256 = arith.maximumf %254, %255 : vector<8x128xf32>
      %257 = vector.broadcast %4 : f32 to vector<8x128xf32>
      %258 = arith.mulf %217, %257 : vector<8x128xf32>
      %259 = vector.broadcast %12 : f32 to vector<8x128xf32>
      %260 = arith.mulf %220, %259 : vector<8x128xf32>
      %261 = arith.addf %258, %260 : vector<8x128xf32>
      %262 = vector.broadcast %84 : f32 to vector<8x128xf32>
      %263 = arith.addf %261, %262 : vector<8x128xf32>
      %cst_140 = arith.constant 0.000000e+00 : f32
      %264 = vector.broadcast %cst_140 : f32 to vector<8x128xf32>
      %265 = arith.maximumf %263, %264 : vector<8x128xf32>
      %266 = vector.broadcast %5 : f32 to vector<8x128xf32>
      %267 = arith.mulf %217, %266 : vector<8x128xf32>
      %268 = vector.broadcast %13 : f32 to vector<8x128xf32>
      %269 = arith.mulf %220, %268 : vector<8x128xf32>
      %270 = arith.addf %267, %269 : vector<8x128xf32>
      %271 = vector.broadcast %85 : f32 to vector<8x128xf32>
      %272 = arith.addf %270, %271 : vector<8x128xf32>
      %cst_141 = arith.constant 0.000000e+00 : f32
      %273 = vector.broadcast %cst_141 : f32 to vector<8x128xf32>
      %274 = arith.maximumf %272, %273 : vector<8x128xf32>
      %275 = vector.broadcast %6 : f32 to vector<8x128xf32>
      %276 = arith.mulf %217, %275 : vector<8x128xf32>
      %277 = vector.broadcast %14 : f32 to vector<8x128xf32>
      %278 = arith.mulf %220, %277 : vector<8x128xf32>
      %279 = arith.addf %276, %278 : vector<8x128xf32>
      %280 = vector.broadcast %86 : f32 to vector<8x128xf32>
      %281 = arith.addf %279, %280 : vector<8x128xf32>
      %cst_142 = arith.constant 0.000000e+00 : f32
      %282 = vector.broadcast %cst_142 : f32 to vector<8x128xf32>
      %283 = arith.maximumf %281, %282 : vector<8x128xf32>
      %284 = vector.broadcast %7 : f32 to vector<8x128xf32>
      %285 = arith.mulf %217, %284 : vector<8x128xf32>
      %286 = vector.broadcast %15 : f32 to vector<8x128xf32>
      %287 = arith.mulf %220, %286 : vector<8x128xf32>
      %288 = arith.addf %285, %287 : vector<8x128xf32>
      %289 = vector.broadcast %87 : f32 to vector<8x128xf32>
      %290 = arith.addf %288, %289 : vector<8x128xf32>
      %cst_143 = arith.constant 0.000000e+00 : f32
      %291 = vector.broadcast %cst_143 : f32 to vector<8x128xf32>
      %292 = arith.maximumf %290, %291 : vector<8x128xf32>
      %293 = vector.broadcast %120 : f32 to vector<8x128xf32>
      %294 = arith.mulf %229, %293 : vector<8x128xf32>
      %295 = vector.broadcast %122 : f32 to vector<8x128xf32>
      %296 = arith.mulf %238, %295 : vector<8x128xf32>
      %297 = arith.addf %294, %296 : vector<8x128xf32>
      %298 = vector.broadcast %124 : f32 to vector<8x128xf32>
      %299 = arith.mulf %247, %298 : vector<8x128xf32>
      %300 = arith.addf %297, %299 : vector<8x128xf32>
      %301 = vector.broadcast %126 : f32 to vector<8x128xf32>
      %302 = arith.mulf %256, %301 : vector<8x128xf32>
      %303 = arith.addf %300, %302 : vector<8x128xf32>
      %304 = vector.broadcast %128 : f32 to vector<8x128xf32>
      %305 = arith.mulf %265, %304 : vector<8x128xf32>
      %306 = arith.addf %303, %305 : vector<8x128xf32>
      %307 = vector.broadcast %130 : f32 to vector<8x128xf32>
      %308 = arith.mulf %274, %307 : vector<8x128xf32>
      %309 = arith.addf %306, %308 : vector<8x128xf32>
      %310 = vector.broadcast %132 : f32 to vector<8x128xf32>
      %311 = arith.mulf %283, %310 : vector<8x128xf32>
      %312 = arith.addf %309, %311 : vector<8x128xf32>
      %313 = vector.broadcast %134 : f32 to vector<8x128xf32>
      %314 = arith.mulf %292, %313 : vector<8x128xf32>
      %315 = arith.addf %312, %314 : vector<8x128xf32>
      %316 = vector.broadcast %200 : f32 to vector<8x128xf32>
      %317 = arith.addf %315, %316 : vector<8x128xf32>
      %cst_144 = arith.constant 5.000000e-01 : f32
      %318 = vector.broadcast %cst_144 : f32 to vector<8x128xf32>
      %319 = arith.mulf %318, %317 : vector<8x128xf32>
      %320 = math.tanh %319 : vector<8x128xf32>
      %cst_145 = arith.constant 5.000000e-01 : f32
      %321 = vector.broadcast %cst_145 : f32 to vector<8x128xf32>
      %322 = arith.mulf %321, %320 : vector<8x128xf32>
      %cst_146 = arith.constant 5.000000e-01 : f32
      %323 = vector.broadcast %cst_146 : f32 to vector<8x128xf32>
      %324 = arith.addf %322, %323 : vector<8x128xf32>
      %325 = arith.mulf %324, %217 : vector<8x128xf32>
      %326 = vector.broadcast %121 : f32 to vector<8x128xf32>
      %327 = arith.mulf %229, %326 : vector<8x128xf32>
      %328 = vector.broadcast %123 : f32 to vector<8x128xf32>
      %329 = arith.mulf %238, %328 : vector<8x128xf32>
      %330 = arith.addf %327, %329 : vector<8x128xf32>
      %331 = vector.broadcast %125 : f32 to vector<8x128xf32>
      %332 = arith.mulf %247, %331 : vector<8x128xf32>
      %333 = arith.addf %330, %332 : vector<8x128xf32>
      %334 = vector.broadcast %127 : f32 to vector<8x128xf32>
      %335 = arith.mulf %256, %334 : vector<8x128xf32>
      %336 = arith.addf %333, %335 : vector<8x128xf32>
      %337 = vector.broadcast %129 : f32 to vector<8x128xf32>
      %338 = arith.mulf %265, %337 : vector<8x128xf32>
      %339 = arith.addf %336, %338 : vector<8x128xf32>
      %340 = vector.broadcast %131 : f32 to vector<8x128xf32>
      %341 = arith.mulf %274, %340 : vector<8x128xf32>
      %342 = arith.addf %339, %341 : vector<8x128xf32>
      %343 = vector.broadcast %133 : f32 to vector<8x128xf32>
      %344 = arith.mulf %283, %343 : vector<8x128xf32>
      %345 = arith.addf %342, %344 : vector<8x128xf32>
      %346 = vector.broadcast %135 : f32 to vector<8x128xf32>
      %347 = arith.mulf %292, %346 : vector<8x128xf32>
      %348 = arith.addf %345, %347 : vector<8x128xf32>
      %349 = vector.broadcast %201 : f32 to vector<8x128xf32>
      %350 = arith.addf %348, %349 : vector<8x128xf32>
      %cst_147 = arith.constant 5.000000e-01 : f32
      %351 = vector.broadcast %cst_147 : f32 to vector<8x128xf32>
      %352 = arith.mulf %351, %350 : vector<8x128xf32>
      %353 = math.tanh %352 : vector<8x128xf32>
      %cst_148 = arith.constant 5.000000e-01 : f32
      %354 = vector.broadcast %cst_148 : f32 to vector<8x128xf32>
      %355 = arith.mulf %354, %353 : vector<8x128xf32>
      %cst_149 = arith.constant 5.000000e-01 : f32
      %356 = vector.broadcast %cst_149 : f32 to vector<8x128xf32>
      %357 = arith.addf %355, %356 : vector<8x128xf32>
      %358 = arith.mulf %357, %220 : vector<8x128xf32>
      %359 = vector.broadcast %16 : f32 to vector<8x128xf32>
      %360 = arith.mulf %217, %359 : vector<8x128xf32>
      %361 = vector.broadcast %24 : f32 to vector<8x128xf32>
      %362 = arith.mulf %220, %361 : vector<8x128xf32>
      %363 = arith.addf %360, %362 : vector<8x128xf32>
      %364 = vector.broadcast %88 : f32 to vector<8x128xf32>
      %365 = arith.addf %363, %364 : vector<8x128xf32>
      %cst_150 = arith.constant 0.000000e+00 : f32
      %366 = vector.broadcast %cst_150 : f32 to vector<8x128xf32>
      %367 = arith.maximumf %365, %366 : vector<8x128xf32>
      %368 = vector.broadcast %17 : f32 to vector<8x128xf32>
      %369 = arith.mulf %217, %368 : vector<8x128xf32>
      %370 = vector.broadcast %25 : f32 to vector<8x128xf32>
      %371 = arith.mulf %220, %370 : vector<8x128xf32>
      %372 = arith.addf %369, %371 : vector<8x128xf32>
      %373 = vector.broadcast %89 : f32 to vector<8x128xf32>
      %374 = arith.addf %372, %373 : vector<8x128xf32>
      %cst_151 = arith.constant 0.000000e+00 : f32
      %375 = vector.broadcast %cst_151 : f32 to vector<8x128xf32>
      %376 = arith.maximumf %374, %375 : vector<8x128xf32>
      %377 = vector.broadcast %18 : f32 to vector<8x128xf32>
      %378 = arith.mulf %217, %377 : vector<8x128xf32>
      %379 = vector.broadcast %26 : f32 to vector<8x128xf32>
      %380 = arith.mulf %220, %379 : vector<8x128xf32>
      %381 = arith.addf %378, %380 : vector<8x128xf32>
      %382 = vector.broadcast %90 : f32 to vector<8x128xf32>
      %383 = arith.addf %381, %382 : vector<8x128xf32>
      %cst_152 = arith.constant 0.000000e+00 : f32
      %384 = vector.broadcast %cst_152 : f32 to vector<8x128xf32>
      %385 = arith.maximumf %383, %384 : vector<8x128xf32>
      %386 = vector.broadcast %19 : f32 to vector<8x128xf32>
      %387 = arith.mulf %217, %386 : vector<8x128xf32>
      %388 = vector.broadcast %27 : f32 to vector<8x128xf32>
      %389 = arith.mulf %220, %388 : vector<8x128xf32>
      %390 = arith.addf %387, %389 : vector<8x128xf32>
      %391 = vector.broadcast %91 : f32 to vector<8x128xf32>
      %392 = arith.addf %390, %391 : vector<8x128xf32>
      %cst_153 = arith.constant 0.000000e+00 : f32
      %393 = vector.broadcast %cst_153 : f32 to vector<8x128xf32>
      %394 = arith.maximumf %392, %393 : vector<8x128xf32>
      %395 = vector.broadcast %20 : f32 to vector<8x128xf32>
      %396 = arith.mulf %217, %395 : vector<8x128xf32>
      %397 = vector.broadcast %28 : f32 to vector<8x128xf32>
      %398 = arith.mulf %220, %397 : vector<8x128xf32>
      %399 = arith.addf %396, %398 : vector<8x128xf32>
      %400 = vector.broadcast %92 : f32 to vector<8x128xf32>
      %401 = arith.addf %399, %400 : vector<8x128xf32>
      %cst_154 = arith.constant 0.000000e+00 : f32
      %402 = vector.broadcast %cst_154 : f32 to vector<8x128xf32>
      %403 = arith.maximumf %401, %402 : vector<8x128xf32>
      %404 = vector.broadcast %21 : f32 to vector<8x128xf32>
      %405 = arith.mulf %217, %404 : vector<8x128xf32>
      %406 = vector.broadcast %29 : f32 to vector<8x128xf32>
      %407 = arith.mulf %220, %406 : vector<8x128xf32>
      %408 = arith.addf %405, %407 : vector<8x128xf32>
      %409 = vector.broadcast %93 : f32 to vector<8x128xf32>
      %410 = arith.addf %408, %409 : vector<8x128xf32>
      %cst_155 = arith.constant 0.000000e+00 : f32
      %411 = vector.broadcast %cst_155 : f32 to vector<8x128xf32>
      %412 = arith.maximumf %410, %411 : vector<8x128xf32>
      %413 = vector.broadcast %22 : f32 to vector<8x128xf32>
      %414 = arith.mulf %217, %413 : vector<8x128xf32>
      %415 = vector.broadcast %30 : f32 to vector<8x128xf32>
      %416 = arith.mulf %220, %415 : vector<8x128xf32>
      %417 = arith.addf %414, %416 : vector<8x128xf32>
      %418 = vector.broadcast %94 : f32 to vector<8x128xf32>
      %419 = arith.addf %417, %418 : vector<8x128xf32>
      %cst_156 = arith.constant 0.000000e+00 : f32
      %420 = vector.broadcast %cst_156 : f32 to vector<8x128xf32>
      %421 = arith.maximumf %419, %420 : vector<8x128xf32>
      %422 = vector.broadcast %23 : f32 to vector<8x128xf32>
      %423 = arith.mulf %217, %422 : vector<8x128xf32>
      %424 = vector.broadcast %31 : f32 to vector<8x128xf32>
      %425 = arith.mulf %220, %424 : vector<8x128xf32>
      %426 = arith.addf %423, %425 : vector<8x128xf32>
      %427 = vector.broadcast %95 : f32 to vector<8x128xf32>
      %428 = arith.addf %426, %427 : vector<8x128xf32>
      %cst_157 = arith.constant 0.000000e+00 : f32
      %429 = vector.broadcast %cst_157 : f32 to vector<8x128xf32>
      %430 = arith.maximumf %428, %429 : vector<8x128xf32>
      %431 = vector.broadcast %136 : f32 to vector<8x128xf32>
      %432 = arith.mulf %367, %431 : vector<8x128xf32>
      %433 = vector.broadcast %138 : f32 to vector<8x128xf32>
      %434 = arith.mulf %376, %433 : vector<8x128xf32>
      %435 = arith.addf %432, %434 : vector<8x128xf32>
      %436 = vector.broadcast %140 : f32 to vector<8x128xf32>
      %437 = arith.mulf %385, %436 : vector<8x128xf32>
      %438 = arith.addf %435, %437 : vector<8x128xf32>
      %439 = vector.broadcast %142 : f32 to vector<8x128xf32>
      %440 = arith.mulf %394, %439 : vector<8x128xf32>
      %441 = arith.addf %438, %440 : vector<8x128xf32>
      %442 = vector.broadcast %144 : f32 to vector<8x128xf32>
      %443 = arith.mulf %403, %442 : vector<8x128xf32>
      %444 = arith.addf %441, %443 : vector<8x128xf32>
      %445 = vector.broadcast %146 : f32 to vector<8x128xf32>
      %446 = arith.mulf %412, %445 : vector<8x128xf32>
      %447 = arith.addf %444, %446 : vector<8x128xf32>
      %448 = vector.broadcast %148 : f32 to vector<8x128xf32>
      %449 = arith.mulf %421, %448 : vector<8x128xf32>
      %450 = arith.addf %447, %449 : vector<8x128xf32>
      %451 = vector.broadcast %150 : f32 to vector<8x128xf32>
      %452 = arith.mulf %430, %451 : vector<8x128xf32>
      %453 = arith.addf %450, %452 : vector<8x128xf32>
      %454 = vector.broadcast %202 : f32 to vector<8x128xf32>
      %455 = arith.addf %453, %454 : vector<8x128xf32>
      %cst_158 = arith.constant 5.000000e-01 : f32
      %456 = vector.broadcast %cst_158 : f32 to vector<8x128xf32>
      %457 = arith.mulf %456, %455 : vector<8x128xf32>
      %458 = math.tanh %457 : vector<8x128xf32>
      %cst_159 = arith.constant 5.000000e-01 : f32
      %459 = vector.broadcast %cst_159 : f32 to vector<8x128xf32>
      %460 = arith.mulf %459, %458 : vector<8x128xf32>
      %cst_160 = arith.constant 5.000000e-01 : f32
      %461 = vector.broadcast %cst_160 : f32 to vector<8x128xf32>
      %462 = arith.addf %460, %461 : vector<8x128xf32>
      %463 = arith.mulf %462, %217 : vector<8x128xf32>
      %464 = vector.broadcast %137 : f32 to vector<8x128xf32>
      %465 = arith.mulf %367, %464 : vector<8x128xf32>
      %466 = vector.broadcast %139 : f32 to vector<8x128xf32>
      %467 = arith.mulf %376, %466 : vector<8x128xf32>
      %468 = arith.addf %465, %467 : vector<8x128xf32>
      %469 = vector.broadcast %141 : f32 to vector<8x128xf32>
      %470 = arith.mulf %385, %469 : vector<8x128xf32>
      %471 = arith.addf %468, %470 : vector<8x128xf32>
      %472 = vector.broadcast %143 : f32 to vector<8x128xf32>
      %473 = arith.mulf %394, %472 : vector<8x128xf32>
      %474 = arith.addf %471, %473 : vector<8x128xf32>
      %475 = vector.broadcast %145 : f32 to vector<8x128xf32>
      %476 = arith.mulf %403, %475 : vector<8x128xf32>
      %477 = arith.addf %474, %476 : vector<8x128xf32>
      %478 = vector.broadcast %147 : f32 to vector<8x128xf32>
      %479 = arith.mulf %412, %478 : vector<8x128xf32>
      %480 = arith.addf %477, %479 : vector<8x128xf32>
      %481 = vector.broadcast %149 : f32 to vector<8x128xf32>
      %482 = arith.mulf %421, %481 : vector<8x128xf32>
      %483 = arith.addf %480, %482 : vector<8x128xf32>
      %484 = vector.broadcast %151 : f32 to vector<8x128xf32>
      %485 = arith.mulf %430, %484 : vector<8x128xf32>
      %486 = arith.addf %483, %485 : vector<8x128xf32>
      %487 = vector.broadcast %203 : f32 to vector<8x128xf32>
      %488 = arith.addf %486, %487 : vector<8x128xf32>
      %cst_161 = arith.constant 5.000000e-01 : f32
      %489 = vector.broadcast %cst_161 : f32 to vector<8x128xf32>
      %490 = arith.mulf %489, %488 : vector<8x128xf32>
      %491 = math.tanh %490 : vector<8x128xf32>
      %cst_162 = arith.constant 5.000000e-01 : f32
      %492 = vector.broadcast %cst_162 : f32 to vector<8x128xf32>
      %493 = arith.mulf %492, %491 : vector<8x128xf32>
      %cst_163 = arith.constant 5.000000e-01 : f32
      %494 = vector.broadcast %cst_163 : f32 to vector<8x128xf32>
      %495 = arith.addf %493, %494 : vector<8x128xf32>
      %496 = arith.mulf %495, %220 : vector<8x128xf32>
      %497 = vector.broadcast %32 : f32 to vector<8x128xf32>
      %498 = arith.mulf %217, %497 : vector<8x128xf32>
      %499 = vector.broadcast %40 : f32 to vector<8x128xf32>
      %500 = arith.mulf %220, %499 : vector<8x128xf32>
      %501 = arith.addf %498, %500 : vector<8x128xf32>
      %502 = vector.broadcast %96 : f32 to vector<8x128xf32>
      %503 = arith.addf %501, %502 : vector<8x128xf32>
      %cst_164 = arith.constant 0.000000e+00 : f32
      %504 = vector.broadcast %cst_164 : f32 to vector<8x128xf32>
      %505 = arith.maximumf %503, %504 : vector<8x128xf32>
      %506 = vector.broadcast %33 : f32 to vector<8x128xf32>
      %507 = arith.mulf %217, %506 : vector<8x128xf32>
      %508 = vector.broadcast %41 : f32 to vector<8x128xf32>
      %509 = arith.mulf %220, %508 : vector<8x128xf32>
      %510 = arith.addf %507, %509 : vector<8x128xf32>
      %511 = vector.broadcast %97 : f32 to vector<8x128xf32>
      %512 = arith.addf %510, %511 : vector<8x128xf32>
      %cst_165 = arith.constant 0.000000e+00 : f32
      %513 = vector.broadcast %cst_165 : f32 to vector<8x128xf32>
      %514 = arith.maximumf %512, %513 : vector<8x128xf32>
      %515 = vector.broadcast %34 : f32 to vector<8x128xf32>
      %516 = arith.mulf %217, %515 : vector<8x128xf32>
      %517 = vector.broadcast %42 : f32 to vector<8x128xf32>
      %518 = arith.mulf %220, %517 : vector<8x128xf32>
      %519 = arith.addf %516, %518 : vector<8x128xf32>
      %520 = vector.broadcast %98 : f32 to vector<8x128xf32>
      %521 = arith.addf %519, %520 : vector<8x128xf32>
      %cst_166 = arith.constant 0.000000e+00 : f32
      %522 = vector.broadcast %cst_166 : f32 to vector<8x128xf32>
      %523 = arith.maximumf %521, %522 : vector<8x128xf32>
      %524 = vector.broadcast %35 : f32 to vector<8x128xf32>
      %525 = arith.mulf %217, %524 : vector<8x128xf32>
      %526 = vector.broadcast %43 : f32 to vector<8x128xf32>
      %527 = arith.mulf %220, %526 : vector<8x128xf32>
      %528 = arith.addf %525, %527 : vector<8x128xf32>
      %529 = vector.broadcast %99 : f32 to vector<8x128xf32>
      %530 = arith.addf %528, %529 : vector<8x128xf32>
      %cst_167 = arith.constant 0.000000e+00 : f32
      %531 = vector.broadcast %cst_167 : f32 to vector<8x128xf32>
      %532 = arith.maximumf %530, %531 : vector<8x128xf32>
      %533 = vector.broadcast %36 : f32 to vector<8x128xf32>
      %534 = arith.mulf %217, %533 : vector<8x128xf32>
      %535 = vector.broadcast %44 : f32 to vector<8x128xf32>
      %536 = arith.mulf %220, %535 : vector<8x128xf32>
      %537 = arith.addf %534, %536 : vector<8x128xf32>
      %538 = vector.broadcast %100 : f32 to vector<8x128xf32>
      %539 = arith.addf %537, %538 : vector<8x128xf32>
      %cst_168 = arith.constant 0.000000e+00 : f32
      %540 = vector.broadcast %cst_168 : f32 to vector<8x128xf32>
      %541 = arith.maximumf %539, %540 : vector<8x128xf32>
      %542 = vector.broadcast %37 : f32 to vector<8x128xf32>
      %543 = arith.mulf %217, %542 : vector<8x128xf32>
      %544 = vector.broadcast %45 : f32 to vector<8x128xf32>
      %545 = arith.mulf %220, %544 : vector<8x128xf32>
      %546 = arith.addf %543, %545 : vector<8x128xf32>
      %547 = vector.broadcast %101 : f32 to vector<8x128xf32>
      %548 = arith.addf %546, %547 : vector<8x128xf32>
      %cst_169 = arith.constant 0.000000e+00 : f32
      %549 = vector.broadcast %cst_169 : f32 to vector<8x128xf32>
      %550 = arith.maximumf %548, %549 : vector<8x128xf32>
      %551 = vector.broadcast %38 : f32 to vector<8x128xf32>
      %552 = arith.mulf %217, %551 : vector<8x128xf32>
      %553 = vector.broadcast %46 : f32 to vector<8x128xf32>
      %554 = arith.mulf %220, %553 : vector<8x128xf32>
      %555 = arith.addf %552, %554 : vector<8x128xf32>
      %556 = vector.broadcast %102 : f32 to vector<8x128xf32>
      %557 = arith.addf %555, %556 : vector<8x128xf32>
      %cst_170 = arith.constant 0.000000e+00 : f32
      %558 = vector.broadcast %cst_170 : f32 to vector<8x128xf32>
      %559 = arith.maximumf %557, %558 : vector<8x128xf32>
      %560 = vector.broadcast %39 : f32 to vector<8x128xf32>
      %561 = arith.mulf %217, %560 : vector<8x128xf32>
      %562 = vector.broadcast %47 : f32 to vector<8x128xf32>
      %563 = arith.mulf %220, %562 : vector<8x128xf32>
      %564 = arith.addf %561, %563 : vector<8x128xf32>
      %565 = vector.broadcast %103 : f32 to vector<8x128xf32>
      %566 = arith.addf %564, %565 : vector<8x128xf32>
      %cst_171 = arith.constant 0.000000e+00 : f32
      %567 = vector.broadcast %cst_171 : f32 to vector<8x128xf32>
      %568 = arith.maximumf %566, %567 : vector<8x128xf32>
      %569 = vector.broadcast %152 : f32 to vector<8x128xf32>
      %570 = arith.mulf %505, %569 : vector<8x128xf32>
      %571 = vector.broadcast %154 : f32 to vector<8x128xf32>
      %572 = arith.mulf %514, %571 : vector<8x128xf32>
      %573 = arith.addf %570, %572 : vector<8x128xf32>
      %574 = vector.broadcast %156 : f32 to vector<8x128xf32>
      %575 = arith.mulf %523, %574 : vector<8x128xf32>
      %576 = arith.addf %573, %575 : vector<8x128xf32>
      %577 = vector.broadcast %158 : f32 to vector<8x128xf32>
      %578 = arith.mulf %532, %577 : vector<8x128xf32>
      %579 = arith.addf %576, %578 : vector<8x128xf32>
      %580 = vector.broadcast %160 : f32 to vector<8x128xf32>
      %581 = arith.mulf %541, %580 : vector<8x128xf32>
      %582 = arith.addf %579, %581 : vector<8x128xf32>
      %583 = vector.broadcast %162 : f32 to vector<8x128xf32>
      %584 = arith.mulf %550, %583 : vector<8x128xf32>
      %585 = arith.addf %582, %584 : vector<8x128xf32>
      %586 = vector.broadcast %164 : f32 to vector<8x128xf32>
      %587 = arith.mulf %559, %586 : vector<8x128xf32>
      %588 = arith.addf %585, %587 : vector<8x128xf32>
      %589 = vector.broadcast %166 : f32 to vector<8x128xf32>
      %590 = arith.mulf %568, %589 : vector<8x128xf32>
      %591 = arith.addf %588, %590 : vector<8x128xf32>
      %592 = vector.broadcast %204 : f32 to vector<8x128xf32>
      %593 = arith.addf %591, %592 : vector<8x128xf32>
      %cst_172 = arith.constant 5.000000e-01 : f32
      %594 = vector.broadcast %cst_172 : f32 to vector<8x128xf32>
      %595 = arith.mulf %594, %593 : vector<8x128xf32>
      %596 = math.tanh %595 : vector<8x128xf32>
      %cst_173 = arith.constant 5.000000e-01 : f32
      %597 = vector.broadcast %cst_173 : f32 to vector<8x128xf32>
      %598 = arith.mulf %597, %596 : vector<8x128xf32>
      %cst_174 = arith.constant 5.000000e-01 : f32
      %599 = vector.broadcast %cst_174 : f32 to vector<8x128xf32>
      %600 = arith.addf %598, %599 : vector<8x128xf32>
      %601 = arith.mulf %600, %217 : vector<8x128xf32>
      %602 = vector.broadcast %153 : f32 to vector<8x128xf32>
      %603 = arith.mulf %505, %602 : vector<8x128xf32>
      %604 = vector.broadcast %155 : f32 to vector<8x128xf32>
      %605 = arith.mulf %514, %604 : vector<8x128xf32>
      %606 = arith.addf %603, %605 : vector<8x128xf32>
      %607 = vector.broadcast %157 : f32 to vector<8x128xf32>
      %608 = arith.mulf %523, %607 : vector<8x128xf32>
      %609 = arith.addf %606, %608 : vector<8x128xf32>
      %610 = vector.broadcast %159 : f32 to vector<8x128xf32>
      %611 = arith.mulf %532, %610 : vector<8x128xf32>
      %612 = arith.addf %609, %611 : vector<8x128xf32>
      %613 = vector.broadcast %161 : f32 to vector<8x128xf32>
      %614 = arith.mulf %541, %613 : vector<8x128xf32>
      %615 = arith.addf %612, %614 : vector<8x128xf32>
      %616 = vector.broadcast %163 : f32 to vector<8x128xf32>
      %617 = arith.mulf %550, %616 : vector<8x128xf32>
      %618 = arith.addf %615, %617 : vector<8x128xf32>
      %619 = vector.broadcast %165 : f32 to vector<8x128xf32>
      %620 = arith.mulf %559, %619 : vector<8x128xf32>
      %621 = arith.addf %618, %620 : vector<8x128xf32>
      %622 = vector.broadcast %167 : f32 to vector<8x128xf32>
      %623 = arith.mulf %568, %622 : vector<8x128xf32>
      %624 = arith.addf %621, %623 : vector<8x128xf32>
      %625 = vector.broadcast %205 : f32 to vector<8x128xf32>
      %626 = arith.addf %624, %625 : vector<8x128xf32>
      %cst_175 = arith.constant 5.000000e-01 : f32
      %627 = vector.broadcast %cst_175 : f32 to vector<8x128xf32>
      %628 = arith.mulf %627, %626 : vector<8x128xf32>
      %629 = math.tanh %628 : vector<8x128xf32>
      %cst_176 = arith.constant 5.000000e-01 : f32
      %630 = vector.broadcast %cst_176 : f32 to vector<8x128xf32>
      %631 = arith.mulf %630, %629 : vector<8x128xf32>
      %cst_177 = arith.constant 5.000000e-01 : f32
      %632 = vector.broadcast %cst_177 : f32 to vector<8x128xf32>
      %633 = arith.addf %631, %632 : vector<8x128xf32>
      %634 = arith.mulf %633, %220 : vector<8x128xf32>
      %635 = vector.broadcast %48 : f32 to vector<8x128xf32>
      %636 = arith.mulf %217, %635 : vector<8x128xf32>
      %637 = vector.broadcast %56 : f32 to vector<8x128xf32>
      %638 = arith.mulf %220, %637 : vector<8x128xf32>
      %639 = arith.addf %636, %638 : vector<8x128xf32>
      %640 = vector.broadcast %104 : f32 to vector<8x128xf32>
      %641 = arith.addf %639, %640 : vector<8x128xf32>
      %cst_178 = arith.constant 0.000000e+00 : f32
      %642 = vector.broadcast %cst_178 : f32 to vector<8x128xf32>
      %643 = arith.maximumf %641, %642 : vector<8x128xf32>
      %644 = vector.broadcast %49 : f32 to vector<8x128xf32>
      %645 = arith.mulf %217, %644 : vector<8x128xf32>
      %646 = vector.broadcast %57 : f32 to vector<8x128xf32>
      %647 = arith.mulf %220, %646 : vector<8x128xf32>
      %648 = arith.addf %645, %647 : vector<8x128xf32>
      %649 = vector.broadcast %105 : f32 to vector<8x128xf32>
      %650 = arith.addf %648, %649 : vector<8x128xf32>
      %cst_179 = arith.constant 0.000000e+00 : f32
      %651 = vector.broadcast %cst_179 : f32 to vector<8x128xf32>
      %652 = arith.maximumf %650, %651 : vector<8x128xf32>
      %653 = vector.broadcast %50 : f32 to vector<8x128xf32>
      %654 = arith.mulf %217, %653 : vector<8x128xf32>
      %655 = vector.broadcast %58 : f32 to vector<8x128xf32>
      %656 = arith.mulf %220, %655 : vector<8x128xf32>
      %657 = arith.addf %654, %656 : vector<8x128xf32>
      %658 = vector.broadcast %106 : f32 to vector<8x128xf32>
      %659 = arith.addf %657, %658 : vector<8x128xf32>
      %cst_180 = arith.constant 0.000000e+00 : f32
      %660 = vector.broadcast %cst_180 : f32 to vector<8x128xf32>
      %661 = arith.maximumf %659, %660 : vector<8x128xf32>
      %662 = vector.broadcast %51 : f32 to vector<8x128xf32>
      %663 = arith.mulf %217, %662 : vector<8x128xf32>
      %664 = vector.broadcast %59 : f32 to vector<8x128xf32>
      %665 = arith.mulf %220, %664 : vector<8x128xf32>
      %666 = arith.addf %663, %665 : vector<8x128xf32>
      %667 = vector.broadcast %107 : f32 to vector<8x128xf32>
      %668 = arith.addf %666, %667 : vector<8x128xf32>
      %cst_181 = arith.constant 0.000000e+00 : f32
      %669 = vector.broadcast %cst_181 : f32 to vector<8x128xf32>
      %670 = arith.maximumf %668, %669 : vector<8x128xf32>
      %671 = vector.broadcast %52 : f32 to vector<8x128xf32>
      %672 = arith.mulf %217, %671 : vector<8x128xf32>
      %673 = vector.broadcast %60 : f32 to vector<8x128xf32>
      %674 = arith.mulf %220, %673 : vector<8x128xf32>
      %675 = arith.addf %672, %674 : vector<8x128xf32>
      %676 = vector.broadcast %108 : f32 to vector<8x128xf32>
      %677 = arith.addf %675, %676 : vector<8x128xf32>
      %cst_182 = arith.constant 0.000000e+00 : f32
      %678 = vector.broadcast %cst_182 : f32 to vector<8x128xf32>
      %679 = arith.maximumf %677, %678 : vector<8x128xf32>
      %680 = vector.broadcast %53 : f32 to vector<8x128xf32>
      %681 = arith.mulf %217, %680 : vector<8x128xf32>
      %682 = vector.broadcast %61 : f32 to vector<8x128xf32>
      %683 = arith.mulf %220, %682 : vector<8x128xf32>
      %684 = arith.addf %681, %683 : vector<8x128xf32>
      %685 = vector.broadcast %109 : f32 to vector<8x128xf32>
      %686 = arith.addf %684, %685 : vector<8x128xf32>
      %cst_183 = arith.constant 0.000000e+00 : f32
      %687 = vector.broadcast %cst_183 : f32 to vector<8x128xf32>
      %688 = arith.maximumf %686, %687 : vector<8x128xf32>
      %689 = vector.broadcast %54 : f32 to vector<8x128xf32>
      %690 = arith.mulf %217, %689 : vector<8x128xf32>
      %691 = vector.broadcast %62 : f32 to vector<8x128xf32>
      %692 = arith.mulf %220, %691 : vector<8x128xf32>
      %693 = arith.addf %690, %692 : vector<8x128xf32>
      %694 = vector.broadcast %110 : f32 to vector<8x128xf32>
      %695 = arith.addf %693, %694 : vector<8x128xf32>
      %cst_184 = arith.constant 0.000000e+00 : f32
      %696 = vector.broadcast %cst_184 : f32 to vector<8x128xf32>
      %697 = arith.maximumf %695, %696 : vector<8x128xf32>
      %698 = vector.broadcast %55 : f32 to vector<8x128xf32>
      %699 = arith.mulf %217, %698 : vector<8x128xf32>
      %700 = vector.broadcast %63 : f32 to vector<8x128xf32>
      %701 = arith.mulf %220, %700 : vector<8x128xf32>
      %702 = arith.addf %699, %701 : vector<8x128xf32>
      %703 = vector.broadcast %111 : f32 to vector<8x128xf32>
      %704 = arith.addf %702, %703 : vector<8x128xf32>
      %cst_185 = arith.constant 0.000000e+00 : f32
      %705 = vector.broadcast %cst_185 : f32 to vector<8x128xf32>
      %706 = arith.maximumf %704, %705 : vector<8x128xf32>
      %707 = vector.broadcast %168 : f32 to vector<8x128xf32>
      %708 = arith.mulf %643, %707 : vector<8x128xf32>
      %709 = vector.broadcast %170 : f32 to vector<8x128xf32>
      %710 = arith.mulf %652, %709 : vector<8x128xf32>
      %711 = arith.addf %708, %710 : vector<8x128xf32>
      %712 = vector.broadcast %172 : f32 to vector<8x128xf32>
      %713 = arith.mulf %661, %712 : vector<8x128xf32>
      %714 = arith.addf %711, %713 : vector<8x128xf32>
      %715 = vector.broadcast %174 : f32 to vector<8x128xf32>
      %716 = arith.mulf %670, %715 : vector<8x128xf32>
      %717 = arith.addf %714, %716 : vector<8x128xf32>
      %718 = vector.broadcast %176 : f32 to vector<8x128xf32>
      %719 = arith.mulf %679, %718 : vector<8x128xf32>
      %720 = arith.addf %717, %719 : vector<8x128xf32>
      %721 = vector.broadcast %178 : f32 to vector<8x128xf32>
      %722 = arith.mulf %688, %721 : vector<8x128xf32>
      %723 = arith.addf %720, %722 : vector<8x128xf32>
      %724 = vector.broadcast %180 : f32 to vector<8x128xf32>
      %725 = arith.mulf %697, %724 : vector<8x128xf32>
      %726 = arith.addf %723, %725 : vector<8x128xf32>
      %727 = vector.broadcast %182 : f32 to vector<8x128xf32>
      %728 = arith.mulf %706, %727 : vector<8x128xf32>
      %729 = arith.addf %726, %728 : vector<8x128xf32>
      %730 = vector.broadcast %206 : f32 to vector<8x128xf32>
      %731 = arith.addf %729, %730 : vector<8x128xf32>
      %cst_186 = arith.constant 5.000000e-01 : f32
      %732 = vector.broadcast %cst_186 : f32 to vector<8x128xf32>
      %733 = arith.mulf %732, %731 : vector<8x128xf32>
      %734 = math.tanh %733 : vector<8x128xf32>
      %cst_187 = arith.constant 5.000000e-01 : f32
      %735 = vector.broadcast %cst_187 : f32 to vector<8x128xf32>
      %736 = arith.mulf %735, %734 : vector<8x128xf32>
      %cst_188 = arith.constant 5.000000e-01 : f32
      %737 = vector.broadcast %cst_188 : f32 to vector<8x128xf32>
      %738 = arith.addf %736, %737 : vector<8x128xf32>
      %739 = arith.mulf %738, %217 : vector<8x128xf32>
      %740 = vector.broadcast %169 : f32 to vector<8x128xf32>
      %741 = arith.mulf %643, %740 : vector<8x128xf32>
      %742 = vector.broadcast %171 : f32 to vector<8x128xf32>
      %743 = arith.mulf %652, %742 : vector<8x128xf32>
      %744 = arith.addf %741, %743 : vector<8x128xf32>
      %745 = vector.broadcast %173 : f32 to vector<8x128xf32>
      %746 = arith.mulf %661, %745 : vector<8x128xf32>
      %747 = arith.addf %744, %746 : vector<8x128xf32>
      %748 = vector.broadcast %175 : f32 to vector<8x128xf32>
      %749 = arith.mulf %670, %748 : vector<8x128xf32>
      %750 = arith.addf %747, %749 : vector<8x128xf32>
      %751 = vector.broadcast %177 : f32 to vector<8x128xf32>
      %752 = arith.mulf %679, %751 : vector<8x128xf32>
      %753 = arith.addf %750, %752 : vector<8x128xf32>
      %754 = vector.broadcast %179 : f32 to vector<8x128xf32>
      %755 = arith.mulf %688, %754 : vector<8x128xf32>
      %756 = arith.addf %753, %755 : vector<8x128xf32>
      %757 = vector.broadcast %181 : f32 to vector<8x128xf32>
      %758 = arith.mulf %697, %757 : vector<8x128xf32>
      %759 = arith.addf %756, %758 : vector<8x128xf32>
      %760 = vector.broadcast %183 : f32 to vector<8x128xf32>
      %761 = arith.mulf %706, %760 : vector<8x128xf32>
      %762 = arith.addf %759, %761 : vector<8x128xf32>
      %763 = vector.broadcast %207 : f32 to vector<8x128xf32>
      %764 = arith.addf %762, %763 : vector<8x128xf32>
      %cst_189 = arith.constant 5.000000e-01 : f32
      %765 = vector.broadcast %cst_189 : f32 to vector<8x128xf32>
      %766 = arith.mulf %765, %764 : vector<8x128xf32>
      %767 = math.tanh %766 : vector<8x128xf32>
      %cst_190 = arith.constant 5.000000e-01 : f32
      %768 = vector.broadcast %cst_190 : f32 to vector<8x128xf32>
      %769 = arith.mulf %768, %767 : vector<8x128xf32>
      %cst_191 = arith.constant 5.000000e-01 : f32
      %770 = vector.broadcast %cst_191 : f32 to vector<8x128xf32>
      %771 = arith.addf %769, %770 : vector<8x128xf32>
      %772 = arith.mulf %771, %220 : vector<8x128xf32>
      %773 = vector.broadcast %64 : f32 to vector<8x128xf32>
      %774 = arith.mulf %217, %773 : vector<8x128xf32>
      %775 = vector.broadcast %72 : f32 to vector<8x128xf32>
      %776 = arith.mulf %220, %775 : vector<8x128xf32>
      %777 = arith.addf %774, %776 : vector<8x128xf32>
      %778 = vector.broadcast %112 : f32 to vector<8x128xf32>
      %779 = arith.addf %777, %778 : vector<8x128xf32>
      %cst_192 = arith.constant 0.000000e+00 : f32
      %780 = vector.broadcast %cst_192 : f32 to vector<8x128xf32>
      %781 = arith.maximumf %779, %780 : vector<8x128xf32>
      %782 = vector.broadcast %65 : f32 to vector<8x128xf32>
      %783 = arith.mulf %217, %782 : vector<8x128xf32>
      %784 = vector.broadcast %73 : f32 to vector<8x128xf32>
      %785 = arith.mulf %220, %784 : vector<8x128xf32>
      %786 = arith.addf %783, %785 : vector<8x128xf32>
      %787 = vector.broadcast %113 : f32 to vector<8x128xf32>
      %788 = arith.addf %786, %787 : vector<8x128xf32>
      %cst_193 = arith.constant 0.000000e+00 : f32
      %789 = vector.broadcast %cst_193 : f32 to vector<8x128xf32>
      %790 = arith.maximumf %788, %789 : vector<8x128xf32>
      %791 = vector.broadcast %66 : f32 to vector<8x128xf32>
      %792 = arith.mulf %217, %791 : vector<8x128xf32>
      %793 = vector.broadcast %74 : f32 to vector<8x128xf32>
      %794 = arith.mulf %220, %793 : vector<8x128xf32>
      %795 = arith.addf %792, %794 : vector<8x128xf32>
      %796 = vector.broadcast %114 : f32 to vector<8x128xf32>
      %797 = arith.addf %795, %796 : vector<8x128xf32>
      %cst_194 = arith.constant 0.000000e+00 : f32
      %798 = vector.broadcast %cst_194 : f32 to vector<8x128xf32>
      %799 = arith.maximumf %797, %798 : vector<8x128xf32>
      %800 = vector.broadcast %67 : f32 to vector<8x128xf32>
      %801 = arith.mulf %217, %800 : vector<8x128xf32>
      %802 = vector.broadcast %75 : f32 to vector<8x128xf32>
      %803 = arith.mulf %220, %802 : vector<8x128xf32>
      %804 = arith.addf %801, %803 : vector<8x128xf32>
      %805 = vector.broadcast %115 : f32 to vector<8x128xf32>
      %806 = arith.addf %804, %805 : vector<8x128xf32>
      %cst_195 = arith.constant 0.000000e+00 : f32
      %807 = vector.broadcast %cst_195 : f32 to vector<8x128xf32>
      %808 = arith.maximumf %806, %807 : vector<8x128xf32>
      %809 = vector.broadcast %68 : f32 to vector<8x128xf32>
      %810 = arith.mulf %217, %809 : vector<8x128xf32>
      %811 = vector.broadcast %76 : f32 to vector<8x128xf32>
      %812 = arith.mulf %220, %811 : vector<8x128xf32>
      %813 = arith.addf %810, %812 : vector<8x128xf32>
      %814 = vector.broadcast %116 : f32 to vector<8x128xf32>
      %815 = arith.addf %813, %814 : vector<8x128xf32>
      %cst_196 = arith.constant 0.000000e+00 : f32
      %816 = vector.broadcast %cst_196 : f32 to vector<8x128xf32>
      %817 = arith.maximumf %815, %816 : vector<8x128xf32>
      %818 = vector.broadcast %69 : f32 to vector<8x128xf32>
      %819 = arith.mulf %217, %818 : vector<8x128xf32>
      %820 = vector.broadcast %77 : f32 to vector<8x128xf32>
      %821 = arith.mulf %220, %820 : vector<8x128xf32>
      %822 = arith.addf %819, %821 : vector<8x128xf32>
      %823 = vector.broadcast %117 : f32 to vector<8x128xf32>
      %824 = arith.addf %822, %823 : vector<8x128xf32>
      %cst_197 = arith.constant 0.000000e+00 : f32
      %825 = vector.broadcast %cst_197 : f32 to vector<8x128xf32>
      %826 = arith.maximumf %824, %825 : vector<8x128xf32>
      %827 = vector.broadcast %70 : f32 to vector<8x128xf32>
      %828 = arith.mulf %217, %827 : vector<8x128xf32>
      %829 = vector.broadcast %78 : f32 to vector<8x128xf32>
      %830 = arith.mulf %220, %829 : vector<8x128xf32>
      %831 = arith.addf %828, %830 : vector<8x128xf32>
      %832 = vector.broadcast %118 : f32 to vector<8x128xf32>
      %833 = arith.addf %831, %832 : vector<8x128xf32>
      %cst_198 = arith.constant 0.000000e+00 : f32
      %834 = vector.broadcast %cst_198 : f32 to vector<8x128xf32>
      %835 = arith.maximumf %833, %834 : vector<8x128xf32>
      %836 = vector.broadcast %71 : f32 to vector<8x128xf32>
      %837 = arith.mulf %217, %836 : vector<8x128xf32>
      %838 = vector.broadcast %79 : f32 to vector<8x128xf32>
      %839 = arith.mulf %220, %838 : vector<8x128xf32>
      %840 = arith.addf %837, %839 : vector<8x128xf32>
      %841 = vector.broadcast %119 : f32 to vector<8x128xf32>
      %842 = arith.addf %840, %841 : vector<8x128xf32>
      %cst_199 = arith.constant 0.000000e+00 : f32
      %843 = vector.broadcast %cst_199 : f32 to vector<8x128xf32>
      %844 = arith.maximumf %842, %843 : vector<8x128xf32>
      %845 = vector.broadcast %184 : f32 to vector<8x128xf32>
      %846 = arith.mulf %781, %845 : vector<8x128xf32>
      %847 = vector.broadcast %186 : f32 to vector<8x128xf32>
      %848 = arith.mulf %790, %847 : vector<8x128xf32>
      %849 = arith.addf %846, %848 : vector<8x128xf32>
      %850 = vector.broadcast %188 : f32 to vector<8x128xf32>
      %851 = arith.mulf %799, %850 : vector<8x128xf32>
      %852 = arith.addf %849, %851 : vector<8x128xf32>
      %853 = vector.broadcast %190 : f32 to vector<8x128xf32>
      %854 = arith.mulf %808, %853 : vector<8x128xf32>
      %855 = arith.addf %852, %854 : vector<8x128xf32>
      %856 = vector.broadcast %192 : f32 to vector<8x128xf32>
      %857 = arith.mulf %817, %856 : vector<8x128xf32>
      %858 = arith.addf %855, %857 : vector<8x128xf32>
      %859 = vector.broadcast %194 : f32 to vector<8x128xf32>
      %860 = arith.mulf %826, %859 : vector<8x128xf32>
      %861 = arith.addf %858, %860 : vector<8x128xf32>
      %862 = vector.broadcast %196 : f32 to vector<8x128xf32>
      %863 = arith.mulf %835, %862 : vector<8x128xf32>
      %864 = arith.addf %861, %863 : vector<8x128xf32>
      %865 = vector.broadcast %198 : f32 to vector<8x128xf32>
      %866 = arith.mulf %844, %865 : vector<8x128xf32>
      %867 = arith.addf %864, %866 : vector<8x128xf32>
      %868 = vector.broadcast %208 : f32 to vector<8x128xf32>
      %869 = arith.addf %867, %868 : vector<8x128xf32>
      %cst_200 = arith.constant 5.000000e-01 : f32
      %870 = vector.broadcast %cst_200 : f32 to vector<8x128xf32>
      %871 = arith.mulf %870, %869 : vector<8x128xf32>
      %872 = math.tanh %871 : vector<8x128xf32>
      %cst_201 = arith.constant 5.000000e-01 : f32
      %873 = vector.broadcast %cst_201 : f32 to vector<8x128xf32>
      %874 = arith.mulf %873, %872 : vector<8x128xf32>
      %cst_202 = arith.constant 5.000000e-01 : f32
      %875 = vector.broadcast %cst_202 : f32 to vector<8x128xf32>
      %876 = arith.addf %874, %875 : vector<8x128xf32>
      %877 = arith.mulf %876, %217 : vector<8x128xf32>
      %878 = vector.broadcast %185 : f32 to vector<8x128xf32>
      %879 = arith.mulf %781, %878 : vector<8x128xf32>
      %880 = vector.broadcast %187 : f32 to vector<8x128xf32>
      %881 = arith.mulf %790, %880 : vector<8x128xf32>
      %882 = arith.addf %879, %881 : vector<8x128xf32>
      %883 = vector.broadcast %189 : f32 to vector<8x128xf32>
      %884 = arith.mulf %799, %883 : vector<8x128xf32>
      %885 = arith.addf %882, %884 : vector<8x128xf32>
      %886 = vector.broadcast %191 : f32 to vector<8x128xf32>
      %887 = arith.mulf %808, %886 : vector<8x128xf32>
      %888 = arith.addf %885, %887 : vector<8x128xf32>
      %889 = vector.broadcast %193 : f32 to vector<8x128xf32>
      %890 = arith.mulf %817, %889 : vector<8x128xf32>
      %891 = arith.addf %888, %890 : vector<8x128xf32>
      %892 = vector.broadcast %195 : f32 to vector<8x128xf32>
      %893 = arith.mulf %826, %892 : vector<8x128xf32>
      %894 = arith.addf %891, %893 : vector<8x128xf32>
      %895 = vector.broadcast %197 : f32 to vector<8x128xf32>
      %896 = arith.mulf %835, %895 : vector<8x128xf32>
      %897 = arith.addf %894, %896 : vector<8x128xf32>
      %898 = vector.broadcast %199 : f32 to vector<8x128xf32>
      %899 = arith.mulf %844, %898 : vector<8x128xf32>
      %900 = arith.addf %897, %899 : vector<8x128xf32>
      %901 = vector.broadcast %209 : f32 to vector<8x128xf32>
      %902 = arith.addf %900, %901 : vector<8x128xf32>
      %cst_203 = arith.constant 5.000000e-01 : f32
      %903 = vector.broadcast %cst_203 : f32 to vector<8x128xf32>
      %904 = arith.mulf %903, %902 : vector<8x128xf32>
      %905 = math.tanh %904 : vector<8x128xf32>
      %cst_204 = arith.constant 5.000000e-01 : f32
      %906 = vector.broadcast %cst_204 : f32 to vector<8x128xf32>
      %907 = arith.mulf %906, %905 : vector<8x128xf32>
      %cst_205 = arith.constant 5.000000e-01 : f32
      %908 = vector.broadcast %cst_205 : f32 to vector<8x128xf32>
      %909 = arith.addf %907, %908 : vector<8x128xf32>
      %910 = arith.mulf %909, %220 : vector<8x128xf32>
      %911 = arith.addf %325, %463 : vector<8x128xf32>
      %912 = arith.addf %911, %601 : vector<8x128xf32>
      %913 = arith.addf %912, %739 : vector<8x128xf32>
      %914 = arith.addf %913, %877 : vector<8x128xf32>
      %cst_206 = arith.constant 1.000000e-07 : f32
      %915 = vector.broadcast %cst_206 : f32 to vector<8x128xf32>
      %916 = arith.addf %914, %915 : vector<8x128xf32>
      %917 = arith.divf %217, %916 : vector<8x128xf32>
      %918 = arith.mulf %325, %917 : vector<8x128xf32>
      %919 = arith.index_cast %214 : i32 to index
      %c0_207 = arith.constant 0 : index
      %920 = vector.load %arg6[%919, %c0_207] : memref<16x1280xf32, #tpu.memory_space<vmem>>, vector<8x128xf32>
      tpu.vector_store %arg6[%919, %c0_207], %918 {strides = array<i32>} : memref<16x1280xf32, #tpu.memory_space<vmem>>, vector<8x128xf32>,
      %921 = arith.mulf %463, %917 : vector<8x128xf32>
      %922 = arith.index_cast %214 : i32 to index
      %c256 = arith.constant 256 : index
      %923 = vector.load %arg6[%922, %c256] : memref<16x1280xf32, #tpu.memory_space<vmem>>, vector<8x128xf32>
      tpu.vector_store %arg6[%922, %c256], %921 {strides = array<i32>} : memref<16x1280xf32, #tpu.memory_space<vmem>>, vector<8x128xf32>,
      %924 = arith.mulf %601, %917 : vector<8x128xf32>
      %925 = arith.index_cast %214 : i32 to index
      %c512 = arith.constant 512 : index
      %926 = vector.load %arg6[%925, %c512] : memref<16x1280xf32, #tpu.memory_space<vmem>>, vector<8x128xf32>
      tpu.vector_store %arg6[%925, %c512], %924 {strides = array<i32>} : memref<16x1280xf32, #tpu.memory_space<vmem>>, vector<8x128xf32>,
      %927 = arith.mulf %739, %917 : vector<8x128xf32>
      %928 = arith.index_cast %214 : i32 to index
      %c768 = arith.constant 768 : index
      %929 = vector.load %arg6[%928, %c768] : memref<16x1280xf32, #tpu.memory_space<vmem>>, vector<8x128xf32>
      tpu.vector_store %arg6[%928, %c768], %927 {strides = array<i32>} : memref<16x1280xf32, #tpu.memory_space<vmem>>, vector<8x128xf32>,
      %930 = arith.mulf %877, %917 : vector<8x128xf32>
      %931 = arith.index_cast %214 : i32 to index
      %c1024 = arith.constant 1024 : index
      %932 = vector.load %arg6[%931, %c1024] : memref<16x1280xf32, #tpu.memory_space<vmem>>, vector<8x128xf32>
      tpu.vector_store %arg6[%931, %c1024], %930 {strides = array<i32>} : memref<16x1280xf32, #tpu.memory_space<vmem>>, vector<8x128xf32>,
      %933 = arith.addf %358, %496 : vector<8x128xf32>
      %934 = arith.addf %933, %634 : vector<8x128xf32>
      %935 = arith.addf %934, %772 : vector<8x128xf32>
      %936 = arith.addf %935, %910 : vector<8x128xf32>
      %cst_208 = arith.constant 1.000000e-07 : f32
      %937 = vector.broadcast %cst_208 : f32 to vector<8x128xf32>
      %938 = arith.addf %936, %937 : vector<8x128xf32>
      %939 = arith.divf %220, %938 : vector<8x128xf32>
      %940 = arith.mulf %358, %939 : vector<8x128xf32>
      %941 = arith.index_cast %214 : i32 to index
      %c128 = arith.constant 128 : index
      %942 = vector.load %arg6[%941, %c128] : memref<16x1280xf32, #tpu.memory_space<vmem>>, vector<8x128xf32>
      tpu.vector_store %arg6[%941, %c128], %940 {strides = array<i32>} : memref<16x1280xf32, #tpu.memory_space<vmem>>, vector<8x128xf32>,
      %943 = arith.mulf %496, %939 : vector<8x128xf32>
      %944 = arith.index_cast %214 : i32 to index
      %c384 = arith.constant 384 : index
      %945 = vector.load %arg6[%944, %c384] : memref<16x1280xf32, #tpu.memory_space<vmem>>, vector<8x128xf32>
      tpu.vector_store %arg6[%944, %c384], %943 {strides = array<i32>} : memref<16x1280xf32, #tpu.memory_space<vmem>>, vector<8x128xf32>,
      %946 = arith.mulf %634, %939 : vector<8x128xf32>
      %947 = arith.index_cast %214 : i32 to index
      %c640 = arith.constant 640 : index
      %948 = vector.load %arg6[%947, %c640] : memref<16x1280xf32, #tpu.memory_space<vmem>>, vector<8x128xf32>
      tpu.vector_store %arg6[%947, %c640], %946 {strides = array<i32>} : memref<16x1280xf32, #tpu.memory_space<vmem>>, vector<8x128xf32>,
      %949 = arith.mulf %772, %939 : vector<8x128xf32>
      %950 = arith.index_cast %214 : i32 to index
      %c896 = arith.constant 896 : index
      %951 = vector.load %arg6[%950, %c896] : memref<16x1280xf32, #tpu.memory_space<vmem>>, vector<8x128xf32>
      tpu.vector_store %arg6[%950, %c896], %949 {strides = array<i32>} : memref<16x1280xf32, #tpu.memory_space<vmem>>, vector<8x128xf32>,
      %952 = arith.mulf %910, %939 : vector<8x128xf32>
      %953 = arith.index_cast %214 : i32 to index
      %c1152 = arith.constant 1152 : index
      %954 = vector.load %arg6[%953, %c1152] : memref<16x1280xf32, #tpu.memory_space<vmem>>, vector<8x128xf32>
      tpu.vector_store %arg6[%953, %c1152], %952 {strides = array<i32>} : memref<16x1280xf32, #tpu.memory_space<vmem>>, vector<8x128xf32>,
    }
    %c2_i32_130 = arith.constant 2 : i32
    return
  }
  func.func @transform_0(%arg0: i32) -> i32 {
    %c0_i32 = arith.constant 0 : i32
    %c0_i32_0 = arith.constant 0 : i32
    return %c0_i32 : i32
  }
  func.func @transform_1(%arg0: i32) -> i32 {
    %c0_i32 = arith.constant 0 : i32
    %c0_i32_0 = arith.constant 0 : i32
    return %c0_i32 : i32
  }
  func.func @transform_2(%arg0: i32) -> i32 {
    %c0_i32 = arith.constant 0 : i32
    %c0_i32_0 = arith.constant 0 : i32
    return %c0_i32 : i32
  }
  func.func @transform_3(%arg0: i32) -> i32 {
    %c0_i32 = arith.constant 0 : i32
    %c0_i32_0 = arith.constant 0 : i32
    return %c0_i32 : i32
  }
  func.func @transform_4(%arg0: i32) -> (i32, i32, i32) {
    %c0_i32 = arith.constant 0 : i32
    %c0_i32_0 = arith.constant 0 : i32
    %c0_i32_1 = arith.constant 0 : i32
    return %c0_i32, %arg0, %c0_i32_0 : i32, i32, i32
  }
  func.func @transform_5(%arg0: i32) -> (i32, i32) {
    %c0_i32 = arith.constant 0 : i32
    %c0_i32_0 = arith.constant 0 : i32
    return %arg0, %c0_i32 : i32, i32
  }
}

</mosaic_0001>

<bundles_post_ra>
// kernel: tpu_custom_call.1
= control target key start
LH: loop header
LB: loop body
LE: loop exit
PB: predicated region body
PF: predicated region fallthrough
CT: control target
= control target key end

     0   :  { %s2303_s0 = inlined_call_operand.hbm [shape: f32[80], index: 0, kind: input, shape index: {}]   ;;  %s2304_s1 = inlined_call_operand.vmem [shape: f32[40], index: 1, kind: input, shape index: {}]   ;;  %s2305_s2 = inlined_call_operand.vmem [shape: f32[80], index: 2, kind: input, shape index: {}]   ;;  %s2306_s3 = inlined_call_operand.vmem [shape: f32[10], index: 3, kind: input, shape index: {}]   ;;  %s2307_s4 = inlined_call_operand.hbm [shape: f32[2,16,128], index: 4, kind: input, shape index: {}]   ;;  %s2308_s5 = inlined_call_operand.hbm [shape: f32[16,1280], index: 5, kind: output, shape index: {}]  }
   0x1   :  { %2311 = sst [smem:[#allocation212_spill]] %s2308_s5 }
   0x2   :  { %10 = vsyncpa [#allocation5], 0 }
   0x3   :  { %11 = vsyncpa [#allocation6], 0 }
   0x4   :  { %12 = vsyncpa [#allocation9], 0 }
   0x5   :  { %13 = vsyncpa [#allocation3], 0  ;;  %s39_s20 = sshll.u32 %s2305_s2, 4  ;;  %s40_s20 = int_to_ptr.vmem [resolvable:$true] %s39_s20 }
   0x6   :  { %14 = vsyncpa [#allocation4], 0  ;;  %s1249_s21 = scalar_lea.vmem %s40_s20, 16  ;;  %p1254_p1 = scmp.lt.s32.totalorder %s40_s20, %s40_s20 }
   0x7   :  { %p1250_p0 = scmp.ne.s32.totalorder %s40_s20, %s1249_s21  ;;  %p1255_p2 = scmp.lt.s32.totalorder %s1249_s21, %s1249_s21 }
   0x9   :  { %p1256_p3 = por %p1255_p2, %p1254_p1 }
   0xb   :  { %p1257_p4 = pnand %p1256_p3, %p1250_p0 }
   0xd   :  { %1260 = shalt.err (!%p1257_p4)
}
   0xe   :  { %s1357_s22 = smov [#allocation8]   ;;  %s1261_s25 = scalar_lea.hbm %s2303_s0, 16 }
   0xf   :  { %42 = dma.vmem_to_smem %s40_s20, 16, %s1357_s22, [#allocation9]  }
  0x10   :  { %p1262_p5 = scmp.ne.s32.totalorder %s2303_s0, %s1261_s25  ;;  %p1265_p6 = scmp.lt.u32.totalorder %s1261_s25, %s2303_s0 }
  0x12   :  { %p1267_p7 = pnand %p1265_p6, %p1262_p5 }
  0x14   :  { %1270 = shalt.err (!%p1267_p7)
}
  0x15   :  { %s1358_s29 = smov [#allocation2]   ;;  %s29_s9 = sshll.u32 %s2304_s1, 4  ;;  %s30_s9 = int_to_ptr.vmem [resolvable:$true] %s29_s9 }
  0x16   :  { %22 = dma.hbm_to_smem %s2303_s0, 16, %s1358_s29, [#allocation5]  }
  0x17   :  { %s49_s12 = sshll.u32 %s2306_s3, 4  ;;  %s1271_s13 = scalar_lea.vmem %s30_s9, 16  ;;  %s50_s12 = int_to_ptr.vmem [resolvable:$true] %s49_s12 }
  0x18   :  { %p1272_p8 = scmp.ne.s32.totalorder %s30_s9, %s1271_s13  ;;  %p1276_p9 = scmp.lt.s32.totalorder %s30_s9, %s30_s9 }
  0x19   :  { %p1277_p10 = scmp.lt.s32.totalorder %s1271_s13, %s1271_s13 }
  0x1b   :  { %p1278_p11 = por %p1277_p10, %p1276_p9 }
  0x1d   :  { %p1279_p12 = pnand %p1278_p11, %p1272_p8 }
  0x1f   :  { %1282 = shalt.err (!%p1279_p12)
}
  0x20   :  { %s1359_s14 = smov [#allocation7]   ;;  %s1283_s0 = scalar_lea.vmem %s50_s12, 16 }
  0x21   :  { %32 = dma.vmem_to_smem %s30_s9, 16, %s1359_s14, [#allocation6]  }
  0x22   :  { %p1284_p13 = scmp.ne.s32.totalorder %s50_s12, %s1283_s0  ;;  %p1288_p0 = scmp.lt.s32.totalorder %s50_s12, %s50_s12 }
  0x23   :  { %p1289_p1 = scmp.lt.s32.totalorder %s1283_s0, %s1283_s0 }
  0x25   :  { %p1290_p2 = por %p1289_p1, %p1288_p0 }
  0x27   :  { %p1291_p3 = pnand %p1290_p2, %p1284_p13 }
  0x29   :  { %1294 = shalt.err (!%p1291_p3)
}
  0x2a   :  { %s1360_s1 = smov [#allocation10]   ;;  %s1361_s3 = smov [#allocation11]  }
  0x2b   :  { %52 = dma.vmem_to_smem %s50_s12, 16, %s1360_s1, [#allocation9]  }
  0x2c   :  { %s58_s15 = sshll.u32 %s1361_s3, 4  ;;  %s1295_s18 = scalar_lea.hbm %s2307_s4, 512  ;;  %s59_s15 = int_to_ptr.vmem [resolvable:$true] %s58_s15 }
  0x2d   :  { %p1296_p4 = scmp.ne.s32.totalorder %s2307_s4, %s1295_s18  ;;  %p1299_p5 = scmp.lt.u32.totalorder %s1295_s18, %s2307_s4 }
  0x2f   :  { %p1301_p6 = pnand %p1299_p5, %p1296_p4 }
  0x31   :  { %1304 = shalt.err (!%p1301_p6)
}
  0x32   :  { %s1305_s23 = scalar_lea.vmem %s59_s15, 512  ;;  %p1310_p8 = scmp.lt.s32.totalorder %s59_s15, %s59_s15 }
  0x33   :  { %p1306_p7 = scmp.ne.s32.totalorder %s59_s15, %s1305_s23  ;;  %p1311_p9 = scmp.lt.s32.totalorder %s1305_s23, %s1305_s23 }
  0x35   :  { %p1312_p10 = por %p1311_p9, %p1310_p8 }
  0x37   :  { %p1313_p11 = pnand %p1312_p10, %p1306_p7 }
  0x39   :  { %1316 = shalt.err (!%p1313_p11)
}
  0x3a   :  { %s1362_s24 = smov 128   ;;  %s1363_s25 = smov 8  }
  0x3b   :  { %64 = dma.hbm_to_vmem [thread:$0]  %s2307_s4, 512, %s59_s15, [#allocation3], %s1362_s24, %s1362_s24, %s1363_s25  }
  0x3c   :  { %1343 = dma.done.wait [#allocation5], 16  }
  0x3d   :  { %1344 = vsyncadd [#allocation5], 4294967280 }
  0x3e   :  { %1345 = dma.done.wait [#allocation6], 16  }
  0x3f   :  { %1346 = vsyncadd [#allocation6], 4294967280 }
  0x40   :  { %1347 = dma.done.wait [#allocation9], 32  }
  0x41   :  { %1348 = vsyncadd [#allocation9], 4294967264 }
  0x42   :  { %1349 = dma.done.wait [#allocation3], 512  }
  0x43   :  { %1350 = vsyncadd [#allocation3], 4294966784 }
  0x44   :  { %80 = sfence }
  0x45   :  { %s1430_s2 = sld [smem:[#allocation2]]  ;;  %s1432_s28 = sld [smem:[#allocation2 + $0x1]] }
  0x46   :  { %s1434_s29 = sld [smem:[#allocation2 + $0x2]]  ;;  %s1436_s30 = sld [smem:[#allocation2 + $0x3]] }
  0x47   :  { %s1438_s6 = sld [smem:[#allocation2 + $0x4]]  ;;  %s1440_s4 = sld [smem:[#allocation2 + $0x5]] }
  0x48   :  { %s1442_s7 = sld [smem:[#allocation2 + $0x6]]  ;;  %s1444_s8 = sld [smem:[#allocation2 + $0x7]] }
  0x49   :  { %s1446_s9 = sld [smem:[#allocation2 + $0x8]]  ;;  %s1448_s10 = sld [smem:[#allocation2 + $0x9]] }
  0x4a   :  { %s1450_s11 = sld [smem:[#allocation2 + $0xa]]  ;;  %s1452_s12 = sld [smem:[#allocation2 + $0xb]] }
  0x4b   :  { %2312 = sst [smem:[#allocation18_spill]] %s1430_s2  ;;  %s1454_s13 = sld [smem:[#allocation2 + $0xc]] }
  0x4c   :  { %s1456_s14 = sld [smem:[#allocation2 + $0xd]]  ;;  %s1458_s0 = sld [smem:[#allocation2 + $0xe]] }
  0x4d   :  { %2313 = sst [smem:[#allocation19_spill]] %s1438_s6  ;;  %s1460_s1 = sld [smem:[#allocation2 + $0xf]] }
  0x4e   :  { %2314 = sst [smem:[#allocation20_spill]] %s1440_s4  ;;  %s1462_s3 = sld [smem:[#allocation2 + $0x10]] }
  0x4f   :  { %2315 = sst [smem:[#allocation21_spill]] %s1442_s7  ;;  %s1464_s15 = sld [smem:[#allocation2 + $0x11]] }
  0x50   :  { %2316 = sst [smem:[#allocation22_spill]] %s1444_s8  ;;  %s1466_s16 = sld [smem:[#allocation2 + $0x12]] }
  0x51   :  { %2317 = sst [smem:[#allocation23_spill]] %s1446_s9  ;;  %s1468_s17 = sld [smem:[#allocation2 + $0x13]] }
  0x52   :  { %2318 = sst [smem:[#allocation24_spill]] %s1448_s10  ;;  %s1470_s18 = sld [smem:[#allocation2 + $0x14]] }
  0x53   :  { %2319 = sst [smem:[#allocation25_spill]] %s1450_s11  ;;  %s1472_s19 = sld [smem:[#allocation2 + $0x15]] }
  0x54   :  { %2320 = sst [smem:[#allocation26_spill]] %s1452_s12  ;;  %s1474_s20 = sld [smem:[#allocation2 + $0x16]] }
  0x55   :  { %2321 = sst [smem:[#allocation27_spill]] %s1454_s13  ;;  %s1476_s21 = sld [smem:[#allocation2 + $0x17]] }
  0x56   :  { %2322 = sst [smem:[#allocation28_spill]] %s1456_s14  ;;  %s1478_s22 = sld [smem:[#allocation2 + $0x18]] }
  0x57   :  { %2323 = sst [smem:[#allocation29_spill]] %s1458_s0  ;;  %s1480_s23 = sld [smem:[#allocation2 + $0x19]] }
  0x58   :  { %2324 = sst [smem:[#allocation30_spill]] %s1460_s1  ;;  %s1482_s24 = sld [smem:[#allocation2 + $0x1a]] }
  0x59   :  { %2325 = sst [smem:[#allocation31_spill]] %s1462_s3  ;;  %s1484_s25 = sld [smem:[#allocation2 + $0x1b]] }
  0x5a   :  { %2326 = sst [smem:[#allocation32_spill]] %s1464_s15  ;;  %s1486_s26 = sld [smem:[#allocation2 + $0x1c]] }
  0x5b   :  { %2327 = sst [smem:[#allocation33_spill]] %s1466_s16  ;;  %s1488_s27 = sld [smem:[#allocation2 + $0x1d]] }
  0x5c   :  { %2328 = sst [smem:[#allocation34_spill]] %s1468_s17  ;;  %s1490_s5 = sld [smem:[#allocation2 + $0x1e]] }
  0x5d   :  { %2329 = sst [smem:[#allocation35_spill]] %s1470_s18  ;;  %s1492_s18 = sld [smem:[#allocation2 + $0x1f]] }
  0x5e   :  { %2330 = sst [smem:[#allocation36_spill]] %s1472_s19  ;;  %s1494_s19 = sld [smem:[#allocation2 + $0x20]] }
  0x5f   :  { %2331 = sst [smem:[#allocation37_spill]] %s1474_s20  ;;  %s1496_s20 = sld [smem:[#allocation2 + $0x21]] }
  0x60   :  { %2332 = sst [smem:[#allocation38_spill]] %s1476_s21  ;;  %s1498_s21 = sld [smem:[#allocation2 + $0x22]] }
  0x61   :  { %2333 = sst [smem:[#allocation39_spill]] %s1478_s22  ;;  %s1500_s17 = sld [smem:[#allocation2 + $0x23]] }
  0x62   :  { %2334 = sst [smem:[#allocation40_spill]] %s1480_s23  ;;  %s1502_s16 = sld [smem:[#allocation2 + $0x24]] }
  0x63   :  { %2335 = sst [smem:[#allocation41_spill]] %s1482_s24  ;;  %s1504_s24 = sld [smem:[#allocation2 + $0x25]] }
  0x64   :  { %2336 = sst [smem:[#allocation42_spill]] %s1484_s25  ;;  %s1506_s25 = sld [smem:[#allocation2 + $0x26]] }
  0x65   :  { %2337 = sst [smem:[#allocation43_spill]] %s1486_s26  ;;  %s1508_s26 = sld [smem:[#allocation2 + $0x27]] }
  0x66   :  { %2338 = sst [smem:[#allocation44_spill]] %s1488_s27  ;;  %s1510_s27 = sld [smem:[#allocation2 + $0x28]] }
  0x67   :  { %2339 = sst [smem:[#allocation45_spill]] %s1490_s5  ;;  %s1512_s5 = sld [smem:[#allocation2 + $0x29]] }
  0x68   :  { %2340 = sst [smem:[#allocation46_spill]] %s1492_s18  ;;  %s1514_s18 = sld [smem:[#allocation2 + $0x2a]] }
  0x69   :  { %2341 = sst [smem:[#allocation47_spill]] %s1494_s19  ;;  %s1516_s19 = sld [smem:[#allocation2 + $0x2b]] }
  0x6a   :  { %2342 = sst [smem:[#allocation48_spill]] %s1496_s20  ;;  %s1518_s20 = sld [smem:[#allocation2 + $0x2c]] }
  0x6b   :  { %2343 = sst [smem:[#allocation49_spill]] %s1498_s21  ;;  %s1520_s21 = sld [smem:[#allocation2 + $0x2d]] }
  0x6c   :  { %2344 = sst [smem:[#allocation50_spill]] %s1500_s17  ;;  %s1522_s17 = sld [smem:[#allocation2 + $0x2e]] }
  0x6d   :  { %2345 = sst [smem:[#allocation51_spill]] %s1502_s16  ;;  %s1524_s16 = sld [smem:[#allocation2 + $0x2f]] }
  0x6e   :  { %2346 = sst [smem:[#allocation52_spill]] %s1504_s24  ;;  %s1526_s24 = sld [smem:[#allocation2 + $0x30]] }
  0x6f   :  { %2347 = sst [smem:[#allocation53_spill]] %s1506_s25  ;;  %s1528_s25 = sld [smem:[#allocation2 + $0x31]] }
  0x70   :  { %2348 = sst [smem:[#allocation54_spill]] %s1508_s26  ;;  %s1530_s26 = sld [smem:[#allocation2 + $0x32]] }
  0x71   :  { %2349 = sst [smem:[#allocation55_spill]] %s1510_s27  ;;  %s1532_s27 = sld [smem:[#allocation2 + $0x33]] }
  0x72   :  { %2350 = sst [smem:[#allocation56_spill]] %s1512_s5  ;;  %s1534_s5 = sld [smem:[#allocation2 + $0x34]] }
  0x73   :  { %2351 = sst [smem:[#allocation57_spill]] %s1514_s18  ;;  %s1536_s18 = sld [smem:[#allocation2 + $0x35]] }
  0x74   :  { %2352 = sst [smem:[#allocation58_spill]] %s1516_s19  ;;  %s1538_s19 = sld [smem:[#allocation2 + $0x36]] }
  0x75   :  { %2353 = sst [smem:[#allocation59_spill]] %s1518_s20  ;;  %s1540_s20 = sld [smem:[#allocation2 + $0x37]] }
  0x76   :  { %2354 = sst [smem:[#allocation60_spill]] %s1520_s21  ;;  %s1542_s21 = sld [smem:[#allocation2 + $0x38]] }
  0x77   :  { %2355 = sst [smem:[#allocation61_spill]] %s1522_s17  ;;  %s1544_s17 = sld [smem:[#allocation2 + $0x39]] }
  0x78   :  { %2356 = sst [smem:[#allocation62_spill]] %s1524_s16  ;;  %s1546_s16 = sld [smem:[#allocation2 + $0x3a]] }
  0x79   :  { %2357 = sst [smem:[#allocation63_spill]] %s1526_s24  ;;  %s1548_s24 = sld [smem:[#allocation2 + $0x3b]] }
  0x7a   :  { %2358 = sst [smem:[#allocation64_spill]] %s1528_s25  ;;  %s1550_s25 = sld [smem:[#allocation2 + $0x3c]] }
  0x7b   :  { %2359 = sst [smem:[#allocation65_spill]] %s1530_s26  ;;  %s1552_s26 = sld [smem:[#allocation2 + $0x3d]] }
  0x7c   :  { %2360 = sst [smem:[#allocation66_spill]] %s1532_s27  ;;  %s1554_s27 = sld [smem:[#allocation2 + $0x3e]] }
  0x7d   :  { %2361 = sst [smem:[#allocation67_spill]] %s1534_s5  ;;  %s1556_s5 = sld [smem:[#allocation2 + $0x3f]] }
  0x7e   :  { %2362 = sst [smem:[#allocation68_spill]] %s1536_s18  ;;  %s1558_s18 = sld [smem:[#allocation2 + $0x40]] }
  0x7f   :  { %2363 = sst [smem:[#allocation69_spill]] %s1538_s19  ;;  %s1560_s19 = sld [smem:[#allocation2 + $0x41]] }
  0x80   :  { %2364 = sst [smem:[#allocation70_spill]] %s1540_s20  ;;  %s1562_s20 = sld [smem:[#allocation2 + $0x42]] }
  0x81   :  { %2365 = sst [smem:[#allocation71_spill]] %s1542_s21  ;;  %s1564_s21 = sld [smem:[#allocation2 + $0x43]] }
  0x82   :  { %2366 = sst [smem:[#allocation72_spill]] %s1544_s17  ;;  %s1566_s17 = sld [smem:[#allocation2 + $0x44]] }
  0x83   :  { %2367 = sst [smem:[#allocation73_spill]] %s1546_s16  ;;  %s1568_s16 = sld [smem:[#allocation2 + $0x45]] }
  0x84   :  { %2368 = sst [smem:[#allocation74_spill]] %s1548_s24  ;;  %s1570_s24 = sld [smem:[#allocation2 + $0x46]] }
  0x85   :  { %2369 = sst [smem:[#allocation75_spill]] %s1550_s25  ;;  %s1572_s25 = sld [smem:[#allocation2 + $0x47]] }
  0x86   :  { %2370 = sst [smem:[#allocation76_spill]] %s1552_s26  ;;  %s1574_s26 = sld [smem:[#allocation2 + $0x48]] }
  0x87   :  { %2371 = sst [smem:[#allocation77_spill]] %s1554_s27  ;;  %s1576_s27 = sld [smem:[#allocation2 + $0x49]] }
  0x88   :  { %2372 = sst [smem:[#allocation78_spill]] %s1556_s5  ;;  %s1578_s5 = sld [smem:[#allocation2 + $0x4a]] }
  0x89   :  { %2373 = sst [smem:[#allocation79_spill]] %s1558_s18  ;;  %s1580_s18 = sld [smem:[#allocation2 + $0x4b]] }
  0x8a   :  { %2374 = sst [smem:[#allocation80_spill]] %s1560_s19  ;;  %s1582_s19 = sld [smem:[#allocation2 + $0x4c]] }
  0x8b   :  { %2375 = sst [smem:[#allocation81_spill]] %s1562_s20  ;;  %s1584_s20 = sld [smem:[#allocation2 + $0x4d]] }
  0x8c   :  { %2376 = sst [smem:[#allocation82_spill]] %s1564_s21  ;;  %s1586_s21 = sld [smem:[#allocation2 + $0x4e]] }
  0x8d   :  { %2377 = sst [smem:[#allocation83_spill]] %s1566_s17  ;;  %s1588_s17 = sld [smem:[#allocation2 + $0x4f]] }
  0x8e   :  { %2378 = sst [smem:[#allocation84_spill]] %s1568_s16  ;;  %s1590_s16 = sld [smem:[#allocation7]] }
  0x8f   :  { %2379 = sst [smem:[#allocation85_spill]] %s1570_s24  ;;  %s1592_s24 = sld [smem:[#allocation7 + $0x1]] }
  0x90   :  { %2380 = sst [smem:[#allocation86_spill]] %s1572_s25  ;;  %s1594_s25 = sld [smem:[#allocation7 + $0x2]] }
  0x91   :  { %2381 = sst [smem:[#allocation87_spill]] %s1574_s26  ;;  %s1596_s26 = sld [smem:[#allocation7 + $0x3]] }
  0x92   :  { %2382 = sst [smem:[#allocation88_spill]] %s1576_s27  ;;  %s1598_s27 = sld [smem:[#allocation7 + $0x4]] }
  0x93   :  { %2383 = sst [smem:[#allocation89_spill]] %s1578_s5  ;;  %s1600_s5 = sld [smem:[#allocation7 + $0x5]] }
  0x94   :  { %2384 = sst [smem:[#allocation90_spill]] %s1580_s18  ;;  %s1602_s18 = sld [smem:[#allocation7 + $0x6]] }
  0x95   :  { %2385 = sst [smem:[#allocation91_spill]] %s1582_s19  ;;  %s1604_s19 = sld [smem:[#allocation7 + $0x7]] }
  0x96   :  { %2386 = sst [smem:[#allocation92_spill]] %s1584_s20  ;;  %s1606_s20 = sld [smem:[#allocation7 + $0x8]] }
  0x97   :  { %2387 = sst [smem:[#allocation93_spill]] %s1586_s21  ;;  %s1608_s21 = sld [smem:[#allocation7 + $0x9]] }
  0x98   :  { %2388 = sst [smem:[#allocation94_spill]] %s1588_s17  ;;  %s1610_s17 = sld [smem:[#allocation7 + $0xa]] }
  0x99   :  { %2389 = sst [smem:[#allocation95_spill]] %s1600_s5  ;;  %s1612_s23 = sld [smem:[#allocation7 + $0xb]] }
  0x9a   :  { %2390 = sst [smem:[#allocation96_spill]] %s1602_s18  ;;  %s1614_s15 = sld [smem:[#allocation7 + $0xc]] }
  0x9b   :  { %2391 = sst [smem:[#allocation97_spill]] %s1604_s19  ;;  %s1616_s22 = sld [smem:[#allocation7 + $0xd]] }
  0x9c   :  { %2392 = sst [smem:[#allocation98_spill]] %s1606_s20  ;;  %s1618_s3 = sld [smem:[#allocation7 + $0xe]] }
  0x9d   :  { %2393 = sst [smem:[#allocation99_spill]] %s1608_s21  ;;  %s1620_s1 = sld [smem:[#allocation7 + $0xf]] }
  0x9e   :  { %2394 = sst [smem:[#allocation100_spill]] %s1610_s17  ;;  %s1622_s8 = sld [smem:[#allocation7 + $0x10]] }
  0x9f   :  { %2395 = sst [smem:[#allocation101_spill]] %s1612_s23  ;;  %s1624_s18 = sld [smem:[#allocation7 + $0x11]] }
  0xa0   :  { %2396 = sst [smem:[#allocation102_spill]] %s1614_s15  ;;  %s1626_s19 = sld [smem:[#allocation7 + $0x12]] }
  0xa1   :  { %2397 = sst [smem:[#allocation103_spill]] %s1616_s22  ;;  %s1628_s20 = sld [smem:[#allocation7 + $0x13]] }
  0xa2   :  { %2398 = sst [smem:[#allocation104_spill]] %s1618_s3  ;;  %s1630_s21 = sld [smem:[#allocation7 + $0x14]] }
  0xa3   :  { %2399 = sst [smem:[#allocation105_spill]] %s1620_s1  ;;  %s1632_s17 = sld [smem:[#allocation7 + $0x15]] }
  0xa4   :  { %2400 = sst [smem:[#allocation106_spill]] %s1622_s8  ;;  %s1634_s23 = sld [smem:[#allocation7 + $0x16]] }
  0xa5   :  { %2401 = sst [smem:[#allocation107_spill]] %s1624_s18  ;;  %s1636_s15 = sld [smem:[#allocation7 + $0x17]] }
  0xa6   :  { %2402 = sst [smem:[#allocation108_spill]] %s1626_s19  ;;  %s1638_s22 = sld [smem:[#allocation7 + $0x18]] }
  0xa7   :  { %2403 = sst [smem:[#allocation109_spill]] %s1628_s20  ;;  %s1640_s3 = sld [smem:[#allocation7 + $0x19]] }
  0xa8   :  { %2404 = sst [smem:[#allocation110_spill]] %s1630_s21  ;;  %s1642_s1 = sld [smem:[#allocation7 + $0x1a]] }
  0xa9   :  { %2405 = sst [smem:[#allocation111_spill]] %s1632_s17  ;;  %s1644_s8 = sld [smem:[#allocation7 + $0x1b]] }
  0xaa   :  { %2406 = sst [smem:[#allocation112_spill]] %s1634_s23  ;;  %s1646_s18 = sld [smem:[#allocation7 + $0x1c]] }
  0xab   :  { %2407 = sst [smem:[#allocation113_spill]] %s1636_s15  ;;  %s1648_s19 = sld [smem:[#allocation7 + $0x1d]] }
  0xac   :  { %2408 = sst [smem:[#allocation114_spill]] %s1638_s22  ;;  %s1650_s20 = sld [smem:[#allocation7 + $0x1e]] }
  0xad   :  { %2409 = sst [smem:[#allocation115_spill]] %s1640_s3  ;;  %s1652_s21 = sld [smem:[#allocation7 + $0x1f]] }
  0xae   :  { %2410 = sst [smem:[#allocation116_spill]] %s1642_s1  ;;  %s1654_s17 = sld [smem:[#allocation7 + $0x20]] }
  0xaf   :  { %2411 = sst [smem:[#allocation117_spill]] %s1644_s8  ;;  %s1656_s23 = sld [smem:[#allocation7 + $0x21]] }
  0xb0   :  { %2412 = sst [smem:[#allocation118_spill]] %s1646_s18  ;;  %s1658_s15 = sld [smem:[#allocation7 + $0x22]] }
  0xb1   :  { %2413 = sst [smem:[#allocation119_spill]] %s1648_s19  ;;  %s1660_s22 = sld [smem:[#allocation7 + $0x23]] }
  0xb2   :  { %2414 = sst [smem:[#allocation120_spill]] %s1650_s20  ;;  %s1662_s3 = sld [smem:[#allocation7 + $0x24]] }
  0xb3   :  { %2415 = sst [smem:[#allocation121_spill]] %s1652_s21  ;;  %s1664_s1 = sld [smem:[#allocation7 + $0x25]] }
  0xb4   :  { %2416 = sst [smem:[#allocation122_spill]] %s1654_s17  ;;  %s1666_s8 = sld [smem:[#allocation7 + $0x26]] }
  0xb5   :  { %2417 = sst [smem:[#allocation123_spill]] %s1656_s23  ;;  %s1668_s18 = sld [smem:[#allocation7 + $0x27]] }
  0xb6   :  { %2418 = sst [smem:[#allocation124_spill]] %s1658_s15  ;;  %s1670_s19 = sld [smem:[#allocation8]] }
  0xb7   :  { %2419 = sst [smem:[#allocation125_spill]] %s1660_s22  ;;  %s1672_s20 = sld [smem:[#allocation8 + $0x1]] }
  0xb8   :  { %2420 = sst [smem:[#allocation126_spill]] %s1662_s3  ;;  %s1674_s21 = sld [smem:[#allocation8 + $0x2]] }
  0xb9   :  { %2421 = sst [smem:[#allocation127_spill]] %s1664_s1  ;;  %s1676_s17 = sld [smem:[#allocation8 + $0x3]] }
  0xba   :  { %2422 = sst [smem:[#allocation128_spill]] %s1666_s8  ;;  %s1678_s23 = sld [smem:[#allocation8 + $0x4]] }
  0xbb   :  { %2423 = sst [smem:[#allocation129_spill]] %s1668_s18  ;;  %s1680_s15 = sld [smem:[#allocation8 + $0x5]] }
  0xbc   :  { %2424 = sst [smem:[#allocation130_spill]] %s1670_s19  ;;  %s1682_s22 = sld [smem:[#allocation8 + $0x6]] }
  0xbd   :  { %2425 = sst [smem:[#allocation131_spill]] %s1672_s20  ;;  %s1684_s3 = sld [smem:[#allocation8 + $0x7]] }
  0xbe   :  { %2426 = sst [smem:[#allocation132_spill]] %s1674_s21  ;;  %s1686_s1 = sld [smem:[#allocation8 + $0x8]] }
  0xbf   :  { %2427 = sst [smem:[#allocation133_spill]] %s1676_s17  ;;  %s1688_s8 = sld [smem:[#allocation8 + $0x9]] }
  0xc0   :  { %2428 = sst [smem:[#allocation134_spill]] %s1678_s23  ;;  %s1690_s18 = sld [smem:[#allocation8 + $0xa]] }
  0xc1   :  { %2429 = sst [smem:[#allocation135_spill]] %s1680_s15  ;;  %s1692_s19 = sld [smem:[#allocation8 + $0xb]] }
  0xc2   :  { %2430 = sst [smem:[#allocation136_spill]] %s1682_s22  ;;  %s1694_s20 = sld [smem:[#allocation8 + $0xc]] }
  0xc3   :  { %2431 = sst [smem:[#allocation137_spill]] %s1684_s3  ;;  %s1696_s21 = sld [smem:[#allocation8 + $0xd]] }
  0xc4   :  { %2432 = sst [smem:[#allocation138_spill]] %s1686_s1  ;;  %s1698_s17 = sld [smem:[#allocation8 + $0xe]] }
  0xc5   :  { %2433 = sst [smem:[#allocation139_spill]] %s1688_s8  ;;  %s1700_s23 = sld [smem:[#allocation8 + $0xf]] }
  0xc6   :  { %2434 = sst [smem:[#allocation140_spill]] %s1690_s18  ;;  %s1702_s15 = sld [smem:[#allocation8 + $0x10]] }
  0xc7   :  { %2435 = sst [smem:[#allocation141_spill]] %s1692_s19  ;;  %s1704_s22 = sld [smem:[#allocation8 + $0x11]] }
  0xc8   :  { %2436 = sst [smem:[#allocation142_spill]] %s1694_s20  ;;  %s1706_s3 = sld [smem:[#allocation8 + $0x12]] }
  0xc9   :  { %2437 = sst [smem:[#allocation143_spill]] %s1696_s21  ;;  %s1708_s1 = sld [smem:[#allocation8 + $0x13]] }
  0xca   :  { %2438 = sst [smem:[#allocation144_spill]] %s1698_s17  ;;  %s1710_s8 = sld [smem:[#allocation8 + $0x14]] }
  0xcb   :  { %2439 = sst [smem:[#allocation145_spill]] %s1700_s23  ;;  %s1712_s18 = sld [smem:[#allocation8 + $0x15]] }
  0xcc   :  { %2440 = sst [smem:[#allocation146_spill]] %s1702_s15  ;;  %s1714_s19 = sld [smem:[#allocation8 + $0x16]] }
  0xcd   :  { %2441 = sst [smem:[#allocation147_spill]] %s1704_s22  ;;  %s1716_s20 = sld [smem:[#allocation8 + $0x17]] }
  0xce   :  { %2442 = sst [smem:[#allocation148_spill]] %s1706_s3  ;;  %s1718_s21 = sld [smem:[#allocation8 + $0x18]] }
  0xcf   :  { %2443 = sst [smem:[#allocation149_spill]] %s1708_s1  ;;  %s1720_s17 = sld [smem:[#allocation8 + $0x19]] }
  0xd0   :  { %2444 = sst [smem:[#allocation150_spill]] %s1710_s8  ;;  %s1722_s23 = sld [smem:[#allocation8 + $0x1a]] }
  0xd1   :  { %2445 = sst [smem:[#allocation151_spill]] %s1712_s18  ;;  %s1724_s15 = sld [smem:[#allocation8 + $0x1b]] }
  0xd2   :  { %2446 = sst [smem:[#allocation152_spill]] %s1714_s19  ;;  %s1726_s22 = sld [smem:[#allocation8 + $0x1c]] }
  0xd3   :  { %2447 = sst [smem:[#allocation153_spill]] %s1716_s20  ;;  %s1728_s3 = sld [smem:[#allocation8 + $0x1d]] }
  0xd4   :  { %2448 = sst [smem:[#allocation154_spill]] %s1718_s21  ;;  %s1730_s1 = sld [smem:[#allocation8 + $0x1e]] }
  0xd5   :  { %2449 = sst [smem:[#allocation155_spill]] %s1720_s17  ;;  %s1732_s8 = sld [smem:[#allocation8 + $0x1f]] }
  0xd6   :  { %2450 = sst [smem:[#allocation156_spill]] %s1722_s23  ;;  %s1734_s18 = sld [smem:[#allocation8 + $0x20]] }
  0xd7   :  { %2451 = sst [smem:[#allocation157_spill]] %s1724_s15  ;;  %s1736_s19 = sld [smem:[#allocation8 + $0x21]] }
  0xd8   :  { %2452 = sst [smem:[#allocation158_spill]] %s1726_s22  ;;  %s1738_s20 = sld [smem:[#allocation8 + $0x22]] }
  0xd9   :  { %2453 = sst [smem:[#allocation159_spill]] %s1728_s3  ;;  %s1740_s21 = sld [smem:[#allocation8 + $0x23]] }
  0xda   :  { %2454 = sst [smem:[#allocation160_spill]] %s1730_s1  ;;  %s1742_s17 = sld [smem:[#allocation8 + $0x24]] }
  0xdb   :  { %2455 = sst [smem:[#allocation161_spill]] %s1732_s8  ;;  %s1744_s23 = sld [smem:[#allocation8 + $0x25]] }
  0xdc   :  { %2456 = sst [smem:[#allocation162_spill]] %s1734_s18  ;;  %s1746_s15 = sld [smem:[#allocation8 + $0x26]] }
  0xdd   :  { %2457 = sst [smem:[#allocation163_spill]] %s1736_s19  ;;  %s1748_s22 = sld [smem:[#allocation8 + $0x27]] }
  0xde   :  { %2458 = sst [smem:[#allocation164_spill]] %s1738_s20  ;;  %s1750_s3 = sld [smem:[#allocation8 + $0x28]] }
  0xdf   :  { %2459 = sst [smem:[#allocation165_spill]] %s1740_s21  ;;  %s1752_s1 = sld [smem:[#allocation8 + $0x29]] }
  0xe0   :  { %2460 = sst [smem:[#allocation166_spill]] %s1742_s17  ;;  %s1754_s8 = sld [smem:[#allocation8 + $0x2a]] }
  0xe1   :  { %2461 = sst [smem:[#allocation167_spill]] %s1744_s23  ;;  %s1756_s18 = sld [smem:[#allocation8 + $0x2b]] }
  0xe2   :  { %2462 = sst [smem:[#allocation168_spill]] %s1746_s15  ;;  %s1758_s19 = sld [smem:[#allocation8 + $0x2c]] }
  0xe3   :  { %2463 = sst [smem:[#allocation169_spill]] %s1748_s22  ;;  %s1760_s20 = sld [smem:[#allocation8 + $0x2d]] }
  0xe4   :  { %2464 = sst [smem:[#allocation170_spill]] %s1750_s3  ;;  %s1762_s21 = sld [smem:[#allocation8 + $0x2e]] }
  0xe5   :  { %2465 = sst [smem:[#allocation171_spill]] %s1752_s1  ;;  %s1764_s17 = sld [smem:[#allocation8 + $0x2f]] }
  0xe6   :  { %2466 = sst [smem:[#allocation172_spill]] %s1754_s8  ;;  %s1766_s23 = sld [smem:[#allocation8 + $0x30]] }
  0xe7   :  { %2467 = sst [smem:[#allocation173_spill]] %s1756_s18  ;;  %s1768_s15 = sld [smem:[#allocation8 + $0x31]] }
  0xe8   :  { %2468 = sst [smem:[#allocation174_spill]] %s1758_s19  ;;  %s1770_s22 = sld [smem:[#allocation8 + $0x32]] }
  0xe9   :  { %2469 = sst [smem:[#allocation175_spill]] %s1760_s20  ;;  %s1772_s3 = sld [smem:[#allocation8 + $0x33]] }
  0xea   :  { %2470 = sst [smem:[#allocation176_spill]] %s1762_s21  ;;  %s1774_s1 = sld [smem:[#allocation8 + $0x34]] }
  0xeb   :  { %2471 = sst [smem:[#allocation177_spill]] %s1764_s17  ;;  %s1776_s8 = sld [smem:[#allocation8 + $0x35]] }
  0xec   :  { %2472 = sst [smem:[#allocation178_spill]] %s1766_s23  ;;  %s1778_s18 = sld [smem:[#allocation8 + $0x36]] }
  0xed   :  { %2473 = sst [smem:[#allocation179_spill]] %s1768_s15  ;;  %s1780_s19 = sld [smem:[#allocation8 + $0x37]] }
  0xee   :  { %2474 = sst [smem:[#allocation180_spill]] %s1770_s22  ;;  %s1782_s20 = sld [smem:[#allocation8 + $0x38]] }
  0xef   :  { %2475 = sst [smem:[#allocation181_spill]] %s1772_s3  ;;  %s1784_s21 = sld [smem:[#allocation8 + $0x39]] }
  0xf0   :  { %2476 = sst [smem:[#allocation182_spill]] %s1774_s1  ;;  %s1786_s17 = sld [smem:[#allocation8 + $0x3a]] }
  0xf1   :  { %2477 = sst [smem:[#allocation183_spill]] %s1776_s8  ;;  %s1788_s23 = sld [smem:[#allocation8 + $0x3b]] }
  0xf2   :  { %2478 = sst [smem:[#allocation184_spill]] %s1778_s18  ;;  %s1790_s15 = sld [smem:[#allocation8 + $0x3c]] }
  0xf3   :  { %2479 = sst [smem:[#allocation185_spill]] %s1780_s19  ;;  %s1792_s22 = sld [smem:[#allocation8 + $0x3d]] }
  0xf4   :  { %2480 = sst [smem:[#allocation186_spill]] %s1782_s20  ;;  %s1794_s3 = sld [smem:[#allocation8 + $0x3e]] }
  0xf5   :  { %2481 = sst [smem:[#allocation187_spill]] %s1784_s21  ;;  %s1796_s1 = sld [smem:[#allocation8 + $0x3f]] }
  0xf6   :  { %2482 = sst [smem:[#allocation188_spill]] %s1786_s17  ;;  %s1798_s8 = sld [smem:[#allocation8 + $0x40]] }
  0xf7   :  { %2483 = sst [smem:[#allocation189_spill]] %s1788_s23  ;;  %s1800_s18 = sld [smem:[#allocation8 + $0x41]] }
  0xf8   :  { %2484 = sst [smem:[#allocation190_spill]] %s1790_s15  ;;  %s1802_s19 = sld [smem:[#allocation8 + $0x42]] }
  0xf9   :  { %2485 = sst [smem:[#allocation191_spill]] %s1792_s22  ;;  %s1804_s20 = sld [smem:[#allocation8 + $0x43]] }
  0xfa   :  { %2486 = sst [smem:[#allocation192_spill]] %s1794_s3  ;;  %s1806_s21 = sld [smem:[#allocation8 + $0x44]] }
  0xfb   :  { %2487 = sst [smem:[#allocation193_spill]] %s1796_s1  ;;  %s1808_s17 = sld [smem:[#allocation8 + $0x45]] }
  0xfc   :  { %2488 = sst [smem:[#allocation194_spill]] %s1798_s8  ;;  %s1810_s23 = sld [smem:[#allocation8 + $0x46]] }
  0xfd   :  { %2489 = sst [smem:[#allocation195_spill]] %s1800_s18  ;;  %s1812_s15 = sld [smem:[#allocation8 + $0x47]] }
  0xfe   :  { %2490 = sst [smem:[#allocation196_spill]] %s1802_s19  ;;  %s1814_s22 = sld [smem:[#allocation8 + $0x48]] }
  0xff   :  { %2491 = sst [smem:[#allocation197_spill]] %s1804_s20  ;;  %s1816_s3 = sld [smem:[#allocation8 + $0x49]] }
 0x100   :  { %2492 = sst [smem:[#allocation198_spill]] %s1806_s21  ;;  %s1818_s1 = sld [smem:[#allocation8 + $0x4a]] }
 0x101   :  { %2493 = sst [smem:[#allocation199_spill]] %s1808_s17  ;;  %s1820_s8 = sld [smem:[#allocation8 + $0x4b]] }
 0x102   :  { %2494 = sst [smem:[#allocation200_spill]] %s1810_s23  ;;  %s1822_s18 = sld [smem:[#allocation8 + $0x4c]] }
 0x103   :  { %2495 = sst [smem:[#allocation201_spill]] %s1812_s15  ;;  %s1824_s19 = sld [smem:[#allocation8 + $0x4d]] }
 0x104   :  { %2496 = sst [smem:[#allocation202_spill]] %s1814_s22  ;;  %s1826_s20 = sld [smem:[#allocation8 + $0x4e]] }
 0x105   :  { %2497 = sst [smem:[#allocation203_spill]] %s1816_s3  ;;  %s1828_s21 = sld [smem:[#allocation8 + $0x4f]] }
 0x106   :  { %2498 = sst [smem:[#allocation204_spill]] %s1818_s1  ;;  %s1830_s17 = sld [smem:[#allocation10]] }
 0x107   :  { %2499 = sst [smem:[#allocation205_spill]] %s1820_s8  ;;  %s1832_s23 = sld [smem:[#allocation10 + $0x1]] }
 0x108   :  { %2500 = sst [smem:[#allocation206_spill]] %s1822_s18  ;;  %s1834_s15 = sld [smem:[#allocation10 + $0x2]] }
 0x109   :  { %2501 = sst [smem:[#allocation207_spill]] %s1824_s19  ;;  %s1836_s22 = sld [smem:[#allocation10 + $0x3]] }
 0x10a   :  { %2502 = sst [smem:[#allocation208_spill]] %s1826_s20  ;;  %s1838_s3 = sld [smem:[#allocation10 + $0x4]] }
 0x10b   :  { %2503 = sst [smem:[#allocation209_spill]] %s1828_s21  ;;  %s1840_s1 = sld [smem:[#allocation10 + $0x5]] }
 0x10c   :  { %s1842_s8 = sld [smem:[#allocation10 + $0x6]]  ;;  %s1844_s18 = sld [smem:[#allocation10 + $0x7]] }
 0x10d   :  { %s1846_s19 = sld [smem:[#allocation10 + $0x8]]  ;;  %s1848_s20 = sld [smem:[#allocation10 + $0x9]] }
 0x10e   :  { %s1850_s21 = smov 0  }
 0x113   :  { %2504 = sst [smem:[#allocation210_spill]] %s1846_s19 }
 0x114   :  { %2505 = sst [smem:[#allocation211_spill]] %s1848_s20 }
 0x115 LB: > { %s2506_s2 = sld [smem:[#allocation18_spill]]  ;;  %s2507_s9 = sld [smem:[#allocation23_spill]]  ;;  %v308_v2 = vstv %s1590_s16  ;;  %v311_v3 = vstv %s1432_s28  ;;  %v316_v5 = vstv %s1592_s24  ;;  %v319_v6 = vstv %s1434_s29  ;;  %s1355_s21 = sphi %s1850_s21, %s296_s21  }
 0x116   : > { %s2508_s10 = sld [smem:[#allocation24_spill]]  ;;  %s2509_s11 = sld [smem:[#allocation25_spill]]  ;;  %v324_v8 = vstv %s1594_s25  ;;  %v327_v9 = vstv %s1436_s30  ;;  %v332_v37 = vstv %s1596_s26  ;;  %v340_v39 = vstv %s1598_s27 }
 0x117   : > { %s2510_s12 = sld [smem:[#allocation26_spill]]  ;;  %s2511_s6 = sld [smem:[#allocation19_spill]] }
 0x118   : > { %s2512_s13 = sld [smem:[#allocation27_spill]]  ;;  %s2513_s4 = sld [smem:[#allocation20_spill]] }
 0x119   : > { %s2514_s14 = sld [smem:[#allocation28_spill]]  ;;  %s2310_s20 = sshll.u32 %s1355_s21, 3 }
 0x11a   : > { %s1871_s19 = scalar_lea.vmem [#allocation11], %s2310_s20  ;;  %s2515_s7 = sld [smem:[#allocation21_spill]] }
 0x11b   : > { %v303_v0 = vstv %s2506_s2  ;;  %v305_v1 = vstv %s2507_s9  ;;  %v1874_v13 = vld [vmem:[%s1871_s19] sm:$0xff]  ;;  %v1877_v14 = vld [vmem:[%s1871_s19 + $0x10] sm:$0xff]  ;;  %s2516_s5 = sld [smem:[#allocation95_spill]]  ;;  %s2517_s0 = sld [smem:[#allocation29_spill]] }
 0x11c   : > { %v313_v4 = vstv %s2508_s10  ;;  %v321_v7 = vstv %s2509_s11  ;;  %v304_v17 = vmul.f32 %v303_v0, %v1874_v13  ;;  %v306_v18 = vmul.f32 %v1877_v14, %v305_v1  ;;  %s2518_s20 = sld [smem:[#allocation22_spill]]  ;;  %s2523_s10 = sld [smem:[#allocation96_spill]] }
 0x11d   : > { %v329_v10 = vstv %s2510_s12  ;;  %v335_v11 = vstv %s2511_s6  ;;  %v312_v19 = vmul.f32 %v311_v3, %v1874_v13  ;;  %v314_v20 = vmul.f32 %v1877_v14, %v313_v4  ;;  %s2519_s2 = sld [smem:[#allocation30_spill]]  ;;  %s2521_s6 = sld [smem:[#allocation132_spill]] }
 0x11e   : > { %v337_v12 = vstv %s2512_s13  ;;  %v343_v15 = vstv %s2513_s4  ;;  %v320_v21 = vmul.f32 %v319_v6, %v1874_v13  ;;  %v322_v22 = vmul.f32 %v1877_v14, %v321_v7  ;;  %s2520_s4 = sld [smem:[#allocation130_spill]]  ;;  %s2522_s9 = sld [smem:[#allocation134_spill]] }
 0x11f   : > { %v345_v16 = vstv %s2514_s14  ;;  %v328_v23 = vmul.f32 %v327_v9, %v1874_v13  ;;  %v330_v24 = vmul.f32 %v1877_v14, %v329_v10  ;;  %v307_v25 = vadd.f32 %v306_v18, %v304_v17  ;;  %s2524_s11 = sld [smem:[#allocation97_spill]]  ;;  %s2528_s12 = sld [smem:[#allocation133_spill]] }
 0x120   : > { %v315_v26 = vadd.f32 %v314_v20, %v312_v19  ;;  %v336_v27 = vmul.f32 %v335_v11, %v1874_v13  ;;  %v338_v28 = vmul.f32 %v1877_v14, %v337_v12  ;;  %v323_v29 = vadd.f32 %v322_v22, %v320_v21  ;;  %s2529_s13 = sld [smem:[#allocation135_spill]]  ;;  %s2585_s14 = sld [smem:[#allocation58_spill]] }
 0x121   : > { %v344_v30 = vmul.f32 %v343_v15, %v1874_v13  ;;  %v346_v31 = vmul.f32 %v1877_v14, %v345_v16  ;;  %v309_v32 = vadd.f32 %v308_v2, %v307_v25  ;;  %v331_v34 = vadd.f32 %v330_v24, %v328_v23 }
 0x122   : > { %v317_v33 = vadd.f32 %v316_v5, %v315_v26  ;;  %v351_v35 = vstv %s2515_s7  ;;  %v325_v36 = vadd.f32 %v324_v8, %v323_v29  ;;  %v339_v38 = vadd.f32 %v338_v28, %v336_v27  ;;  %s2525_s7 = sld [smem:[#allocation136_spill]] }
 0x123   : > { %v347_v40 = vadd.f32 %v346_v31, %v344_v30  ;;  %v348_v41 = vstv %s2516_s5  ;;  %v353_v42 = vstv %s2517_s0  ;;  %v310_v43 = vmax.f32 %v309_v32, 0.0  ;;  %s2526_s0 = sld [smem:[#allocation138_spill]]  ;;  %s2527_s5 = sld [smem:[#allocation131_spill]] }
 0x124   : > { %v318_v44 = vmax.f32 %v317_v33, 0.0  ;;  %v352_v45 = vmul.f32 %v351_v35, %v1874_v13  ;;  %v354_v46 = vmul.f32 %v1877_v14, %v353_v42  ;;  %v333_v47 = vadd.f32 %v332_v37, %v331_v34 }
 0x125   : > { %v359_v48 = vstv %s2518_s20  ;;  %v361_v49 = vstv %s2519_s2  ;;  %v326_v50 = vmax.f32 %v325_v36, 0.0  ;;  %v341_v51 = vadd.f32 %v340_v39, %v339_v38  ;;  %s2530_s2 = sld [smem:[#allocation140_spill]]  ;;  %s2531_s20 = sld [smem:[#allocation137_spill]] }
 0x126   : > { %v360_v52 = vmul.f32 %v359_v48, %v1874_v13  ;;  %v362_v53 = vmul.f32 %v1877_v14, %v361_v49  ;;  %v349_v54 = vadd.f32 %v348_v41, %v347_v40  ;;  %v367_v55 = vstv %s2520_s4  ;;  %s2533_s4 = sld [smem:[#allocation144_spill]] }
 0x127   : > { %v369_v56 = vstv %s2521_s6  ;;  %v372_v57 = vstv %s2522_s9  ;;  %v355_v58 = vadd.f32 %v354_v46, %v352_v45  ;;  %v368_v60 = vmul.f32 %v367_v55, %v310_v43  ;;  %s2532_s6 = sld [smem:[#allocation142_spill]]  ;;  %s2534_s9 = sld [smem:[#allocation31_spill]] }
 0x128   : > { %v363_v59 = vadd.f32 %v362_v53, %v360_v52  ;;  %v370_v61 = vmul.f32 %v369_v56, %v318_v44  ;;  %v356_v62 = vstv %s2523_s10  ;;  %v364_v63 = vstv %s2524_s11  ;;  %s2535_s10 = sld [smem:[#allocation139_spill]]  ;;  %s2536_s11 = sld [smem:[#allocation39_spill]] }
 0x129   : > { %v334_v0 = vmax.f32 %v333_v47, 0.0  ;;  %v373_v2 = vmul.f32 %v372_v57, %v326_v50  ;;  %v375_v3 = vstv %s2525_s7  ;;  %v342_v4 = vmax.f32 %v341_v51, 0.0  ;;  %s2537_s7 = sld [smem:[#allocation32_spill]] }
 0x12a   : > { %v371_v1 = vadd.f32 %v370_v61, %v368_v60  ;;  %v350_v5 = vmax.f32 %v349_v54, 0.0  ;;  %v357_v6 = vadd.f32 %v356_v62, %v355_v58  ;;  %v1910_v7 = vadd.f32 %v364_v63, %v363_v59 }
 0x12b   : > { %v378_v8 = vstv %s2526_s0  ;;  %v397_v9 = vstv %s2527_s5  ;;  %v399_v10 = vstv %s2528_s12  ;;  %v402_v11 = vstv %s2529_s13  ;;  %s2538_s0 = sld [smem:[#allocation141_spill]]  ;;  %s2539_s5 = sld [smem:[#allocation40_spill]] }
 0x12c   : > { %v374_v12 = vadd.f32 %v373_v2, %v371_v1  ;;  %v376_v15 = vmul.f32 %v375_v3, %v334_v0  ;;  %v398_v16 = vmul.f32 %v397_v9, %v310_v43  ;;  %v400_v17 = vmul.f32 %v399_v10, %v318_v44  ;;  %s2540_s12 = sld [smem:[#allocation33_spill]] }
 0x12d   : > { %v381_v18 = vstv %s2530_s2  ;;  %v403_v19 = vmul.f32 %v402_v11, %v326_v50  ;;  %v405_v20 = vstv %s2531_s20  ;;  %v358_v21 = vmax.f32 %v357_v6, 0.0  ;;  %s2541_s13 = sld [smem:[#allocation41_spill]]  ;;  %s2542_s2 = sld [smem:[#allocation34_spill]] }
 0x12e   : > { %v366_v22 = vmax.f32 %v1910_v7, 0.0  ;;  %v401_v23 = vadd.f32 %v400_v17, %v398_v16  ;;  %v379_v24 = vmul.f32 %v378_v8, %v342_v4  ;;  %v384_v25 = vstv %s2532_s6  ;;  %s2543_s20 = sld [smem:[#allocation143_spill]]  ;;  %s2544_s6 = sld [smem:[#allocation98_spill]] }
 0x12f   : > { %v387_v26 = vstv %s2533_s4  ;;  %v427_v27 = vstv %s2534_s9  ;;  %v377_v28 = vadd.f32 %v376_v15, %v374_v12  ;;  %v382_v29 = vmul.f32 %v381_v18, %v350_v5  ;;  %s2545_s4 = sld [smem:[#allocation99_spill]]  ;;  %s2546_s9 = sld [smem:[#allocation42_spill]] }
 0x130   : > { %v404_v30 = vadd.f32 %v403_v19, %v401_v23  ;;  %v406_v31 = vmul.f32 %v405_v20, %v334_v0  ;;  %v408_v32 = vstv %s2535_s10  ;;  %v428_v33 = vmul.f32 %v427_v27, %v1874_v13  ;;  %s2547_s10 = sld [smem:[#allocation145_spill]] }
 0x131   : > { %v429_v34 = vstv %s2536_s11  ;;  %v435_v35 = vstv %s2537_s7  ;;  %v385_v36 = vmul.f32 %v384_v25, %v358_v21  ;;  %v1926_v37 = vmul.f32 %v387_v26, %v366_v22  ;;  %s2548_s11 = sld [smem:[#allocation100_spill]]  ;;  %s2549_s7 = sld [smem:[#allocation35_spill]] }
 0x132   : > { %v430_v38 = vmul.f32 %v1877_v14, %v429_v34  ;;  %v436_v39 = vmul.f32 %v435_v35, %v1874_v13  ;;  %v411_v40 = vstv %s2538_s0  ;;  %v437_v41 = vstv %s2539_s5  ;;  %s2550_s0 = sld [smem:[#allocation43_spill]]  ;;  %s2551_s5 = sld [smem:[#allocation101_spill]] }
 0x133   : > { %v443_v42 = vstv %s2540_s12  ;;  %v445_v43 = vstv %s2541_s13  ;;  %v380_v44 = vadd.f32 %v379_v24, %v377_v28  ;;  %v407_v45 = vadd.f32 %v406_v31, %v404_v30  ;;  %s2552_s12 = sld [smem:[#allocation36_spill]] }
 0x134   : > { %v409_v46 = vmul.f32 %v408_v32, %v342_v4  ;;  %v438_v47 = vmul.f32 %v1877_v14, %v437_v41  ;;  %v431_v48 = vadd.f32 %v430_v38, %v428_v33  ;;  %v444_v49 = vmul.f32 %v443_v42, %v1874_v13  ;;  %s2553_s13 = sld [smem:[#allocation44_spill]] }
 0x135   : > { %v446_v50 = vmul.f32 %v1877_v14, %v445_v43  ;;  %v451_v51 = vstv %s2542_s2  ;;  %v412_v52 = vmul.f32 %v411_v40, %v350_v5  ;;  %v414_v53 = vstv %s2543_s20  ;;  %s2554_s2 = sld [smem:[#allocation37_spill]] }
 0x136   : > { %v432_v54 = vstv %s2544_s6  ;;  %v439_v55 = vadd.f32 %v438_v47, %v436_v39  ;;  %v440_v56 = vstv %s2545_s4  ;;  %v452_v58 = vmul.f32 %v451_v51, %v1874_v13  ;;  %s2555_s20 = sld [smem:[#allocation45_spill]]  ;;  %s2556_s6 = sld [smem:[#allocation102_spill]] }
 0x137   : > { %v447_v57 = vadd.f32 %v446_v50, %v444_v49  ;;  %v453_v59 = vstv %s2546_s9  ;;  %v383_v60 = vadd.f32 %v382_v29, %v380_v44  ;;  %v410_v61 = vadd.f32 %v409_v46, %v407_v45  ;;  %s2557_s4 = sld [smem:[#allocation103_spill]]  ;;  %s2558_s9 = sld [smem:[#allocation104_spill]] }
 0x138   : > { %v417_v62 = vstv %s2547_s10  ;;  %v448_v63 = vstv %s2548_s11  ;;  %v1945_v0 = vadd.f32 %v432_v54, %v431_v48  ;;  %v454_v1 = vmul.f32 %v1877_v14, %v453_v59  ;;  %s2559_s10 = sld [smem:[#allocation38_spill]] }
 0x139   : > { %v459_v2 = vstv %s2549_s7  ;;  %v461_v3 = vstv %s2550_s0  ;;  %v415_v4 = vmul.f32 %v414_v53, %v358_v21  ;;  %v1950_v5 = vadd.f32 %v440_v56, %v439_v55  ;;  %s2560_s11 = sld [smem:[#allocation46_spill]]  ;;  %s2561_s7 = sld [smem:[#allocation146_spill]] }
 0x13a   : > { %v456_v6 = vstv %s2551_s5  ;;  %v460_v7 = vmul.f32 %v459_v2, %v1874_v13  ;;  %v418_v8 = vmul.f32 %v417_v62, %v366_v22  ;;  %v1954_v9 = vadd.f32 %v448_v63, %v447_v57  ;;  %s2562_s0 = sld [smem:[#allocation148_spill]]  ;;  %s2563_s5 = sld [smem:[#allocation105_spill]] }
 0x13b   : > { %v455_v10 = vadd.f32 %v454_v1, %v452_v58  ;;  %v462_v11 = vmul.f32 %v1877_v14, %v461_v3  ;;  %v386_v12 = vadd.f32 %v385_v36, %v383_v60  ;;  %v413_v15 = vadd.f32 %v412_v52, %v410_v61 }
 0x13c   : > { %v467_v16 = vstv %s2552_s12  ;;  %v469_v17 = vstv %s2553_s13  ;;  %v434_v18 = vmax.f32 %v1945_v0, 0.0  ;;  %v442_v22 = vmax.f32 %v1950_v5, 0.0  ;;  %s2564_s12 = sld [smem:[#allocation150_spill]]  ;;  %s2565_s13 = sld [smem:[#allocation152_spill]] }
 0x13d   : > { %v1960_v19 = vadd.f32 %v456_v6, %v455_v10  ;;  %v468_v20 = vmul.f32 %v467_v16, %v1874_v13  ;;  %v470_v21 = vmul.f32 %v1877_v14, %v469_v17  ;;  %v463_v23 = vadd.f32 %v462_v11, %v460_v7 }
 0x13e   : > { %v475_v24 = vstv %s2554_s2  ;;  %v477_v25 = vstv %s2555_s20  ;;  %v450_v26 = vmax.f32 %v1954_v9, 0.0  ;;  %v464_v27 = vstv %s2556_s6  ;;  %s2566_s2 = sld [smem:[#allocation154_spill]]  ;;  %s2567_s20 = sld [smem:[#allocation147_spill]] }
 0x13f   : > { %v472_v28 = vstv %s2557_s4  ;;  %v476_v29 = vmul.f32 %v475_v24, %v1874_v13  ;;  %v478_v30 = vmul.f32 %v1877_v14, %v477_v25  ;;  %v480_v31 = vstv %s2558_s9  ;;  %s2568_s6 = sld [smem:[#allocation156_spill]]  ;;  %s2569_s4 = sld [smem:[#allocation149_spill]] }
 0x140   : > { %v483_v32 = vstv %s2559_s10  ;;  %v485_v33 = vstv %s2560_s11  ;;  %v458_v34 = vmax.f32 %v1960_v19, 0.0  ;;  %v471_v35 = vadd.f32 %v470_v21, %v468_v20  ;;  %s2570_s9 = sld [smem:[#allocation158_spill]]  ;;  %s2571_s10 = sld [smem:[#allocation160_spill]] }
 0x141   : > { %v484_v36 = vmul.f32 %v483_v32, %v1874_v13  ;;  %v486_v38 = vmul.f32 %v1877_v14, %v485_v33  ;;  %v1978_v39 = vadd.f32 %v464_v27, %v463_v23  ;;  %v479_v40 = vadd.f32 %v478_v30, %v476_v29  ;;  %s2572_s11 = sld [smem:[#allocation151_spill]] }
 0x142   : > { %v491_v41 = vstv %s2561_s7  ;;  %v493_v42 = vstv %s2562_s0  ;;  %v488_v44 = vstv %s2563_s5  ;;  %v389_v47 = vadd.f32 %v1926_v37, %v386_v12  ;;  %s2573_s7 = sld [smem:[#allocation153_spill]]  ;;  %s2574_s0 = sld [smem:[#allocation47_spill]] }
 0x143   : > { %v487_v43 = vadd.f32 %v486_v38, %v484_v36  ;;  %v492_v45 = vmul.f32 %v491_v41, %v434_v18  ;;  %v494_v46 = vmul.f32 %v493_v42, %v442_v22  ;;  %v416_v48 = vadd.f32 %v415_v4, %v413_v15  ;;  %s2575_s5 = sld [smem:[#allocation55_spill]] }
 0x144   : > { %v496_v49 = vstv %s2564_s12  ;;  %v499_v50 = vstv %s2565_s13  ;;  %v473_v51 = vadd.f32 %v472_v28, %v471_v35  ;;  %v481_v52 = vadd.f32 %v480_v31, %v479_v40  ;;  %s2576_s12 = sld [smem:[#allocation48_spill]]  ;;  %s2577_s13 = sld [smem:[#allocation155_spill]] }
 0x145   : > { %v495_v53 = vadd.f32 %v494_v46, %v492_v45  ;;  %v497_v54 = vmul.f32 %v496_v49, %v450_v26  ;;  %v390_v55 = vstv %s1830_s17  ;;  %v466_v56 = vmax.f32 %v1978_v39, 0.0 }
 0x146   : > { %v1988_v57 = vadd.f32 %v488_v44, %v487_v43  ;;  %v500_v59 = vmul.f32 %v499_v50, %v458_v34  ;;  %v502_v37 = vstv %s2566_s2  ;;  %v420_v60 = vstv %s1832_s23  ;;  %s2578_s2 = sld [smem:[#allocation157_spill]] }
 0x147   : > { %v498_v58 = vadd.f32 %v497_v54, %v495_v53  ;;  %v521_v61 = vstv %s2567_s20  ;;  %v391_v62 = vadd.f32 %v390_v55, %v389_v47  ;;  %v419_v63 = vadd.f32 %v418_v8, %v416_v48  ;;  %s2579_s20 = sld [smem:[#allocation159_spill]] }
 0x148   : > { %v474_v0 = vmax.f32 %v473_v51, 0.0  ;;  %v482_v1 = vmax.f32 %v481_v52, 0.0  ;;  %v490_v2 = vmax.f32 %v1988_v57, 0.0  ;;  %v503_v3 = vmul.f32 %v502_v37, %v466_v56 }
 0x149   : > { %v505_v4 = vstv %s2568_s6  ;;  %v523_v5 = vstv %s2569_s4  ;;  %v501_v6 = vadd.f32 %v500_v59, %v498_v58  ;;  %v508_v7 = vstv %s2570_s9  ;;  %s2580_s6 = sld [smem:[#allocation56_spill]]  ;;  %s2581_s4 = sld [smem:[#allocation49_spill]] }
 0x14a   : > { %v522_v9 = vmul.f32 %v521_v61, %v434_v18  ;;  %v524_v10 = vmul.f32 %v523_v5, %v442_v22  ;;  %v511_v11 = vstv %s2571_s10  ;;  %v526_v12 = vstv %s2572_s11  ;;  %s2582_s9 = sld [smem:[#allocation57_spill]]  ;;  %s2583_s10 = sld [smem:[#allocation50_spill]] }
 0x14b   : > { %v2001_v8 = vmul.f32 0.5, %v391_v62  ;;  %v2003_v15 = vadd.f32 %v420_v60, %v419_v63  ;;  %v506_v16 = vmul.f32 %v505_v4, %v474_v0  ;;  %v509_v17 = vmul.f32 %v508_v7, %v482_v1  ;;  %s2584_s11 = sld [smem:[#allocation106_spill]] }
 0x14c   : > { %v504_v20 = vadd.f32 %v503_v3, %v501_v6  ;;  %v2007_v21 = vmul.f32 %v511_v11, %v490_v2  ;;  %v525_v18 = vadd.f32 %v524_v10, %v522_v9  ;;  %v527_v23 = vmul.f32 %v526_v12, %v450_v26 }
 0x14d   : > { %v529_v22 = vstv %s2573_s7  ;;  %v551_v24 = vstv %s2574_s0  ;;  %v553_v25 = vstv %s2575_s5  ;;  %v559_v27 = vstv %s2576_s12  ;;  %s2586_s7 = sld [smem:[#allocation161_spill]]  ;;  %s2587_s0 = sld [smem:[#allocation107_spill]] }
 0x14e   : > { %v532_v28 = vstv %s2577_s13  ;;  %v535_v29 = vstv %s2578_s2  ;;  %v552_v30 = vmul.f32 %v551_v24, %v1874_v13  ;;  %v554_v31 = vmul.f32 %v1877_v14, %v553_v25  ;;  %s2588_s5 = sld [smem:[#allocation108_spill]]  ;;  %s2589_s12 = sld [smem:[#allocation51_spill]] }
 0x14f   : > { %v538_v32 = vstv %s2579_s20  ;;  %v560_v33 = vmul.f32 %v559_v27, %v1874_v13  ;;  %v561_v35 = vstv %s2580_s6  ;;  %v567_v36 = vstv %s2581_s4  ;;  %s2590_s13 = sld [smem:[#allocation59_spill]]  ;;  %s2591_s2 = sld [smem:[#allocation109_spill]] }
 0x150   : > { %v507_v26 = vadd.f32 %v506_v16, %v504_v20  ;;  %v528_v38 = vadd.f32 %v527_v23, %v525_v18  ;;  %v530_v39 = vmul.f32 %v529_v22, %v458_v34  ;;  %v562_v40 = vmul.f32 %v1877_v14, %v561_v35  ;;  %s2592_s20 = sld [smem:[#allocation52_spill]]  ;;  %s2593_s6 = sld [smem:[#allocation110_spill]] }
 0x151   : > { %v533_v41 = vmul.f32 %v532_v28, %v466_v56  ;;  %v568_v42 = vmul.f32 %v567_v36, %v1874_v13  ;;  %v569_v43 = vstv %s2582_s9  ;;  %v575_v44 = vstv %s2583_s10  ;;  %s2594_s4 = sld [smem:[#allocation60_spill]]  ;;  %s2595_s9 = sld [smem:[#allocation111_spill]] }
 0x152   : > { %v536_v45 = vmul.f32 %v535_v29, %v474_v0  ;;  %v2027_v46 = vmul.f32 %v538_v32, %v482_v1  ;;  %v555_v47 = vadd.f32 %v554_v31, %v552_v30  ;;  %v556_v48 = vstv %s2584_s11  ;;  %s2597_s10 = sld [smem:[#allocation61_spill]]  ;;  %s2598_s11 = sld [smem:[#allocation54_spill]] }
 0x153   : > { %v563_v19 = vadd.f32 %v562_v40, %v560_v33  ;;  %v570_v34 = vmul.f32 %v1877_v14, %v569_v43  ;;  %v576_v49 = vmul.f32 %v575_v44, %v1874_v13  ;;  %v577_v50 = vstv %s2585_s14  ;;  %s2596_s14 = sld [smem:[#allocation53_spill]] }
 0x154   : > { %v531_v51 = vadd.f32 %v530_v39, %v528_v38  ;;  %v541_v52 = vstv %s2586_s7  ;;  %v564_v53 = vstv %s2587_s0  ;;  %v572_v54 = vstv %s2588_s5  ;;  %s2599_s7 = sld [smem:[#allocation112_spill]]  ;;  %s2600_s0 = sld [smem:[#allocation62_spill]] }
 0x155   : > { %v571_v55 = vadd.f32 %v570_v34, %v568_v42  ;;  %v578_v56 = vmul.f32 %v1877_v14, %v577_v50  ;;  %v583_v58 = vstv %s2589_s12  ;;  %v585_v59 = vstv %s2590_s13  ;;  %s2601_s5 = sld [smem:[#allocation162_spill]]  ;;  %s2602_s12 = sld [smem:[#allocation164_spill]] }
 0x156   : > { %v2039_v37 = vadd.f32 %v556_v48, %v555_v47  ;;  %v580_v60 = vstv %s2591_s2  ;;  %v584_v61 = vmul.f32 %v583_v58, %v1874_v13  ;;  %v586_v62 = vmul.f32 %v1877_v14, %v585_v59  ;;  %s2603_s13 = sld [smem:[#allocation113_spill]]  ;;  %s2604_s2 = sld [smem:[#allocation166_spill]] }
 0x157   : > { %v2044_v63 = vadd.f32 %v564_v53, %v563_v19  ;;  %v2046_v0 = vadd.f32 %v572_v54, %v571_v55  ;;  %v579_v1 = vadd.f32 %v578_v56, %v576_v49  ;;  %v591_v3 = vstv %s2592_s20  ;;  %s2605_s20 = sld [smem:[#allocation168_spill]] }
 0x158   : > { %v587_v4 = vadd.f32 %v586_v62, %v584_v61  ;;  %v588_v5 = vstv %s2593_s6  ;;  %v592_v6 = vmul.f32 %v591_v3, %v1874_v13  ;;  %v593_v7 = vstv %s2594_s4  ;;  %s2606_s6 = sld [smem:[#allocation170_spill]]  ;;  %s2607_s4 = sld [smem:[#allocation172_spill]] }
 0x159   : > { %v510_v9 = vadd.f32 %v509_v17, %v507_v26  ;;  %v534_v10 = vadd.f32 %v533_v41, %v531_v51  ;;  %v581_v11 = vadd.f32 %v580_v60, %v579_v1  ;;  %v594_v12 = vmul.f32 %v1877_v14, %v593_v7 }
 0x15a   : > { %v558_v16 = vmax.f32 %v2039_v37, 0.0  ;;  %v596_v20 = vstv %s2595_s9  ;;  %v599_v18 = vstv %s2596_s14  ;;  %v601_v23 = vstv %s2597_s10  ;;  %s2608_s9 = sld [smem:[#allocation163_spill]]  ;;  %s2609_s14 = sld [smem:[#allocation165_spill]] }
 0x15b   : > { %v2057_v22 = vadd.f32 %v588_v5, %v587_v4  ;;  %v595_v24 = vadd.f32 %v594_v12, %v592_v6  ;;  %v600_v25 = vmul.f32 %v599_v18, %v1874_v13  ;;  %v602_v17 = vmul.f32 %v1877_v14, %v601_v23  ;;  %s2610_s10 = sld [smem:[#allocation167_spill]] }
 0x15c   : > { %v566_v27 = vmax.f32 %v2044_v63, 0.0  ;;  %v574_v28 = vmax.f32 %v2046_v0, 0.0  ;;  %v582_v29 = vmax.f32 %v581_v11, 0.0  ;;  %v607_v30 = vstv %s2598_s11  ;;  %s2611_s11 = sld [smem:[#allocation174_spill]] }
 0x15d   : > { %v603_v31 = vadd.f32 %v602_v17, %v600_v25  ;;  %v604_v32 = vstv %s2599_s7  ;;  %v608_v33 = vmul.f32 %v607_v30, %v1874_v13  ;;  %v609_v35 = vstv %s2600_s0  ;;  %s2612_s7 = sld [smem:[#allocation169_spill]]  ;;  %s2613_s0 = sld [smem:[#allocation176_spill]] }
 0x15e   : > { %v2067_v36 = vadd.f32 %v596_v20, %v595_v24  ;;  %v610_v26 = vmul.f32 %v1877_v14, %v609_v35  ;;  %v615_v38 = vstv %s2601_s5  ;;  %v617_v39 = vstv %s2602_s12  ;;  %s2614_s5 = sld [smem:[#allocation171_spill]]  ;;  %s2615_s12 = sld [smem:[#allocation173_spill]] }
 0x15f   : > { %v537_v40 = vadd.f32 %v536_v45, %v534_v10  ;;  %v590_v41 = vmax.f32 %v2057_v22, 0.0  ;;  %v612_v42 = vstv %s2603_s13  ;;  %v616_v43 = vmul.f32 %v615_v38, %v558_v16  ;;  %s2616_s13 = sld [smem:[#allocation63_spill]] }
 0x160   : > { %v611_v44 = vadd.f32 %v610_v26, %v608_v33  ;;  %v618_v47 = vmul.f32 %v617_v39, %v566_v27  ;;  %v620_v48 = vstv %s2604_s2  ;;  %v623_v19 = vstv %s2605_s20  ;;  %s2617_s2 = sld [smem:[#allocation71_spill]] }
 0x161   : > { %1223 = vtanh.f32 %v2001_v8  ;;  %v422_v34 = vmul.f32 0.5, %v2003_v15  ;;  %v2078_v49 = vadd.f32 %v604_v32, %v603_v31  ;;  %v621_v50 = vmul.f32 %v620_v48, %v574_v28  ;;  %s2618_s20 = sld [smem:[#allocation175_spill]] }
 0x162   : > { %v598_v45 = vmax.f32 %v2067_v36, 0.0  ;;  %v619_v51 = vadd.f32 %v618_v47, %v616_v43  ;;  %v624_v53 = vmul.f32 %v623_v19, %v582_v29  ;;  %v626_v54 = vstv %s2606_s6  ;;  %s2619_s6 = sld [smem:[#allocation64_spill]] }
 0x163   : > { %v514_v55 = vstv %s1834_s15  ;;  %v542_v56 = vmul.f32 %v541_v52, %v490_v2  ;;  %v2085_v58 = vadd.f32 %v612_v42, %v611_v44  ;;  %v629_v8 = vstv %s2607_s4  ;;  %s2620_s4 = sld [smem:[#allocation72_spill]] }
 0x164   : > { %v513_v15 = vadd.f32 %v2007_v21, %v510_v9  ;;  %v540_v59 = vadd.f32 %v2027_v46, %v537_v40  ;;  %v622_v37 = vadd.f32 %v621_v50, %v619_v51  ;;  %v627_v60 = vmul.f32 %v626_v54, %v590_v41 }
 0x165   : > { %v606_v61 = vmax.f32 %v2078_v49, 0.0  ;;  %v645_v62 = vstv %s2608_s9  ;;  %v647_v63 = vstv %s2609_s14  ;;  %v650_v57 = vstv %s2610_s10  ;;  %s2621_s9 = sld [smem:[#allocation114_spill]]  ;;  %s2622_s14 = sld [smem:[#allocation65_spill]] }
 0x166   : > { %v625_v2 = vadd.f32 %v624_v53, %v622_v37  ;;  %v630_v52 = vmul.f32 %v629_v8, %v598_v45  ;;  %v646_v0 = vmul.f32 %v645_v62, %v558_v16  ;;  %v648_v1 = vmul.f32 %v647_v63, %v566_v27  ;;  %s2623_s10 = sld [smem:[#allocation73_spill]] }
 0x167   : > { %v614_v3 = vmax.f32 %v2085_v58, 0.0  ;;  %v632_v4 = vstv %s2611_s11  ;;  %v651_v21 = vmul.f32 %v650_v57, %v574_v28  ;;  %v653_v46 = vstv %s2612_s7  ;;  %s2624_s11 = sld [smem:[#allocation115_spill]]  ;;  %s2625_s7 = sld [smem:[#allocation177_spill]] }
 0x168   : > { %v628_v5 = vadd.f32 %v627_v60, %v625_v2  ;;  %v635_v6 = vstv %s2613_s0  ;;  %v649_v7 = vadd.f32 %v648_v1, %v646_v0  ;;  %v654_v9 = vmul.f32 %v653_v46, %v582_v29  ;;  %s2626_s0 = sld [smem:[#allocation66_spill]] }
 0x169   : > { %1225 = vtanh.f32 %v422_v34  ;;  %v544_v10 = vstv %s1836_s22  ;;  %v656_v11 = vstv %s2614_s5  ;;  %v2100_v12 = vadd.f32 %v514_v55, %v513_v15  ;;  %s2627_s5 = sld [smem:[#allocation116_spill]] }
 0x16a   : > { %v631_v16 = vadd.f32 %v630_v52, %v628_v5  ;;  %v633_v20 = vmul.f32 %v632_v4, %v606_v61  ;;  %v652_v18 = vadd.f32 %v651_v21, %v649_v7  ;;  %v543_v22 = vadd.f32 %v542_v56, %v540_v59 }
 0x16b   : > { %v2102_v23 = vpop.eup %1223  ;;  %v636_v24 = vmul.f32 %v635_v6, %v614_v3  ;;  %v659_v25 = vstv %s2615_s12  ;;  %v675_v17 = vstv %s2616_s13  ;;  %v657_v28 = vmul.f32 %v656_v11, %v590_v41  ;;  %s2628_s12 = sld [smem:[#allocation74_spill]]  ;;  %s2629_s13 = sld [smem:[#allocation117_spill]] }
 0x16c   : > { %v655_v27 = vadd.f32 %v654_v9, %v652_v18  ;;  %v676_v29 = vmul.f32 %v675_v17, %v1874_v13  ;;  %v677_v30 = vstv %s2617_s2  ;;  %v662_v31 = vstv %s2618_s20  ;;  %s2630_s2 = sld [smem:[#allocation67_spill]] }
 0x16d   : > { %v678_v32 = vmul.f32 %v1877_v14, %v677_v30  ;;  %v683_v33 = vstv %s2619_s6  ;;  %v685_v35 = vstv %s2620_s4  ;;  %v634_v36 = vadd.f32 %v633_v20, %v631_v16  ;;  %s2631_s20 = sld [smem:[#allocation75_spill]]  ;;  %s2632_s6 = sld [smem:[#allocation118_spill]] }
 0x16e   : > { %v660_v26 = vmul.f32 %v659_v25, %v598_v45  ;;  %v684_v38 = vmul.f32 %v683_v33, %v1874_v13  ;;  %v686_v39 = vmul.f32 %v1877_v14, %v685_v35  ;;  %v680_v41 = vstv %s2621_s9  ;;  %s2633_s4 = sld [smem:[#allocation68_spill]] }
 0x16f   : > { %v679_v40 = vadd.f32 %v678_v32, %v676_v29  ;;  %v691_v42 = vstv %s2622_s14  ;;  %v693_v43 = vstv %s2623_s10  ;;  %v658_v44 = vadd.f32 %v657_v28, %v655_v27  ;;  %s2634_s9 = sld [smem:[#allocation76_spill]]  ;;  %s2635_s14 = sld [smem:[#allocation119_spill]] }
 0x170   : > { %v687_v47 = vadd.f32 %v686_v39, %v684_v38  ;;  %v688_v48 = vstv %s2624_s11  ;;  %v692_v19 = vmul.f32 %v691_v42, %v1874_v13  ;;  %v2119_v34 = vadd.f32 %v544_v10, %v543_v22  ;;  %s2636_s10 = sld [smem:[#allocation69_spill]] }
 0x171   : > { %v665_v49 = vstv %s2625_s7  ;;  %v694_v50 = vmul.f32 %v1877_v14, %v693_v43  ;;  %v699_v45 = vstv %s2626_s0  ;;  %v638_v51 = vstv %s1838_s3  ;;  %s2637_s11 = sld [smem:[#allocation77_spill]]  ;;  %s2638_s7 = sld [smem:[#allocation120_spill]] }
 0x172   : > { %v2125_v53 = vadd.f32 %v680_v41, %v679_v40  ;;  %v696_v54 = vstv %s2627_s5  ;;  %v700_v55 = vmul.f32 %v699_v45, %v1874_v13  ;;  %v663_v58 = vmul.f32 %v662_v31, %v606_v61  ;;  %s2639_s0 = sld [smem:[#allocation70_spill]] }
 0x173   : > { %v2129_v56 = vpop.eup %1225  ;;  %v2131_v8 = vadd.f32 %v688_v48, %v687_v47  ;;  %v695_v15 = vadd.f32 %v694_v50, %v692_v19  ;;  %v701_v59 = vstv %s2628_s12  ;;  %v637_v37 = vadd.f32 %v636_v24, %v634_v36  ;;  %s2640_s5 = sld [smem:[#allocation78_spill]]  ;;  %s2641_s12 = sld [smem:[#allocation121_spill]] }
 0x174   : > { %v661_v60 = vadd.f32 %v660_v26, %v658_v44  ;;  %v666_v62 = vmul.f32 %v665_v49, %v614_v3  ;;  %v702_v63 = vmul.f32 %v1877_v14, %v701_v59  ;;  %v704_v2 = vstv %s2629_s13  ;;  %s2642_s13 = sld [smem:[#allocation178_spill]] }
 0x175   : > { %v2135_v57 = vadd.f32 %v696_v54, %v695_v15  ;;  %v707_v52 = vstv %s2630_s2  ;;  %v709_v0 = vstv %s2631_s20  ;;  %v682_v61 = vmax.f32 %v2125_v53, 0.0  ;;  %s2643_s2 = sld [smem:[#allocation180_spill]]  ;;  %s2644_s20 = sld [smem:[#allocation182_spill]] }
 0x176   : > { %v703_v1 = vadd.f32 %v702_v63, %v700_v55  ;;  %v708_v4 = vmul.f32 %v707_v52, %v1874_v13  ;;  %v710_v21 = vmul.f32 %v1877_v14, %v709_v0  ;;  %v690_v3 = vmax.f32 %v2131_v8, 0.0 }
 0x177   : > { %v712_v46 = vstv %s2632_s6  ;;  %v715_v5 = vstv %s2633_s4  ;;  %v717_v6 = vstv %s2634_s9  ;;  %v698_v7 = vmax.f32 %v2135_v57, 0.0  ;;  %s2645_s6 = sld [smem:[#allocation184_spill]]  ;;  %s2646_s4 = sld [smem:[#allocation186_spill]] }
 0x178   : > { %v2148_v9 = vadd.f32 %v704_v2, %v703_v1  ;;  %v711_v10 = vadd.f32 %v710_v21, %v708_v4  ;;  %v716_v11 = vmul.f32 %v715_v5, %v1874_v13  ;;  %v718_v16 = vmul.f32 %v1877_v14, %v717_v6  ;;  %s2647_s9 = sld [smem:[#allocation188_spill]] }
 0x179   : > { %v720_v20 = vstv %s2635_s14  ;;  %v723_v18 = vstv %s2636_s10  ;;  %v725_v22 = vstv %s2637_s11  ;;  %v728_v27 = vstv %s2638_s7  ;;  %s2648_s14 = sld [smem:[#allocation190_spill]]  ;;  %s2649_s10 = sld [smem:[#allocation179_spill]] }
 0x17a   : > { %v706_v24 = vmax.f32 %v2148_v9, 0.0  ;;  %v2156_v25 = vadd.f32 %v712_v46, %v711_v10  ;;  %v724_v17 = vmul.f32 %v723_v18, %v1874_v13  ;;  %v719_v28 = vadd.f32 %v718_v16, %v716_v11  ;;  %s2650_s11 = sld [smem:[#allocation192_spill]]  ;;  %s2651_s7 = sld [smem:[#allocation181_spill]] }
 0x17b   : > { %v726_v29 = vmul.f32 %v1877_v14, %v725_v22  ;;  %v731_v30 = vstv %s2639_s0  ;;  %v733_v31 = vstv %s2640_s5  ;;  %v736_v36 = vstv %s2641_s12  ;;  %s2652_s0 = sld [smem:[#allocation183_spill]]  ;;  %s2653_s5 = sld [smem:[#allocation185_spill]] }
 0x17c   : > { %v714_v32 = vmax.f32 %v2156_v25, 0.0  ;;  %v732_v33 = vmul.f32 %v731_v30, %v1874_v13  ;;  %v734_v35 = vmul.f32 %v1877_v14, %v733_v31  ;;  %v721_v26 = vadd.f32 %v720_v20, %v719_v28  ;;  %s2654_s12 = sld [smem:[#allocation187_spill]] }
 0x17d   : > { %v727_v38 = vadd.f32 %v726_v29, %v724_v17  ;;  %v739_v39 = vstv %s2642_s13  ;;  %v741_v40 = vstv %s2643_s2  ;;  %v744_v44 = vstv %s2644_s20  ;;  %s2655_s13 = sld [smem:[#allocation189_spill]]  ;;  %s2656_s2 = sld [smem:[#allocation191_spill]] }
 0x17e   : > { %v735_v41 = vadd.f32 %v734_v35, %v732_v33  ;;  %v740_v42 = vmul.f32 %v739_v39, %v682_v61  ;;  %v742_v43 = vmul.f32 %v741_v40, %v690_v3  ;;  %v664_v47 = vadd.f32 %v663_v58, %v661_v60  ;;  %s2657_s20 = sld [smem:[#allocation79_spill]] }
 0x17f   : > { %v722_v48 = vmax.f32 %v721_v26, 0.0  ;;  %v729_v19 = vadd.f32 %v728_v27, %v727_v38  ;;  %v745_v49 = vmul.f32 %v744_v44, %v698_v7  ;;  %v747_v53 = vstv %s2645_s6  ;;  %s2658_s6 = sld [smem:[#allocation87_spill]] }
 0x180   : > { %v2170_v50 = vadd.f32 %v736_v36, %v735_v41  ;;  %v743_v45 = vadd.f32 %v742_v43, %v740_v42  ;;  %v750_v54 = vstv %s2646_s4  ;;  %v516_v55 = vmul.f32 0.5, %v2100_v12  ;;  %s2659_s4 = sld [smem:[#allocation80_spill]] }
 0x181   : > { %v546_v8 = vmul.f32 0.5, %v2119_v34  ;;  %v730_v15 = vmax.f32 %v729_v19, 0.0  ;;  %v748_v59 = vmul.f32 %v747_v53, %v706_v24  ;;  %v751_v60 = vmul.f32 %v750_v54, %v714_v32 }
 0x182   : > { %v746_v58 = vadd.f32 %v745_v49, %v743_v45  ;;  %v753_v63 = vstv %s2647_s9  ;;  %v756_v57 = vstv %s2648_s14  ;;  %v639_v2 = vadd.f32 %v638_v51, %v637_v37  ;;  %s2660_s9 = sld [smem:[#allocation193_spill]]  ;;  %s2661_s14 = sld [smem:[#allocation88_spill]] }
 0x183   : > { %v667_v52 = vadd.f32 %v666_v62, %v664_v47  ;;  %v668_v0 = vstv %s1840_s1  ;;  %v738_v12 = vmax.f32 %v2170_v50, 0.0  ;;  %v754_v4 = vmul.f32 %v753_v63, %v722_v48 }
 0x184   : > { %v749_v1 = vadd.f32 %v748_v59, %v746_v58  ;;  %v757_v34 = vmul.f32 %v756_v57, %v730_v15  ;;  %v769_v21 = vstv %s2649_s10  ;;  %v759_v46 = vstv %s2650_s11  ;;  %s2662_s10 = sld [smem:[#allocation81_spill]]  ;;  %s2663_s11 = sld [smem:[#allocation122_spill]] }
 0x185   : > { %v770_v5 = vmul.f32 %v769_v21, %v682_v61  ;;  %v771_v6 = vstv %s2651_s7  ;;  %v774_v9 = vstv %s2652_s0  ;;  %v777_v20 = vstv %s2653_s5  ;;  %s2664_s7 = sld [smem:[#allocation89_spill]]  ;;  %s2665_s0 = sld [smem:[#allocation82_spill]] }
 0x186   : > { %v752_v10 = vadd.f32 %v751_v60, %v749_v1  ;;  %v772_v11 = vmul.f32 %v771_v6, %v690_v3  ;;  %v775_v16 = vmul.f32 %v774_v9, %v698_v7  ;;  %1227 = vtanh.f32 %v516_v55  ;;  %s2666_s5 = sld [smem:[#allocation90_spill]] }
 0x187   : > { %v780_v51 = vstv %s2654_s12  ;;  %v783_v37 = vstv %s2655_s13  ;;  %v760_v18 = vmul.f32 %v759_v46, %v738_v12  ;;  %v778_v25 = vmul.f32 %v777_v20, %v706_v24  ;;  %s2667_s12 = sld [smem:[#allocation123_spill]]  ;;  %s2668_s13 = sld [smem:[#allocation124_spill]] }
 0x188   : > { %v755_v62 = vadd.f32 %v754_v4, %v752_v10  ;;  %v773_v22 = vadd.f32 %v772_v11, %v770_v5  ;;  %1229 = vtanh.f32 %v546_v8  ;;  %v2189_v61 = vmul.f32 0.5, %v639_v2 }
 0x189   : > { %v2191_v17 = vadd.f32 %v668_v0, %v667_v52  ;;  %v762_v3 = vstv %s1842_s8  ;;  %v781_v28 = vmul.f32 %v780_v51, %v714_v32  ;;  %v784_v29 = vmul.f32 %v783_v37, %v722_v48 }
 0x18a   : > { %v758_v7 = vadd.f32 %v757_v34, %v755_v62  ;;  %v776_v27 = vadd.f32 %v775_v16, %v773_v22  ;;  %v786_v30 = vstv %s2656_s2  ;;  %v799_v31 = vstv %s2657_s20  ;;  %s2669_s2 = sld [smem:[#allocation83_spill]] }
 0x18b   : > { %v801_v33 = vstv %s2658_s6  ;;  %v807_v35 = vstv %s2659_s4  ;;  %v800_v26 = vmul.f32 %v799_v31, %v1874_v13  ;;  %v789_v39 = vstv %s2660_s9  ;;  %s2670_s20 = sld [smem:[#allocation91_spill]]  ;;  %s2671_s6 = sld [smem:[#allocation125_spill]] }
 0x18c   : > { %v761_v24 = vadd.f32 %v760_v18, %v758_v7  ;;  %v779_v36 = vadd.f32 %v778_v25, %v776_v27  ;;  %v802_v38 = vmul.f32 %v1877_v14, %v801_v33  ;;  %v808_v40 = vmul.f32 %v807_v35, %v1874_v13  ;;  %s2672_s4 = sld [smem:[#allocation126_spill]]  ;;  %s2673_s9 = sld [smem:[#allocation84_spill]] }
 0x18d   : > { %v809_v41 = vstv %s2661_s14  ;;  %v815_v32 = vstv %s2662_s10  ;;  %v787_v43 = vmul.f32 %v786_v30, %v730_v15  ;;  %v804_v48 = vstv %s2663_s11  ;;  %s2674_s14 = sld [smem:[#allocation92_spill]]  ;;  %s2675_s10 = sld [smem:[#allocation127_spill]] }
 0x18e   : > { %v782_v42 = vadd.f32 %v781_v28, %v779_v36  ;;  %v803_v44 = vadd.f32 %v802_v38, %v800_v26  ;;  %v810_v47 = vmul.f32 %v1877_v14, %v809_v41  ;;  %v816_v19 = vmul.f32 %v815_v32, %v1874_v13  ;;  %s2676_s11 = sld [smem:[#allocation85_spill]] }
 0x18f   : > { %v817_v49 = vstv %s2664_s7  ;;  %v823_v50 = vstv %s2665_s0  ;;  %v763_v45 = vadd.f32 %v762_v3, %v761_v24  ;;  %v790_v54 = vmul.f32 %v789_v39, %v738_v12  ;;  %s2677_s7 = sld [smem:[#allocation93_spill]]  ;;  %s2678_s0 = sld [smem:[#allocation128_spill]] }
 0x190   : > { %v785_v53 = vadd.f32 %v784_v29, %v782_v42  ;;  %v792_v55 = vstv %s1844_s18  ;;  %v2210_v8 = vpop.eup %1227  ;;  %v811_v15 = vadd.f32 %v810_v47, %v808_v40  ;;  %v818_v59 = vmul.f32 %v1877_v14, %v817_v49 }
 0x191   : > { %v824_v58 = vmul.f32 %v823_v50, %v1874_v13  ;;  %v825_v60 = vstv %s2666_s5  ;;  %v2215_v57 = vadd.f32 %v804_v48, %v803_v44  ;;  %v812_v2 = vstv %s2667_s12  ;;  %s2679_s5 = sld [smem:[#allocation86_spill]] }
 0x192   : > { %v788_v63 = vadd.f32 %v787_v43, %v785_v53  ;;  %v820_v52 = vstv %s2668_s13  ;;  %v2219_v0 = vpop.eup %1229  ;;  %v819_v12 = vadd.f32 %v818_v59, %v816_v19  ;;  %v826_v1 = vmul.f32 %v1877_v14, %v825_v60  ;;  %s2680_s12 = sld [smem:[#allocation94_spill]]  ;;  %s2681_s13 = sld [smem:[#allocation194_spill]]  ;;  %v2249_v43 = vld [vmem:[%s1871_s19 + $0x10] sm:$0xff] }
 0x193   : > { %v831_v4 = vstv %s2669_s2  ;;  %v833_v34 = vstv %s2670_s20  ;;  %v764_v21 = vmul.f32 0.5, %v763_v45  ;;  %v828_v46 = vstv %s2671_s6  ;;  %s2682_s2 = sld [smem:[#allocation196_spill]]  ;;  %s2683_s20 = sld [smem:[#allocation129_spill]] }
 0x194   : > { %v832_v5 = vmul.f32 %v831_v4, %v1874_v13  ;;  %v834_v6 = vmul.f32 %v1877_v14, %v833_v34  ;;  %v2227_v9 = vadd.f32 %v812_v2, %v811_v15  ;;  %v827_v10 = vadd.f32 %v826_v1, %v824_v58  ;;  %s2684_s6 = sld [smem:[#allocation198_spill]] }
 0x195   : > { %v836_v11 = vstv %s2672_s4  ;;  %v839_v16 = vstv %s2673_s9  ;;  %v821_v20 = vadd.f32 %v820_v52, %v819_v12  ;;  %v841_v62 = vstv %s2674_s14  ;;  %s2685_s4 = sld [smem:[#allocation200_spill]]  ;;  %s2686_s9 = sld [smem:[#allocation202_spill]] }
 0x196   : > { %v835_v51 = vadd.f32 %v834_v6, %v832_v5  ;;  %v840_v37 = vmul.f32 %v839_v16, %v1874_v13  ;;  %v791_v18 = vadd.f32 %v790_v54, %v788_v63  ;;  %v806_v22 = vmax.f32 %v2215_v57, 0.0  ;;  %s2687_s14 = sld [smem:[#allocation204_spill]] }
 0x197   : > { %v829_v25 = vadd.f32 %v828_v46, %v827_v10  ;;  %v842_v3 = vmul.f32 %v1877_v14, %v841_v62  ;;  %v844_v27 = vstv %s2675_s10  ;;  %v847_v28 = vstv %s2676_s11  ;;  %s2688_s10 = sld [smem:[#allocation206_spill]]  ;;  %s2689_s11 = sld [smem:[#allocation195_spill]] }
 0x198   : > { %v2235_v7 = vadd.f32 %v836_v11, %v835_v51  ;;  %v849_v29 = vstv %s2677_s7  ;;  %v814_v30 = vmax.f32 %v2227_v9, 0.0  ;;  %v848_v33 = vmul.f32 %v847_v28, %v1874_v13  ;;  %s2690_s7 = sld [smem:[#allocation197_spill]] }
 0x199   : > { %v843_v31 = vadd.f32 %v842_v3, %v840_v37  ;;  %v850_v35 = vmul.f32 %v1877_v14, %v849_v29  ;;  %v822_v24 = vmax.f32 %v821_v20, 0.0  ;;  %v830_v36 = vmax.f32 %v829_v25, 0.0 }
 0x19a   : > { %v852_v26 = vstv %s2678_s0  ;;  %v855_v38 = vstv %s2679_s5  ;;  %v857_v32 = vstv %s2680_s12  ;;  %v838_v42 = vmax.f32 %v2235_v7, 0.0  ;;  %s2691_s0 = sld [smem:[#allocation199_spill]]  ;;  %s2692_s5 = sld [smem:[#allocation208_spill]] }
 0x19b   : > { %v845_v39 = vadd.f32 %v844_v27, %v843_v31  ;;  %v851_v40 = vadd.f32 %v850_v35, %v848_v33  ;;  %v856_v41 = vmul.f32 %v855_v38, %v1874_v13  ;;  %v858_v44 = vmul.f32 %v2249_v43, %v857_v32  ;;  %s2693_s12 = sld [smem:[#allocation201_spill]] }
 0x19c   : > { %v863_v14 = vstv %s2681_s13  ;;  %v865_v47 = vstv %s2682_s2  ;;  %v860_v49 = vstv %s2683_s20  ;;  %v868_v54 = vstv %s2684_s6  ;;  %s2694_s13 = sld [smem:[#allocation203_spill]]  ;;  %s2695_s2 = sld [smem:[#allocation205_spill]] }
 0x19d   : > { %v846_v48 = vmax.f32 %v845_v39, 0.0  ;;  %v853_v19 = vadd.f32 %v852_v26, %v851_v40  ;;  %v864_v50 = vmul.f32 %v863_v14, %v806_v22  ;;  %v859_v45 = vadd.f32 %v858_v44, %v856_v41  ;;  %s2696_s20 = sld [smem:[#allocation207_spill]]  ;;  %s2697_s6 = sld [smem:[#allocation210_spill]] }
 0x19e   : > { %v866_v53 = vmul.f32 %v865_v47, %v814_v30  ;;  %v871_v13 = vstv %s2685_s4  ;;  %1231 = vtanh.f32 %v2189_v61  ;;  %v869_v15 = vmul.f32 %v868_v54, %v822_v24  ;;  %s2698_s4 = sld [smem:[#allocation209_spill]] }
 0x19f   : > { %v872_v59 = vmul.f32 %v871_v13, %v830_v36  ;;  %v861_v58 = vadd.f32 %v860_v49, %v859_v45  ;;  %v874_v63 = vstv %s2686_s9  ;;  %v877_v57 = vstv %s2687_s14  ;;  %s2699_s9 = sld [smem:[#allocation211_spill]]  ;;  %v1248_v13 = vld [vmem:[%s1871_s19] sm:$0xff]  ;;  %s2700_s19 = sshll.u32 %s1355_s21, 3 }
 0x1a0   : > { %v867_v60 = vadd.f32 %v866_v53, %v864_v50  ;;  %v670_v2 = vmul.f32 0.5, %v2191_v17  ;;  %1233 = vtanh.f32 %v764_v21  ;;  %v793_v52 = vadd.f32 %v792_v55, %v791_v18  ;;  %s931_s14 = sshra.s32 %s2700_s19, 3  ;;  %s296_s21 = sadd.s32 1, %s1355_s21  }
 0x1a1   : > { %v854_v12 = vmax.f32 %v853_v19, 0.0  ;;  %v875_v4 = vmul.f32 %v874_v63, %v838_v42  ;;  %v878_v61 = vmul.f32 %v877_v57, %v846_v48  ;;  %v880_v34 = vstv %s2688_s10  ;;  %s1204_s10 = smul.u32 80, %s931_s14  ;;  %p293_p12 = scmp.ge.s32.totalorder %s296_s21, 2  }
 0x1a2   : > { %v870_v1 = vadd.f32 %v869_v15, %v867_v60  ;;  %v893_v46 = vstv %s2689_s11  ;;  %v895_v5 = vstv %s2690_s7  ;;  %v898_v6 = vstv %s2691_s0  ;;  %s1364_s7 = smov (%p293_p12), [#allocation12]  }
 0x1a3   : > { %v862_v9 = vmax.f32 %v861_v58, 0.0  ;;  %v894_v11 = vmul.f32 %v893_v46, %v806_v22  ;;  %v896_v16 = vmul.f32 %v895_v5, %v814_v30  ;;  %v883_v20 = vstv %s2692_s5  ;;  %s935_s11 = scalar_lea.vmem [#allocation12], %s1204_s10  ;;  %s967_s0 = sshll.u32 (%p293_p12), %s1364_s7, 4  ;;  %s968_s0 = int_to_ptr.vmem [resolvable:$true] %s967_s0 }
 0x1a4   : > { %v873_v10 = vadd.f32 %v872_v59, %v870_v1  ;;  %v899_v17 = vmul.f32 %v898_v6, %v822_v24  ;;  %v901_v21 = vstv %s2693_s12  ;;  %v904_v51 = vstv %s2694_s13  ;;  %s1317_s5 = scalar_lea.vmem (%p293_p12), %s968_s0, 2560  ;;  %p1322_p0 = scmp.lt.s32.totalorder (%p293_p12), %s968_s0, %s968_s0 }
 0x1a5   : > { %v881_v37 = vmul.f32 %v880_v34, %v854_v12  ;;  %v897_v62 = vadd.f32 %v896_v16, %v894_v11  ;;  %v902_v18 = vmul.f32 %v901_v21, %v830_v36  ;;  %1235 = vtanh.f32 %v670_v2  ;;  %p1318_p13 = scmp.ne.s32.totalorder (%p293_p12), %s968_s0, %s1317_s5  ;;  %p1323_p1 = scmp.lt.s32.totalorder (%p293_p12), %s1317_s5, %s1317_s5 }
 0x1a6   : > { %v876_v55 = vadd.f32 %v875_v4, %v873_v10  ;;  %v794_v25 = vmul.f32 0.5, %v793_v52  ;;  %v907_v3 = vstv %s2695_s2  ;;  %v884_v27 = vmul.f32 %v883_v20, %v862_v9 }
 0x1a7   : > { %v900_v28 = vadd.f32 %v899_v17, %v897_v62  ;;  %v905_v29 = vmul.f32 %v904_v51, %v838_v42  ;;  %v910_v30 = vstv %s2696_s20  ;;  %v908_v35 = vmul.f32 %v907_v3, %v846_v48  ;;  %p1324_p2 = por (%p293_p12), %p1323_p1, %p1322_p0 }
 0x1a8   : > { %v879_v7 = vadd.f32 %v878_v61, %v876_v55  ;;  %v1232_v22 = vpop.eup %1231  ;;  %v394_v26 = vmul.f32 0.5, %v2102_v23  ;;  %v518_v38 = vmul.f32 0.5, %v2210_v8  ;;  %v886_v36 = vstv %s2697_s6 }
 0x1a9   : > { %v903_v33 = vadd.f32 %v902_v18, %v900_v28  ;;  %v913_v39 = vstv %s2698_s4  ;;  %1237 = vtanh.f32 %v794_v25  ;;  %v911_v32 = vmul.f32 %v910_v30, %v854_v12  ;;  %p1325_p3 = pnand (%p293_p12), %p1324_p2, %p1318_p13 }
 0x1aa   : > { %v882_v31 = vadd.f32 %v881_v37, %v879_v7  ;;  %v1234_v24 = vpop.eup %1233  ;;  %v914_v14 = vmul.f32 %v913_v39, %v862_v9  ;;  %v395_v47 = vadd.f32 0.5, %v394_v26  ;;  %v519_v19 = vadd.f32 0.5, %v518_v38 }
 0x1ab   : > { %v906_v41 = vadd.f32 %v905_v29, %v903_v33  ;;  %v642_v49 = vmul.f32 0.5, %v1232_v22  ;;  %v424_v23 = vmul.f32 0.5, %v2129_v56  ;;  %v548_v8 = vmul.f32 0.5, %v2219_v0 }
 0x1ac   : > { %v885_v40 = vadd.f32 %v884_v27, %v882_v31  ;;  %v916_v53 = vstv %s2699_s9  ;;  %v396_v15 = vmul.f32 %v1248_v13, %v395_v47  ;;  %v520_v59 = vmul.f32 %v1248_v13, %v519_v19 }
 0x1ad   : > { %v909_v42 = vadd.f32 %v908_v35, %v906_v41  ;;  %v643_v58 = vadd.f32 0.5, %v642_v49  ;;  %v766_v60 = vmul.f32 0.5, %v1234_v24  ;;  %v425_v57 = vadd.f32 0.5, %v424_v23 }
 0x1ae   : > { %v887_v44 = vadd.f32 %v886_v36, %v885_v40  ;;  %v549_v2 = vadd.f32 0.5, %v548_v8  ;;  %v923_v34 = vadd.f32 %v520_v59, %v396_v15 }
 0x1af   : > { %v912_v50 = vadd.f32 %v911_v32, %v909_v42  ;;  %v1236_v45 = vpop.eup %1235  ;;  %v644_v4 = vmul.f32 %v1248_v13, %v643_v58  ;;  %v767_v61 = vadd.f32 0.5, %v766_v60  ;;  %v426_v56 = vmul.f32 %v2249_v43, %v425_v57 }
 0x1b0   : > { %v888_v48 = vmul.f32 0.5, %v887_v44  ;;  %v672_v52 = vmul.f32 0.5, %v1236_v45  ;;  %v550_v0 = vmul.f32 %v2249_v43, %v549_v2 }
 0x1b1   : > { %v915_v54 = vadd.f32 %v914_v14, %v912_v50  ;;  %v768_v6 = vmul.f32 %v1248_v13, %v767_v61  ;;  %v924_v9 = vadd.f32 %v923_v34, %v644_v4 }
 0x1b2   : > { %1239 = vtanh.f32 %v888_v48  ;;  %v673_v46 = vadd.f32 0.5, %v672_v52  ;;  %v945_v17 = vadd.f32 %v550_v0, %v426_v56 }
 0x1b3   : > { %v917_v63 = vadd.f32 %v916_v53, %v915_v54  ;;  %v1238_v12 = vpop.eup %1237  ;;  %v925_v51 = vadd.f32 %v924_v9, %v768_v6 }
 0x1b4   : > { %v796_v5 = vmul.f32 0.5, %v1238_v12  ;;  %v674_v11 = vmul.f32 %v2249_v43, %v673_v46 }
 0x1b5   : > { %v918_v1 = vmul.f32 0.5, %v917_v63 }
 0x1b6   : > { %v797_v16 = vadd.f32 0.5, %v796_v5  ;;  %v946_v62 = vadd.f32 %v945_v17, %v674_v11 }
 0x1b7   : > { %1241 = vtanh.f32 %v918_v1 }
 0x1b8   : > { %v798_v55 = vmul.f32 %v2249_v43, %v797_v16 }
 0x1ba   : > { %v947_v28 = vadd.f32 %v946_v62, %v798_v55 }
 0x1bc   : > { %v1240_v10 = vpop.eup %1239 }
 0x1bd   : > { %v890_v20 = vmul.f32 0.5, %v1240_v10 }
 0x1bf   : > { %v891_v21 = vadd.f32 0.5, %v890_v20 }
 0x1c1   : > { %v892_v37 = vmul.f32 %v1248_v13, %v891_v21  ;;  %v1242_v18 = vpop.eup %1241 }
 0x1c2   : > { %v920_v25 = vmul.f32 0.5, %v1242_v18 }
 0x1c3   : > { %v926_v3 = vadd.f32 %v925_v51, %v892_v37 }
 0x1c4   : > { %v921_v7 = vadd.f32 0.5, %v920_v25 }
 0x1c5   : > { %v927_v27 = vadd.f32 1e-07, %v926_v3 }
 0x1c6   : > { %v922_v29 = vmul.f32 %v2249_v43, %v921_v7 }
 0x1c7   : > { %1243 = vrcp.f32 %v927_v27 }
 0x1c8   : > { %v948_v22 = vadd.f32 %v947_v28, %v922_v29 }
 0x1ca   : > { %v949_v30 = vadd.f32 1e-07, %v948_v22 }
 0x1cc   : > { %1245 = vrcp.f32 %v949_v30 }
 0x1d1   : > { %v1244_v31 = vpop.eup %1243 }
 0x1d2   : > { %v929_v33 = vmul.f32 %v1248_v13, %v1244_v31 }
 0x1d4   : > { %v930_v35 = vmul.f32 %v929_v33, %v396_v15  ;;  %v937_v24 = vmul.f32 %v929_v33, %v520_v59  ;;  %v939_v26 = vmul.f32 %v929_v33, %v644_v4  ;;  %v941_v38 = vmul.f32 %v929_v33, %v768_v6 }
 0x1d5   : > { %v943_v36 = vmul.f32 %v929_v33, %v892_v37 }
 0x1d6   : > { %936 = vst [vmem:[%s935_s11] sm:$0xff] %v930_v35  ;;  %938 = vst [vmem:[%s935_s11 + $0x10] sm:$0xff] %v937_v24  ;;  %v1246_v39 = vpop.eup %1245 }
 0x1d7   : > { %940 = vst [vmem:[%s935_s11 + $0x20] sm:$0xff] %v939_v26  ;;  %942 = vst [vmem:[%s935_s11 + $0x30] sm:$0xff] %v941_v38  ;;  %v951_v40 = vmul.f32 %v2249_v43, %v1246_v39  ;;  %295 = sbr.rel (!%p293_p12) target bundleno = 277 (0x115), region = 70 }
 0x1d8   : > { %944 = vst [vmem:[%s935_s11 + $0x40] sm:$0xff] %v943_v36 }
 0x1d9   : > { %v952_v41 = vmul.f32 %v951_v40, %v426_v56  ;;  %v954_v32 = vmul.f32 %v951_v40, %v550_v0  ;;  %v956_v44 = vmul.f32 %v951_v40, %v674_v11  ;;  %v958_v42 = vmul.f32 %v951_v40, %v798_v55 }
 0x1da   : > { %v960_v14 = vmul.f32 %v951_v40, %v922_v29 }
 0x1db   : > { %953 = vst [vmem:[%s935_s11 + $0x8] sm:$0xff] %v952_v41  ;;  %955 = vst [vmem:[%s935_s11 + $0x18] sm:$0xff] %v954_v32 }
 0x1dc   : > { %957 = vst [vmem:[%s935_s11 + $0x28] sm:$0xff] %v956_v44  ;;  %959 = vst [vmem:[%s935_s11 + $0x38] sm:$0xff] %v958_v42 }
 0x1dd   : > { %961 = vst [vmem:[%s935_s11 + $0x48] sm:$0xff] %v960_v14 }
 0x1de   :  { %1328 = shalt.err (!%p1325_p3)
}
 0x1df   :  { %s2701_s2 = sld [smem:[#allocation212_spill]] }
 0x1e5   :  { %s1329_s20 = scalar_lea.hbm %s2701_s2, 2560 }
 0x1e6   :  { %p1330_p4 = scmp.ne.s32.totalorder %s2701_s2, %s1329_s20  ;;  %p1333_p5 = scmp.lt.u32.totalorder %s1329_s20, %s2701_s2 }
 0x1e8   :  { %p1335_p6 = pnand %p1333_p5, %p1330_p4 }
 0x1ea   :  { %1338 = shalt.err (!%p1335_p6)
}
 0x1eb   :  { %s1365_s28 = smov 1280   ;;  %s1366_s29 = smov 80  }
 0x1ec   :  { %973 = dma.vmem_to_hbm [thread:$0]  %s968_s0, 2560, %s2701_s2, [#allocation4], %s1365_s28, %s1365_s28, %s1366_s29  }
 0x1ed   :  { %1351 = dma.done.wait [#allocation4], 2560  }
 0x1ee   :  { %1352 = vsyncadd [#allocation4], 4294964736 }
 0x1ef   :  { %977 = vsyncpa [#allocation3], 1 }
 0x1f0   :  { %978 = vsyncpa [#allocation4], 1 }
 0x1f1   :  { %979 = vsyncpa [#allocation5], 1 }
 0x1f2   :  { %980 = vsyncpa [#allocation6], 1 }
 0x1f3   :  { %981 = vsyncpa [#allocation9], 1 }

</bundles_post_ra>
